<compile_context>
chip_gen: v5e
topology: v5e:2x2
jax: 0.10.0
libtpu: 0.0.40
codegen_flags: <defaults>
</compile_context>

<pallas_src>
import jax
import jax.numpy as jnp
from jax import lax
from jax.experimental import pallas as pl
from jax.experimental.pallas import tpu as pltpu

N = 23      # fixed by the module's reshape(-1, 23, 23, 1)
NP = 24     # node rows padded to a sublane multiple (8)
ALPHA = 0.2         # LeakyReLU slope
NEG = -9e15         # adjacency mask value


# ---------------------------------------------------------------------------
# Fused kernel: LSTM (in=1, hidden=1) + 2-layer GAT + weighted combine
# ---------------------------------------------------------------------------
def fused_kernel(sc_ref, adj_ref, w1_ref, a1_ref, w2_ref, a2_ref,
                 x_ref, out_ref, h1s_ref):
    # x_ref: (H, R, N) with R = bt*NP stacked node rows for this batch tile.
    H, R, _ = x_ref.shape
    bt = R // NP

    # Hoisted scalar reads (gate order i, f, g, o; biases pre-summed).
    wi = [sc_ref[k] for k in range(4)]
    wh = [sc_ref[4 + k] for k in range(4)]
    bb = [sc_ref[8 + k] for k in range(4)]
    yz0 = sc_ref[12]
    yz1 = sc_ref[13]

    # ---- LSTM branch: elementwise recurrence over all R*N nodes ----------
    h = jnp.zeros((R, N), jnp.float32)
    c = jnp.zeros((R, N), jnp.float32)
    for t in range(H):                        # static unroll (H == 12)
        xt = x_ref[t]                         # (R, N)
        gi = jax.nn.sigmoid(xt * wi[0] + h * wh[0] + bb[0])
        gf = jax.nn.sigmoid(xt * wi[1] + h * wh[1] + bb[1])
        gg = jnp.tanh(xt * wi[2] + h * wh[2] + bb[2])
        go = jax.nn.sigmoid(xt * wi[3] + h * wh[3] + bb[3])
        c = gf * c + gi * gg
        h = go * jnp.tanh(c)
    # Write the x1 contribution of the final combine now (frees live range).
    out_ref[...] = yz0 * h

    # ---- GAT branch -------------------------------------------------------
    adj = adj_ref[...]                        # (NP, NP), zero-padded row/col
    row_ok = (lax.broadcasted_iota(jnp.int32, (NP, 1), 0) < N).astype(jnp.float32)

    def attention(wh_b, sd_b):
        # wh_b: (NP, N) projected features of one graph; sd_b: (NP, 2) = [s|d]
        s = sd_b[:, 0:1]
        d = sd_b[:, 1:2]
        e = s + d.T                                        # e[i,j] = s_i + d_j
        e = jnp.where(e > 0.0, e, ALPHA * e)               # LeakyReLU(0.2)
        e = jnp.where(adj > 0.0, e, NEG)                   # adjacency mask
        e = e - jnp.max(e, axis=-1, keepdims=True)
        p = jnp.exp(e)
        inv = pl.reciprocal(jnp.sum(p, axis=-1, keepdims=True), approx=True)
        return jnp.dot(p * inv, wh_b, preferred_element_type=jnp.float32)

    # Layer 1: stacked projections over all bt graphs at once (one MXU call).
    xf = x_ref[H - 1]                                      # last-timestep features
    wh1s = jnp.dot(xf, w1_ref[...], preferred_element_type=jnp.float32)    # (R, N)
    sd1s = jnp.dot(wh1s, a1_ref[...], preferred_element_type=jnp.float32)  # (R, 2)
    for b in range(bt):                                    # static unroll, bt <= 8
        sl = slice(b * NP, (b + 1) * NP)
        h1 = attention(wh1s[sl, :], sd1s[sl, :])
        h1 = jnp.where(h1 > 0.0, h1, jnp.exp(jnp.minimum(h1, 0.0)) - 1.0)  # ELU
        h1s_ref[sl, :] = h1 * row_ok                       # zero the padded row

    # Layer 2 (stacked projections again) + fused combine into out_ref.
    h1s = h1s_ref[...]
    wh2s = jnp.dot(h1s, w2_ref[...], preferred_element_type=jnp.float32)
    sd2s = jnp.dot(wh2s, a2_ref[...], preferred_element_type=jnp.float32)
    for b in range(bt):
        sl = slice(b * NP, (b + 1) * NP)
        h2 = attention(wh2s[sl, :], sd2s[sl, :])
        out_ref[sl, :] = out_ref[sl, :] + yz1 * h2


# ---------------------------------------------------------------------------
# Wrapper: layout plumbing + pallas_call
# ---------------------------------------------------------------------------
def _pick_bt(B):
    # Keep >=2 parallel grid steps when possible (v7x megacore) and cap the
    # per-step batch tile so the (H, bt*24, 128-lane) input block + scratch
    # stay well inside every generation's scoped-VMEM budget (v5e 16 MiB,
    # v7x ~32 MiB scoped of 64 MiB physical) and vreg pressure stays sane.
    if B <= 2:
        return 1
    return max(1, min(8, B // 2))


def lstm_gat2_forward(flow_x, adj, params):
    B, n1, n2, H = flow_x.shape
    assert n1 == N and n2 == N

    bt = _pick_bt(B)
    Bp = ((B + bt - 1) // bt) * bt          # pad batch to a multiple of bt
    G = Bp // bt

    # (B, N, N, H) -> (H, B, N, N) -> pad batch & rows -> (H, Bp*NP, N)
    # Node (b, i, j)'s time series sits at row b*NP + i, lane j, matching the
    # PyTorch x.view(-1, H, 1) per-node ordering.
    x = jnp.transpose(flow_x, (3, 0, 1, 2)).astype(jnp.float32)
    x = jnp.pad(x, ((0, 0), (0, Bp - B), (0, NP - N), (0, 0)))
    x3 = x.reshape(H, Bp * NP, N)

    adj_pad = jnp.pad(adj.astype(jnp.float32), ((0, NP - N), (0, NP - N)))

    # Packed SMEM scalars: wih(4) | whh(4) | bih+bhh(4) | yz(2)
    sc = jnp.concatenate([
        params["wih"], params["whh"],
        params["bih"] + params["bhh"], params["yz"],
    ]).astype(jnp.float32)

    smem = pl.BlockSpec(memory_space=pltpu.MemorySpace.SMEM)
    out2d = pl.pallas_call(
        fused_kernel,
        out_shape=jax.ShapeDtypeStruct((Bp * NP, N), jnp.float32),
        grid=(G,),
        in_specs=[
            smem,                                                # packed scalars (14,)
            pl.BlockSpec((NP, NP), lambda g: (0, 0)),            # adj (padded)
            pl.BlockSpec((N, N), lambda g: (0, 0)),              # W1
            pl.BlockSpec((N, 2), lambda g: (0, 0)),              # a1 = [a_src | a_dst]
            pl.BlockSpec((N, N), lambda g: (0, 0)),              # W2
            pl.BlockSpec((N, 2), lambda g: (0, 0)),              # a2
            pl.BlockSpec((H, bt * NP, N), lambda g: (0, g, 0)),  # stacked sequences
        ],
        out_specs=pl.BlockSpec((bt * NP, N), lambda g: (g, 0)),
        scratch_shapes=[pltpu.VMEM((bt * NP, N), jnp.float32)],  # stacked h1
        compiler_params=pltpu.CompilerParams(
            dimension_semantics=("parallel",)),
    )(sc, adj_pad, params["w1"], params["a1"], params["w2"], params["a2"], x3)

    out = out2d.reshape(Bp, NP, N)[:B, :N, :]                    # drop padding
    return out[..., None]                                        # (B, N, N, 1)


# ---------------------------------------------------------------------------
# Deterministic parameter construction (synthetic, matches module shapes)
# ---------------------------------------------------------------------------
def make_params(key):
    ks = jax.random.split(key, 8)
    # nn.LSTM(1, 1): weight_ih_l0 (4,1), weight_hh_l0 (4,1), biases (4,), U(-1,1)
    wih = jax.random.uniform(ks[0], (4,), jnp.float32, -1.0, 1.0)
    whh = jax.random.uniform(ks[1], (4,), jnp.float32, -1.0, 1.0)
    bih = jax.random.uniform(ks[2], (4,), jnp.float32, -1.0, 1.0)
    bhh = jax.random.uniform(ks[3], (4,), jnp.float32, -1.0, 1.0)
    # GAT layer weights (xavier-uniform style)
    bw = (6.0 / (N + N)) ** 0.5
    ba = (6.0 / (2 * N + 1)) ** 0.5
    w1 = jax.random.uniform(ks[4], (N, N), jnp.float32, -bw, bw)
    w2 = jax.random.uniform(ks[5], (N, N), jnp.float32, -bw, bw)
    a1 = jax.random.uniform(ks[6], (N, 2), jnp.float32, -ba, ba)
    a2 = jax.random.uniform(ks[7], (N, 2), jnp.float32, -ba, ba)
    # self.a = nn.Parameter(torch.rand(2, 1)); yz = a / a.sum(0)
    a_param = jax.random.uniform(jax.random.fold_in(key, 99), (2, 1), jnp.float32)
    yz = (a_param / jnp.sum(a_param, axis=0, keepdims=True)).reshape(2)
    return dict(wih=wih, whh=whh, bih=bih, bhh=bhh,
                w1=w1, a1=a1, w2=w2, a2=a2, yz=yz)


if __name__ == "__main__":
    key = jax.random.PRNGKey(0)
    B, H = 2, 12  # seq_len=12 (module default)

    k_x, k_adj, k_p = jax.random.split(key, 3)
    flow_x = jax.random.normal(k_x, (B, N, N, H), jnp.float32)
    adj = (jax.random.uniform(k_adj, (N, N)) > 0.5).astype(jnp.float32)
    adj = jnp.maximum(adj, jnp.eye(N, dtype=jnp.float32))  # self loops

    params = make_params(k_p)

    out = jax.jit(lstm_gat2_forward)(flow_x, adj, params)
    jax.block_until_ready(out)

    assert out.shape == (B, N, N, 1), out.shape
    assert jnp.isfinite(out).all()
    print("KERNEL_OK")
</pallas_src>

<mosaic_0001>
module attributes {stable_mosaic.version = 11 : i64} {
  func.func @fused_kernel(%arg0: i32, %arg1: memref<14xf32, #tpu.memory_space<smem>>, %arg2: memref<24x24xf32, #tpu.memory_space<vmem>>, %arg3: memref<23x23xf32, #tpu.memory_space<vmem>>, %arg4: memref<23x2xf32, #tpu.memory_space<vmem>>, %arg5: memref<23x23xf32, #tpu.memory_space<vmem>>, %arg6: memref<23x2xf32, #tpu.memory_space<vmem>>, %arg7: memref<12x24x23xf32, #tpu.memory_space<vmem>>, %arg8: memref<24x23xf32, #tpu.memory_space<vmem>>, %arg9: memref<24x23xf32, #tpu.memory_space<vmem>>) attributes {dimension_semantics = [#tpu.dimension_semantics<parallel>], iteration_bounds = array<i64: 2>, scalar_prefetch = 0 : i64, scratch_operands = 1 : i64, tpu.core_type = #tpu.core_type<tc>, window_params = [{transform_indices = @transform_0, window_bounds = array<i64: 14>}, {pipeline_mode = #tpu.pipeline_mode<synchronous>, transform_indices = @transform_1, window_bounds = array<i64: 24, 24>}, {pipeline_mode = #tpu.pipeline_mode<synchronous>, transform_indices = @transform_2, window_bounds = array<i64: 23, 23>}, {pipeline_mode = #tpu.pipeline_mode<synchronous>, transform_indices = @transform_3, window_bounds = array<i64: 23, 2>}, {pipeline_mode = #tpu.pipeline_mode<synchronous>, transform_indices = @transform_4, window_bounds = array<i64: 23, 23>}, {pipeline_mode = #tpu.pipeline_mode<synchronous>, transform_indices = @transform_5, window_bounds = array<i64: 23, 2>}, {transform_indices = @transform_6, window_bounds = array<i64: 12, 24, 23>}, {transform_indices = @transform_7, window_bounds = array<i64: 24, 23>}]} {
    %c0 = arith.constant 0 : index
    %0 = memref.load %arg1[%c0] : memref<14xf32, #tpu.memory_space<smem>>
    %c1 = arith.constant 1 : index
    %1 = memref.load %arg1[%c1] : memref<14xf32, #tpu.memory_space<smem>>
    %c2 = arith.constant 2 : index
    %2 = memref.load %arg1[%c2] : memref<14xf32, #tpu.memory_space<smem>>
    %c3 = arith.constant 3 : index
    %3 = memref.load %arg1[%c3] : memref<14xf32, #tpu.memory_space<smem>>
    %c4 = arith.constant 4 : index
    %4 = memref.load %arg1[%c4] : memref<14xf32, #tpu.memory_space<smem>>
    %c5 = arith.constant 5 : index
    %5 = memref.load %arg1[%c5] : memref<14xf32, #tpu.memory_space<smem>>
    %c6 = arith.constant 6 : index
    %6 = memref.load %arg1[%c6] : memref<14xf32, #tpu.memory_space<smem>>
    %c7 = arith.constant 7 : index
    %7 = memref.load %arg1[%c7] : memref<14xf32, #tpu.memory_space<smem>>
    %c8 = arith.constant 8 : index
    %8 = memref.load %arg1[%c8] : memref<14xf32, #tpu.memory_space<smem>>
    %c9 = arith.constant 9 : index
    %9 = memref.load %arg1[%c9] : memref<14xf32, #tpu.memory_space<smem>>
    %c10 = arith.constant 10 : index
    %10 = memref.load %arg1[%c10] : memref<14xf32, #tpu.memory_space<smem>>
    %c11 = arith.constant 11 : index
    %11 = memref.load %arg1[%c11] : memref<14xf32, #tpu.memory_space<smem>>
    %c12 = arith.constant 12 : index
    %12 = memref.load %arg1[%c12] : memref<14xf32, #tpu.memory_space<smem>>
    %c13 = arith.constant 13 : index
    %13 = memref.load %arg1[%c13] : memref<14xf32, #tpu.memory_space<smem>>
    %cst = arith.constant 0.000000e+00 : f32
    %14 = vector.broadcast %cst : f32 to vector<24x23xf32>
    %cst_0 = arith.constant 0.000000e+00 : f32
    %15 = vector.broadcast %cst_0 : f32 to vector<24x23xf32>
    %c0_1 = arith.constant 0 : index
    %c0_2 = arith.constant 0 : index
    %c0_3 = arith.constant 0 : index
    %16 = vector.load %arg7[%c0_1, %c0_2, %c0_3] : memref<12x24x23xf32, #tpu.memory_space<vmem>>, vector<1x24x23xf32>
    %17 = vector.shape_cast %16 : vector<1x24x23xf32> to vector<24x23xf32>
    %18 = vector.broadcast %0 : f32 to vector<24x23xf32>
    %19 = arith.mulf %17, %18 : vector<24x23xf32>
    %20 = vector.broadcast %4 : f32 to vector<24x23xf32>
    %21 = arith.mulf %14, %20 : vector<24x23xf32>
    %22 = arith.addf %19, %21 : vector<24x23xf32>
    %23 = vector.broadcast %8 : f32 to vector<24x23xf32>
    %24 = arith.addf %22, %23 : vector<24x23xf32>
    %25 = arith.negf %24 : vector<24x23xf32>
    %26 = math.exp %25 : vector<24x23xf32>
    %cst_4 = arith.constant 1.000000e+00 : f32
    %27 = vector.broadcast %cst_4 : f32 to vector<24x23xf32>
    %28 = arith.addf %27, %26 : vector<24x23xf32>
    %29 = arith.divf %27, %28 : vector<24x23xf32>
    %30 = vector.broadcast %1 : f32 to vector<24x23xf32>
    %31 = arith.mulf %17, %30 : vector<24x23xf32>
    %32 = vector.broadcast %5 : f32 to vector<24x23xf32>
    %33 = arith.mulf %14, %32 : vector<24x23xf32>
    %34 = arith.addf %31, %33 : vector<24x23xf32>
    %35 = vector.broadcast %9 : f32 to vector<24x23xf32>
    %36 = arith.addf %34, %35 : vector<24x23xf32>
    %37 = arith.negf %36 : vector<24x23xf32>
    %38 = math.exp %37 : vector<24x23xf32>
    %cst_5 = arith.constant 1.000000e+00 : f32
    %39 = vector.broadcast %cst_5 : f32 to vector<24x23xf32>
    %40 = arith.addf %39, %38 : vector<24x23xf32>
    %41 = arith.divf %39, %40 : vector<24x23xf32>
    %42 = vector.broadcast %2 : f32 to vector<24x23xf32>
    %43 = arith.mulf %17, %42 : vector<24x23xf32>
    %44 = vector.broadcast %6 : f32 to vector<24x23xf32>
    %45 = arith.mulf %14, %44 : vector<24x23xf32>
    %46 = arith.addf %43, %45 : vector<24x23xf32>
    %47 = vector.broadcast %10 : f32 to vector<24x23xf32>
    %48 = arith.addf %46, %47 : vector<24x23xf32>
    %49 = math.tanh %48 : vector<24x23xf32>
    %50 = vector.broadcast %3 : f32 to vector<24x23xf32>
    %51 = arith.mulf %17, %50 : vector<24x23xf32>
    %52 = vector.broadcast %7 : f32 to vector<24x23xf32>
    %53 = arith.mulf %14, %52 : vector<24x23xf32>
    %54 = arith.addf %51, %53 : vector<24x23xf32>
    %55 = vector.broadcast %11 : f32 to vector<24x23xf32>
    %56 = arith.addf %54, %55 : vector<24x23xf32>
    %57 = arith.negf %56 : vector<24x23xf32>
    %58 = math.exp %57 : vector<24x23xf32>
    %cst_6 = arith.constant 1.000000e+00 : f32
    %59 = vector.broadcast %cst_6 : f32 to vector<24x23xf32>
    %60 = arith.addf %59, %58 : vector<24x23xf32>
    %61 = arith.divf %59, %60 : vector<24x23xf32>
    %62 = arith.mulf %41, %15 : vector<24x23xf32>
    %63 = arith.mulf %29, %49 : vector<24x23xf32>
    %64 = arith.addf %62, %63 : vector<24x23xf32>
    %65 = math.tanh %64 : vector<24x23xf32>
    %66 = arith.mulf %61, %65 : vector<24x23xf32>
    %c1_7 = arith.constant 1 : index
    %c0_8 = arith.constant 0 : index
    %c0_9 = arith.constant 0 : index
    %67 = vector.load %arg7[%c1_7, %c0_8, %c0_9] : memref<12x24x23xf32, #tpu.memory_space<vmem>>, vector<1x24x23xf32>
    %68 = vector.shape_cast %67 : vector<1x24x23xf32> to vector<24x23xf32>
    %69 = vector.broadcast %0 : f32 to vector<24x23xf32>
    %70 = arith.mulf %68, %69 : vector<24x23xf32>
    %71 = vector.broadcast %4 : f32 to vector<24x23xf32>
    %72 = arith.mulf %66, %71 : vector<24x23xf32>
    %73 = arith.addf %70, %72 : vector<24x23xf32>
    %74 = vector.broadcast %8 : f32 to vector<24x23xf32>
    %75 = arith.addf %73, %74 : vector<24x23xf32>
    %76 = arith.negf %75 : vector<24x23xf32>
    %77 = math.exp %76 : vector<24x23xf32>
    %cst_10 = arith.constant 1.000000e+00 : f32
    %78 = vector.broadcast %cst_10 : f32 to vector<24x23xf32>
    %79 = arith.addf %78, %77 : vector<24x23xf32>
    %80 = arith.divf %78, %79 : vector<24x23xf32>
    %81 = vector.broadcast %1 : f32 to vector<24x23xf32>
    %82 = arith.mulf %68, %81 : vector<24x23xf32>
    %83 = vector.broadcast %5 : f32 to vector<24x23xf32>
    %84 = arith.mulf %66, %83 : vector<24x23xf32>
    %85 = arith.addf %82, %84 : vector<24x23xf32>
    %86 = vector.broadcast %9 : f32 to vector<24x23xf32>
    %87 = arith.addf %85, %86 : vector<24x23xf32>
    %88 = arith.negf %87 : vector<24x23xf32>
    %89 = math.exp %88 : vector<24x23xf32>
    %cst_11 = arith.constant 1.000000e+00 : f32
    %90 = vector.broadcast %cst_11 : f32 to vector<24x23xf32>
    %91 = arith.addf %90, %89 : vector<24x23xf32>
    %92 = arith.divf %90, %91 : vector<24x23xf32>
    %93 = vector.broadcast %2 : f32 to vector<24x23xf32>
    %94 = arith.mulf %68, %93 : vector<24x23xf32>
    %95 = vector.broadcast %6 : f32 to vector<24x23xf32>
    %96 = arith.mulf %66, %95 : vector<24x23xf32>
    %97 = arith.addf %94, %96 : vector<24x23xf32>
    %98 = vector.broadcast %10 : f32 to vector<24x23xf32>
    %99 = arith.addf %97, %98 : vector<24x23xf32>
    %100 = math.tanh %99 : vector<24x23xf32>
    %101 = vector.broadcast %3 : f32 to vector<24x23xf32>
    %102 = arith.mulf %68, %101 : vector<24x23xf32>
    %103 = vector.broadcast %7 : f32 to vector<24x23xf32>
    %104 = arith.mulf %66, %103 : vector<24x23xf32>
    %105 = arith.addf %102, %104 : vector<24x23xf32>
    %106 = vector.broadcast %11 : f32 to vector<24x23xf32>
    %107 = arith.addf %105, %106 : vector<24x23xf32>
    %108 = arith.negf %107 : vector<24x23xf32>
    %109 = math.exp %108 : vector<24x23xf32>
    %cst_12 = arith.constant 1.000000e+00 : f32
    %110 = vector.broadcast %cst_12 : f32 to vector<24x23xf32>
    %111 = arith.addf %110, %109 : vector<24x23xf32>
    %112 = arith.divf %110, %111 : vector<24x23xf32>
    %113 = arith.mulf %92, %64 : vector<24x23xf32>
    %114 = arith.mulf %80, %100 : vector<24x23xf32>
    %115 = arith.addf %113, %114 : vector<24x23xf32>
    %116 = math.tanh %115 : vector<24x23xf32>
    %117 = arith.mulf %112, %116 : vector<24x23xf32>
    %c2_13 = arith.constant 2 : index
    %c0_14 = arith.constant 0 : index
    %c0_15 = arith.constant 0 : index
    %118 = vector.load %arg7[%c2_13, %c0_14, %c0_15] : memref<12x24x23xf32, #tpu.memory_space<vmem>>, vector<1x24x23xf32>
    %119 = vector.shape_cast %118 : vector<1x24x23xf32> to vector<24x23xf32>
    %120 = vector.broadcast %0 : f32 to vector<24x23xf32>
    %121 = arith.mulf %119, %120 : vector<24x23xf32>
    %122 = vector.broadcast %4 : f32 to vector<24x23xf32>
    %123 = arith.mulf %117, %122 : vector<24x23xf32>
    %124 = arith.addf %121, %123 : vector<24x23xf32>
    %125 = vector.broadcast %8 : f32 to vector<24x23xf32>
    %126 = arith.addf %124, %125 : vector<24x23xf32>
    %127 = arith.negf %126 : vector<24x23xf32>
    %128 = math.exp %127 : vector<24x23xf32>
    %cst_16 = arith.constant 1.000000e+00 : f32
    %129 = vector.broadcast %cst_16 : f32 to vector<24x23xf32>
    %130 = arith.addf %129, %128 : vector<24x23xf32>
    %131 = arith.divf %129, %130 : vector<24x23xf32>
    %132 = vector.broadcast %1 : f32 to vector<24x23xf32>
    %133 = arith.mulf %119, %132 : vector<24x23xf32>
    %134 = vector.broadcast %5 : f32 to vector<24x23xf32>
    %135 = arith.mulf %117, %134 : vector<24x23xf32>
    %136 = arith.addf %133, %135 : vector<24x23xf32>
    %137 = vector.broadcast %9 : f32 to vector<24x23xf32>
    %138 = arith.addf %136, %137 : vector<24x23xf32>
    %139 = arith.negf %138 : vector<24x23xf32>
    %140 = math.exp %139 : vector<24x23xf32>
    %cst_17 = arith.constant 1.000000e+00 : f32
    %141 = vector.broadcast %cst_17 : f32 to vector<24x23xf32>
    %142 = arith.addf %141, %140 : vector<24x23xf32>
    %143 = arith.divf %141, %142 : vector<24x23xf32>
    %144 = vector.broadcast %2 : f32 to vector<24x23xf32>
    %145 = arith.mulf %119, %144 : vector<24x23xf32>
    %146 = vector.broadcast %6 : f32 to vector<24x23xf32>
    %147 = arith.mulf %117, %146 : vector<24x23xf32>
    %148 = arith.addf %145, %147 : vector<24x23xf32>
    %149 = vector.broadcast %10 : f32 to vector<24x23xf32>
    %150 = arith.addf %148, %149 : vector<24x23xf32>
    %151 = math.tanh %150 : vector<24x23xf32>
    %152 = vector.broadcast %3 : f32 to vector<24x23xf32>
    %153 = arith.mulf %119, %152 : vector<24x23xf32>
    %154 = vector.broadcast %7 : f32 to vector<24x23xf32>
    %155 = arith.mulf %117, %154 : vector<24x23xf32>
    %156 = arith.addf %153, %155 : vector<24x23xf32>
    %157 = vector.broadcast %11 : f32 to vector<24x23xf32>
    %158 = arith.addf %156, %157 : vector<24x23xf32>
    %159 = arith.negf %158 : vector<24x23xf32>
    %160 = math.exp %159 : vector<24x23xf32>
    %cst_18 = arith.constant 1.000000e+00 : f32
    %161 = vector.broadcast %cst_18 : f32 to vector<24x23xf32>
    %162 = arith.addf %161, %160 : vector<24x23xf32>
    %163 = arith.divf %161, %162 : vector<24x23xf32>
    %164 = arith.mulf %143, %115 : vector<24x23xf32>
    %165 = arith.mulf %131, %151 : vector<24x23xf32>
    %166 = arith.addf %164, %165 : vector<24x23xf32>
    %167 = math.tanh %166 : vector<24x23xf32>
    %168 = arith.mulf %163, %167 : vector<24x23xf32>
    %c3_19 = arith.constant 3 : index
    %c0_20 = arith.constant 0 : index
    %c0_21 = arith.constant 0 : index
    %169 = vector.load %arg7[%c3_19, %c0_20, %c0_21] : memref<12x24x23xf32, #tpu.memory_space<vmem>>, vector<1x24x23xf32>
    %170 = vector.shape_cast %169 : vector<1x24x23xf32> to vector<24x23xf32>
    %171 = vector.broadcast %0 : f32 to vector<24x23xf32>
    %172 = arith.mulf %170, %171 : vector<24x23xf32>
    %173 = vector.broadcast %4 : f32 to vector<24x23xf32>
    %174 = arith.mulf %168, %173 : vector<24x23xf32>
    %175 = arith.addf %172, %174 : vector<24x23xf32>
    %176 = vector.broadcast %8 : f32 to vector<24x23xf32>
    %177 = arith.addf %175, %176 : vector<24x23xf32>
    %178 = arith.negf %177 : vector<24x23xf32>
    %179 = math.exp %178 : vector<24x23xf32>
    %cst_22 = arith.constant 1.000000e+00 : f32
    %180 = vector.broadcast %cst_22 : f32 to vector<24x23xf32>
    %181 = arith.addf %180, %179 : vector<24x23xf32>
    %182 = arith.divf %180, %181 : vector<24x23xf32>
    %183 = vector.broadcast %1 : f32 to vector<24x23xf32>
    %184 = arith.mulf %170, %183 : vector<24x23xf32>
    %185 = vector.broadcast %5 : f32 to vector<24x23xf32>
    %186 = arith.mulf %168, %185 : vector<24x23xf32>
    %187 = arith.addf %184, %186 : vector<24x23xf32>
    %188 = vector.broadcast %9 : f32 to vector<24x23xf32>
    %189 = arith.addf %187, %188 : vector<24x23xf32>
    %190 = arith.negf %189 : vector<24x23xf32>
    %191 = math.exp %190 : vector<24x23xf32>
    %cst_23 = arith.constant 1.000000e+00 : f32
    %192 = vector.broadcast %cst_23 : f32 to vector<24x23xf32>
    %193 = arith.addf %192, %191 : vector<24x23xf32>
    %194 = arith.divf %192, %193 : vector<24x23xf32>
    %195 = vector.broadcast %2 : f32 to vector<24x23xf32>
    %196 = arith.mulf %170, %195 : vector<24x23xf32>
    %197 = vector.broadcast %6 : f32 to vector<24x23xf32>
    %198 = arith.mulf %168, %197 : vector<24x23xf32>
    %199 = arith.addf %196, %198 : vector<24x23xf32>
    %200 = vector.broadcast %10 : f32 to vector<24x23xf32>
    %201 = arith.addf %199, %200 : vector<24x23xf32>
    %202 = math.tanh %201 : vector<24x23xf32>
    %203 = vector.broadcast %3 : f32 to vector<24x23xf32>
    %204 = arith.mulf %170, %203 : vector<24x23xf32>
    %205 = vector.broadcast %7 : f32 to vector<24x23xf32>
    %206 = arith.mulf %168, %205 : vector<24x23xf32>
    %207 = arith.addf %204, %206 : vector<24x23xf32>
    %208 = vector.broadcast %11 : f32 to vector<24x23xf32>
    %209 = arith.addf %207, %208 : vector<24x23xf32>
    %210 = arith.negf %209 : vector<24x23xf32>
    %211 = math.exp %210 : vector<24x23xf32>
    %cst_24 = arith.constant 1.000000e+00 : f32
    %212 = vector.broadcast %cst_24 : f32 to vector<24x23xf32>
    %213 = arith.addf %212, %211 : vector<24x23xf32>
    %214 = arith.divf %212, %213 : vector<24x23xf32>
    %215 = arith.mulf %194, %166 : vector<24x23xf32>
    %216 = arith.mulf %182, %202 : vector<24x23xf32>
    %217 = arith.addf %215, %216 : vector<24x23xf32>
    %218 = math.tanh %217 : vector<24x23xf32>
    %219 = arith.mulf %214, %218 : vector<24x23xf32>
    %c4_25 = arith.constant 4 : index
    %c0_26 = arith.constant 0 : index
    %c0_27 = arith.constant 0 : index
    %220 = vector.load %arg7[%c4_25, %c0_26, %c0_27] : memref<12x24x23xf32, #tpu.memory_space<vmem>>, vector<1x24x23xf32>
    %221 = vector.shape_cast %220 : vector<1x24x23xf32> to vector<24x23xf32>
    %222 = vector.broadcast %0 : f32 to vector<24x23xf32>
    %223 = arith.mulf %221, %222 : vector<24x23xf32>
    %224 = vector.broadcast %4 : f32 to vector<24x23xf32>
    %225 = arith.mulf %219, %224 : vector<24x23xf32>
    %226 = arith.addf %223, %225 : vector<24x23xf32>
    %227 = vector.broadcast %8 : f32 to vector<24x23xf32>
    %228 = arith.addf %226, %227 : vector<24x23xf32>
    %229 = arith.negf %228 : vector<24x23xf32>
    %230 = math.exp %229 : vector<24x23xf32>
    %cst_28 = arith.constant 1.000000e+00 : f32
    %231 = vector.broadcast %cst_28 : f32 to vector<24x23xf32>
    %232 = arith.addf %231, %230 : vector<24x23xf32>
    %233 = arith.divf %231, %232 : vector<24x23xf32>
    %234 = vector.broadcast %1 : f32 to vector<24x23xf32>
    %235 = arith.mulf %221, %234 : vector<24x23xf32>
    %236 = vector.broadcast %5 : f32 to vector<24x23xf32>
    %237 = arith.mulf %219, %236 : vector<24x23xf32>
    %238 = arith.addf %235, %237 : vector<24x23xf32>
    %239 = vector.broadcast %9 : f32 to vector<24x23xf32>
    %240 = arith.addf %238, %239 : vector<24x23xf32>
    %241 = arith.negf %240 : vector<24x23xf32>
    %242 = math.exp %241 : vector<24x23xf32>
    %cst_29 = arith.constant 1.000000e+00 : f32
    %243 = vector.broadcast %cst_29 : f32 to vector<24x23xf32>
    %244 = arith.addf %243, %242 : vector<24x23xf32>
    %245 = arith.divf %243, %244 : vector<24x23xf32>
    %246 = vector.broadcast %2 : f32 to vector<24x23xf32>
    %247 = arith.mulf %221, %246 : vector<24x23xf32>
    %248 = vector.broadcast %6 : f32 to vector<24x23xf32>
    %249 = arith.mulf %219, %248 : vector<24x23xf32>
    %250 = arith.addf %247, %249 : vector<24x23xf32>
    %251 = vector.broadcast %10 : f32 to vector<24x23xf32>
    %252 = arith.addf %250, %251 : vector<24x23xf32>
    %253 = math.tanh %252 : vector<24x23xf32>
    %254 = vector.broadcast %3 : f32 to vector<24x23xf32>
    %255 = arith.mulf %221, %254 : vector<24x23xf32>
    %256 = vector.broadcast %7 : f32 to vector<24x23xf32>
    %257 = arith.mulf %219, %256 : vector<24x23xf32>
    %258 = arith.addf %255, %257 : vector<24x23xf32>
    %259 = vector.broadcast %11 : f32 to vector<24x23xf32>
    %260 = arith.addf %258, %259 : vector<24x23xf32>
    %261 = arith.negf %260 : vector<24x23xf32>
    %262 = math.exp %261 : vector<24x23xf32>
    %cst_30 = arith.constant 1.000000e+00 : f32
    %263 = vector.broadcast %cst_30 : f32 to vector<24x23xf32>
    %264 = arith.addf %263, %262 : vector<24x23xf32>
    %265 = arith.divf %263, %264 : vector<24x23xf32>
    %266 = arith.mulf %245, %217 : vector<24x23xf32>
    %267 = arith.mulf %233, %253 : vector<24x23xf32>
    %268 = arith.addf %266, %267 : vector<24x23xf32>
    %269 = math.tanh %268 : vector<24x23xf32>
    %270 = arith.mulf %265, %269 : vector<24x23xf32>
    %c5_31 = arith.constant 5 : index
    %c0_32 = arith.constant 0 : index
    %c0_33 = arith.constant 0 : index
    %271 = vector.load %arg7[%c5_31, %c0_32, %c0_33] : memref<12x24x23xf32, #tpu.memory_space<vmem>>, vector<1x24x23xf32>
    %272 = vector.shape_cast %271 : vector<1x24x23xf32> to vector<24x23xf32>
    %273 = vector.broadcast %0 : f32 to vector<24x23xf32>
    %274 = arith.mulf %272, %273 : vector<24x23xf32>
    %275 = vector.broadcast %4 : f32 to vector<24x23xf32>
    %276 = arith.mulf %270, %275 : vector<24x23xf32>
    %277 = arith.addf %274, %276 : vector<24x23xf32>
    %278 = vector.broadcast %8 : f32 to vector<24x23xf32>
    %279 = arith.addf %277, %278 : vector<24x23xf32>
    %280 = arith.negf %279 : vector<24x23xf32>
    %281 = math.exp %280 : vector<24x23xf32>
    %cst_34 = arith.constant 1.000000e+00 : f32
    %282 = vector.broadcast %cst_34 : f32 to vector<24x23xf32>
    %283 = arith.addf %282, %281 : vector<24x23xf32>
    %284 = arith.divf %282, %283 : vector<24x23xf32>
    %285 = vector.broadcast %1 : f32 to vector<24x23xf32>
    %286 = arith.mulf %272, %285 : vector<24x23xf32>
    %287 = vector.broadcast %5 : f32 to vector<24x23xf32>
    %288 = arith.mulf %270, %287 : vector<24x23xf32>
    %289 = arith.addf %286, %288 : vector<24x23xf32>
    %290 = vector.broadcast %9 : f32 to vector<24x23xf32>
    %291 = arith.addf %289, %290 : vector<24x23xf32>
    %292 = arith.negf %291 : vector<24x23xf32>
    %293 = math.exp %292 : vector<24x23xf32>
    %cst_35 = arith.constant 1.000000e+00 : f32
    %294 = vector.broadcast %cst_35 : f32 to vector<24x23xf32>
    %295 = arith.addf %294, %293 : vector<24x23xf32>
    %296 = arith.divf %294, %295 : vector<24x23xf32>
    %297 = vector.broadcast %2 : f32 to vector<24x23xf32>
    %298 = arith.mulf %272, %297 : vector<24x23xf32>
    %299 = vector.broadcast %6 : f32 to vector<24x23xf32>
    %300 = arith.mulf %270, %299 : vector<24x23xf32>
    %301 = arith.addf %298, %300 : vector<24x23xf32>
    %302 = vector.broadcast %10 : f32 to vector<24x23xf32>
    %303 = arith.addf %301, %302 : vector<24x23xf32>
    %304 = math.tanh %303 : vector<24x23xf32>
    %305 = vector.broadcast %3 : f32 to vector<24x23xf32>
    %306 = arith.mulf %272, %305 : vector<24x23xf32>
    %307 = vector.broadcast %7 : f32 to vector<24x23xf32>
    %308 = arith.mulf %270, %307 : vector<24x23xf32>
    %309 = arith.addf %306, %308 : vector<24x23xf32>
    %310 = vector.broadcast %11 : f32 to vector<24x23xf32>
    %311 = arith.addf %309, %310 : vector<24x23xf32>
    %312 = arith.negf %311 : vector<24x23xf32>
    %313 = math.exp %312 : vector<24x23xf32>
    %cst_36 = arith.constant 1.000000e+00 : f32
    %314 = vector.broadcast %cst_36 : f32 to vector<24x23xf32>
    %315 = arith.addf %314, %313 : vector<24x23xf32>
    %316 = arith.divf %314, %315 : vector<24x23xf32>
    %317 = arith.mulf %296, %268 : vector<24x23xf32>
    %318 = arith.mulf %284, %304 : vector<24x23xf32>
    %319 = arith.addf %317, %318 : vector<24x23xf32>
    %320 = math.tanh %319 : vector<24x23xf32>
    %321 = arith.mulf %316, %320 : vector<24x23xf32>
    %c6_37 = arith.constant 6 : index
    %c0_38 = arith.constant 0 : index
    %c0_39 = arith.constant 0 : index
    %322 = vector.load %arg7[%c6_37, %c0_38, %c0_39] : memref<12x24x23xf32, #tpu.memory_space<vmem>>, vector<1x24x23xf32>
    %323 = vector.shape_cast %322 : vector<1x24x23xf32> to vector<24x23xf32>
    %324 = vector.broadcast %0 : f32 to vector<24x23xf32>
    %325 = arith.mulf %323, %324 : vector<24x23xf32>
    %326 = vector.broadcast %4 : f32 to vector<24x23xf32>
    %327 = arith.mulf %321, %326 : vector<24x23xf32>
    %328 = arith.addf %325, %327 : vector<24x23xf32>
    %329 = vector.broadcast %8 : f32 to vector<24x23xf32>
    %330 = arith.addf %328, %329 : vector<24x23xf32>
    %331 = arith.negf %330 : vector<24x23xf32>
    %332 = math.exp %331 : vector<24x23xf32>
    %cst_40 = arith.constant 1.000000e+00 : f32
    %333 = vector.broadcast %cst_40 : f32 to vector<24x23xf32>
    %334 = arith.addf %333, %332 : vector<24x23xf32>
    %335 = arith.divf %333, %334 : vector<24x23xf32>
    %336 = vector.broadcast %1 : f32 to vector<24x23xf32>
    %337 = arith.mulf %323, %336 : vector<24x23xf32>
    %338 = vector.broadcast %5 : f32 to vector<24x23xf32>
    %339 = arith.mulf %321, %338 : vector<24x23xf32>
    %340 = arith.addf %337, %339 : vector<24x23xf32>
    %341 = vector.broadcast %9 : f32 to vector<24x23xf32>
    %342 = arith.addf %340, %341 : vector<24x23xf32>
    %343 = arith.negf %342 : vector<24x23xf32>
    %344 = math.exp %343 : vector<24x23xf32>
    %cst_41 = arith.constant 1.000000e+00 : f32
    %345 = vector.broadcast %cst_41 : f32 to vector<24x23xf32>
    %346 = arith.addf %345, %344 : vector<24x23xf32>
    %347 = arith.divf %345, %346 : vector<24x23xf32>
    %348 = vector.broadcast %2 : f32 to vector<24x23xf32>
    %349 = arith.mulf %323, %348 : vector<24x23xf32>
    %350 = vector.broadcast %6 : f32 to vector<24x23xf32>
    %351 = arith.mulf %321, %350 : vector<24x23xf32>
    %352 = arith.addf %349, %351 : vector<24x23xf32>
    %353 = vector.broadcast %10 : f32 to vector<24x23xf32>
    %354 = arith.addf %352, %353 : vector<24x23xf32>
    %355 = math.tanh %354 : vector<24x23xf32>
    %356 = vector.broadcast %3 : f32 to vector<24x23xf32>
    %357 = arith.mulf %323, %356 : vector<24x23xf32>
    %358 = vector.broadcast %7 : f32 to vector<24x23xf32>
    %359 = arith.mulf %321, %358 : vector<24x23xf32>
    %360 = arith.addf %357, %359 : vector<24x23xf32>
    %361 = vector.broadcast %11 : f32 to vector<24x23xf32>
    %362 = arith.addf %360, %361 : vector<24x23xf32>
    %363 = arith.negf %362 : vector<24x23xf32>
    %364 = math.exp %363 : vector<24x23xf32>
    %cst_42 = arith.constant 1.000000e+00 : f32
    %365 = vector.broadcast %cst_42 : f32 to vector<24x23xf32>
    %366 = arith.addf %365, %364 : vector<24x23xf32>
    %367 = arith.divf %365, %366 : vector<24x23xf32>
    %368 = arith.mulf %347, %319 : vector<24x23xf32>
    %369 = arith.mulf %335, %355 : vector<24x23xf32>
    %370 = arith.addf %368, %369 : vector<24x23xf32>
    %371 = math.tanh %370 : vector<24x23xf32>
    %372 = arith.mulf %367, %371 : vector<24x23xf32>
    %c7_43 = arith.constant 7 : index
    %c0_44 = arith.constant 0 : index
    %c0_45 = arith.constant 0 : index
    %373 = vector.load %arg7[%c7_43, %c0_44, %c0_45] : memref<12x24x23xf32, #tpu.memory_space<vmem>>, vector<1x24x23xf32>
    %374 = vector.shape_cast %373 : vector<1x24x23xf32> to vector<24x23xf32>
    %375 = vector.broadcast %0 : f32 to vector<24x23xf32>
    %376 = arith.mulf %374, %375 : vector<24x23xf32>
    %377 = vector.broadcast %4 : f32 to vector<24x23xf32>
    %378 = arith.mulf %372, %377 : vector<24x23xf32>
    %379 = arith.addf %376, %378 : vector<24x23xf32>
    %380 = vector.broadcast %8 : f32 to vector<24x23xf32>
    %381 = arith.addf %379, %380 : vector<24x23xf32>
    %382 = arith.negf %381 : vector<24x23xf32>
    %383 = math.exp %382 : vector<24x23xf32>
    %cst_46 = arith.constant 1.000000e+00 : f32
    %384 = vector.broadcast %cst_46 : f32 to vector<24x23xf32>
    %385 = arith.addf %384, %383 : vector<24x23xf32>
    %386 = arith.divf %384, %385 : vector<24x23xf32>
    %387 = vector.broadcast %1 : f32 to vector<24x23xf32>
    %388 = arith.mulf %374, %387 : vector<24x23xf32>
    %389 = vector.broadcast %5 : f32 to vector<24x23xf32>
    %390 = arith.mulf %372, %389 : vector<24x23xf32>
    %391 = arith.addf %388, %390 : vector<24x23xf32>
    %392 = vector.broadcast %9 : f32 to vector<24x23xf32>
    %393 = arith.addf %391, %392 : vector<24x23xf32>
    %394 = arith.negf %393 : vector<24x23xf32>
    %395 = math.exp %394 : vector<24x23xf32>
    %cst_47 = arith.constant 1.000000e+00 : f32
    %396 = vector.broadcast %cst_47 : f32 to vector<24x23xf32>
    %397 = arith.addf %396, %395 : vector<24x23xf32>
    %398 = arith.divf %396, %397 : vector<24x23xf32>
    %399 = vector.broadcast %2 : f32 to vector<24x23xf32>
    %400 = arith.mulf %374, %399 : vector<24x23xf32>
    %401 = vector.broadcast %6 : f32 to vector<24x23xf32>
    %402 = arith.mulf %372, %401 : vector<24x23xf32>
    %403 = arith.addf %400, %402 : vector<24x23xf32>
    %404 = vector.broadcast %10 : f32 to vector<24x23xf32>
    %405 = arith.addf %403, %404 : vector<24x23xf32>
    %406 = math.tanh %405 : vector<24x23xf32>
    %407 = vector.broadcast %3 : f32 to vector<24x23xf32>
    %408 = arith.mulf %374, %407 : vector<24x23xf32>
    %409 = vector.broadcast %7 : f32 to vector<24x23xf32>
    %410 = arith.mulf %372, %409 : vector<24x23xf32>
    %411 = arith.addf %408, %410 : vector<24x23xf32>
    %412 = vector.broadcast %11 : f32 to vector<24x23xf32>
    %413 = arith.addf %411, %412 : vector<24x23xf32>
    %414 = arith.negf %413 : vector<24x23xf32>
    %415 = math.exp %414 : vector<24x23xf32>
    %cst_48 = arith.constant 1.000000e+00 : f32
    %416 = vector.broadcast %cst_48 : f32 to vector<24x23xf32>
    %417 = arith.addf %416, %415 : vector<24x23xf32>
    %418 = arith.divf %416, %417 : vector<24x23xf32>
    %419 = arith.mulf %398, %370 : vector<24x23xf32>
    %420 = arith.mulf %386, %406 : vector<24x23xf32>
    %421 = arith.addf %419, %420 : vector<24x23xf32>
    %422 = math.tanh %421 : vector<24x23xf32>
    %423 = arith.mulf %418, %422 : vector<24x23xf32>
    %c8_49 = arith.constant 8 : index
    %c0_50 = arith.constant 0 : index
    %c0_51 = arith.constant 0 : index
    %424 = vector.load %arg7[%c8_49, %c0_50, %c0_51] : memref<12x24x23xf32, #tpu.memory_space<vmem>>, vector<1x24x23xf32>
    %425 = vector.shape_cast %424 : vector<1x24x23xf32> to vector<24x23xf32>
    %426 = vector.broadcast %0 : f32 to vector<24x23xf32>
    %427 = arith.mulf %425, %426 : vector<24x23xf32>
    %428 = vector.broadcast %4 : f32 to vector<24x23xf32>
    %429 = arith.mulf %423, %428 : vector<24x23xf32>
    %430 = arith.addf %427, %429 : vector<24x23xf32>
    %431 = vector.broadcast %8 : f32 to vector<24x23xf32>
    %432 = arith.addf %430, %431 : vector<24x23xf32>
    %433 = arith.negf %432 : vector<24x23xf32>
    %434 = math.exp %433 : vector<24x23xf32>
    %cst_52 = arith.constant 1.000000e+00 : f32
    %435 = vector.broadcast %cst_52 : f32 to vector<24x23xf32>
    %436 = arith.addf %435, %434 : vector<24x23xf32>
    %437 = arith.divf %435, %436 : vector<24x23xf32>
    %438 = vector.broadcast %1 : f32 to vector<24x23xf32>
    %439 = arith.mulf %425, %438 : vector<24x23xf32>
    %440 = vector.broadcast %5 : f32 to vector<24x23xf32>
    %441 = arith.mulf %423, %440 : vector<24x23xf32>
    %442 = arith.addf %439, %441 : vector<24x23xf32>
    %443 = vector.broadcast %9 : f32 to vector<24x23xf32>
    %444 = arith.addf %442, %443 : vector<24x23xf32>
    %445 = arith.negf %444 : vector<24x23xf32>
    %446 = math.exp %445 : vector<24x23xf32>
    %cst_53 = arith.constant 1.000000e+00 : f32
    %447 = vector.broadcast %cst_53 : f32 to vector<24x23xf32>
    %448 = arith.addf %447, %446 : vector<24x23xf32>
    %449 = arith.divf %447, %448 : vector<24x23xf32>
    %450 = vector.broadcast %2 : f32 to vector<24x23xf32>
    %451 = arith.mulf %425, %450 : vector<24x23xf32>
    %452 = vector.broadcast %6 : f32 to vector<24x23xf32>
    %453 = arith.mulf %423, %452 : vector<24x23xf32>
    %454 = arith.addf %451, %453 : vector<24x23xf32>
    %455 = vector.broadcast %10 : f32 to vector<24x23xf32>
    %456 = arith.addf %454, %455 : vector<24x23xf32>
    %457 = math.tanh %456 : vector<24x23xf32>
    %458 = vector.broadcast %3 : f32 to vector<24x23xf32>
    %459 = arith.mulf %425, %458 : vector<24x23xf32>
    %460 = vector.broadcast %7 : f32 to vector<24x23xf32>
    %461 = arith.mulf %423, %460 : vector<24x23xf32>
    %462 = arith.addf %459, %461 : vector<24x23xf32>
    %463 = vector.broadcast %11 : f32 to vector<24x23xf32>
    %464 = arith.addf %462, %463 : vector<24x23xf32>
    %465 = arith.negf %464 : vector<24x23xf32>
    %466 = math.exp %465 : vector<24x23xf32>
    %cst_54 = arith.constant 1.000000e+00 : f32
    %467 = vector.broadcast %cst_54 : f32 to vector<24x23xf32>
    %468 = arith.addf %467, %466 : vector<24x23xf32>
    %469 = arith.divf %467, %468 : vector<24x23xf32>
    %470 = arith.mulf %449, %421 : vector<24x23xf32>
    %471 = arith.mulf %437, %457 : vector<24x23xf32>
    %472 = arith.addf %470, %471 : vector<24x23xf32>
    %473 = math.tanh %472 : vector<24x23xf32>
    %474 = arith.mulf %469, %473 : vector<24x23xf32>
    %c9_55 = arith.constant 9 : index
    %c0_56 = arith.constant 0 : index
    %c0_57 = arith.constant 0 : index
    %475 = vector.load %arg7[%c9_55, %c0_56, %c0_57] : memref<12x24x23xf32, #tpu.memory_space<vmem>>, vector<1x24x23xf32>
    %476 = vector.shape_cast %475 : vector<1x24x23xf32> to vector<24x23xf32>
    %477 = vector.broadcast %0 : f32 to vector<24x23xf32>
    %478 = arith.mulf %476, %477 : vector<24x23xf32>
    %479 = vector.broadcast %4 : f32 to vector<24x23xf32>
    %480 = arith.mulf %474, %479 : vector<24x23xf32>
    %481 = arith.addf %478, %480 : vector<24x23xf32>
    %482 = vector.broadcast %8 : f32 to vector<24x23xf32>
    %483 = arith.addf %481, %482 : vector<24x23xf32>
    %484 = arith.negf %483 : vector<24x23xf32>
    %485 = math.exp %484 : vector<24x23xf32>
    %cst_58 = arith.constant 1.000000e+00 : f32
    %486 = vector.broadcast %cst_58 : f32 to vector<24x23xf32>
    %487 = arith.addf %486, %485 : vector<24x23xf32>
    %488 = arith.divf %486, %487 : vector<24x23xf32>
    %489 = vector.broadcast %1 : f32 to vector<24x23xf32>
    %490 = arith.mulf %476, %489 : vector<24x23xf32>
    %491 = vector.broadcast %5 : f32 to vector<24x23xf32>
    %492 = arith.mulf %474, %491 : vector<24x23xf32>
    %493 = arith.addf %490, %492 : vector<24x23xf32>
    %494 = vector.broadcast %9 : f32 to vector<24x23xf32>
    %495 = arith.addf %493, %494 : vector<24x23xf32>
    %496 = arith.negf %495 : vector<24x23xf32>
    %497 = math.exp %496 : vector<24x23xf32>
    %cst_59 = arith.constant 1.000000e+00 : f32
    %498 = vector.broadcast %cst_59 : f32 to vector<24x23xf32>
    %499 = arith.addf %498, %497 : vector<24x23xf32>
    %500 = arith.divf %498, %499 : vector<24x23xf32>
    %501 = vector.broadcast %2 : f32 to vector<24x23xf32>
    %502 = arith.mulf %476, %501 : vector<24x23xf32>
    %503 = vector.broadcast %6 : f32 to vector<24x23xf32>
    %504 = arith.mulf %474, %503 : vector<24x23xf32>
    %505 = arith.addf %502, %504 : vector<24x23xf32>
    %506 = vector.broadcast %10 : f32 to vector<24x23xf32>
    %507 = arith.addf %505, %506 : vector<24x23xf32>
    %508 = math.tanh %507 : vector<24x23xf32>
    %509 = vector.broadcast %3 : f32 to vector<24x23xf32>
    %510 = arith.mulf %476, %509 : vector<24x23xf32>
    %511 = vector.broadcast %7 : f32 to vector<24x23xf32>
    %512 = arith.mulf %474, %511 : vector<24x23xf32>
    %513 = arith.addf %510, %512 : vector<24x23xf32>
    %514 = vector.broadcast %11 : f32 to vector<24x23xf32>
    %515 = arith.addf %513, %514 : vector<24x23xf32>
    %516 = arith.negf %515 : vector<24x23xf32>
    %517 = math.exp %516 : vector<24x23xf32>
    %cst_60 = arith.constant 1.000000e+00 : f32
    %518 = vector.broadcast %cst_60 : f32 to vector<24x23xf32>
    %519 = arith.addf %518, %517 : vector<24x23xf32>
    %520 = arith.divf %518, %519 : vector<24x23xf32>
    %521 = arith.mulf %500, %472 : vector<24x23xf32>
    %522 = arith.mulf %488, %508 : vector<24x23xf32>
    %523 = arith.addf %521, %522 : vector<24x23xf32>
    %524 = math.tanh %523 : vector<24x23xf32>
    %525 = arith.mulf %520, %524 : vector<24x23xf32>
    %c10_61 = arith.constant 10 : index
    %c0_62 = arith.constant 0 : index
    %c0_63 = arith.constant 0 : index
    %526 = vector.load %arg7[%c10_61, %c0_62, %c0_63] : memref<12x24x23xf32, #tpu.memory_space<vmem>>, vector<1x24x23xf32>
    %527 = vector.shape_cast %526 : vector<1x24x23xf32> to vector<24x23xf32>
    %528 = vector.broadcast %0 : f32 to vector<24x23xf32>
    %529 = arith.mulf %527, %528 : vector<24x23xf32>
    %530 = vector.broadcast %4 : f32 to vector<24x23xf32>
    %531 = arith.mulf %525, %530 : vector<24x23xf32>
    %532 = arith.addf %529, %531 : vector<24x23xf32>
    %533 = vector.broadcast %8 : f32 to vector<24x23xf32>
    %534 = arith.addf %532, %533 : vector<24x23xf32>
    %535 = arith.negf %534 : vector<24x23xf32>
    %536 = math.exp %535 : vector<24x23xf32>
    %cst_64 = arith.constant 1.000000e+00 : f32
    %537 = vector.broadcast %cst_64 : f32 to vector<24x23xf32>
    %538 = arith.addf %537, %536 : vector<24x23xf32>
    %539 = arith.divf %537, %538 : vector<24x23xf32>
    %540 = vector.broadcast %1 : f32 to vector<24x23xf32>
    %541 = arith.mulf %527, %540 : vector<24x23xf32>
    %542 = vector.broadcast %5 : f32 to vector<24x23xf32>
    %543 = arith.mulf %525, %542 : vector<24x23xf32>
    %544 = arith.addf %541, %543 : vector<24x23xf32>
    %545 = vector.broadcast %9 : f32 to vector<24x23xf32>
    %546 = arith.addf %544, %545 : vector<24x23xf32>
    %547 = arith.negf %546 : vector<24x23xf32>
    %548 = math.exp %547 : vector<24x23xf32>
    %cst_65 = arith.constant 1.000000e+00 : f32
    %549 = vector.broadcast %cst_65 : f32 to vector<24x23xf32>
    %550 = arith.addf %549, %548 : vector<24x23xf32>
    %551 = arith.divf %549, %550 : vector<24x23xf32>
    %552 = vector.broadcast %2 : f32 to vector<24x23xf32>
    %553 = arith.mulf %527, %552 : vector<24x23xf32>
    %554 = vector.broadcast %6 : f32 to vector<24x23xf32>
    %555 = arith.mulf %525, %554 : vector<24x23xf32>
    %556 = arith.addf %553, %555 : vector<24x23xf32>
    %557 = vector.broadcast %10 : f32 to vector<24x23xf32>
    %558 = arith.addf %556, %557 : vector<24x23xf32>
    %559 = math.tanh %558 : vector<24x23xf32>
    %560 = vector.broadcast %3 : f32 to vector<24x23xf32>
    %561 = arith.mulf %527, %560 : vector<24x23xf32>
    %562 = vector.broadcast %7 : f32 to vector<24x23xf32>
    %563 = arith.mulf %525, %562 : vector<24x23xf32>
    %564 = arith.addf %561, %563 : vector<24x23xf32>
    %565 = vector.broadcast %11 : f32 to vector<24x23xf32>
    %566 = arith.addf %564, %565 : vector<24x23xf32>
    %567 = arith.negf %566 : vector<24x23xf32>
    %568 = math.exp %567 : vector<24x23xf32>
    %cst_66 = arith.constant 1.000000e+00 : f32
    %569 = vector.broadcast %cst_66 : f32 to vector<24x23xf32>
    %570 = arith.addf %569, %568 : vector<24x23xf32>
    %571 = arith.divf %569, %570 : vector<24x23xf32>
    %572 = arith.mulf %551, %523 : vector<24x23xf32>
    %573 = arith.mulf %539, %559 : vector<24x23xf32>
    %574 = arith.addf %572, %573 : vector<24x23xf32>
    %575 = math.tanh %574 : vector<24x23xf32>
    %576 = arith.mulf %571, %575 : vector<24x23xf32>
    %c11_67 = arith.constant 11 : index
    %c0_68 = arith.constant 0 : index
    %c0_69 = arith.constant 0 : index
    %577 = vector.load %arg7[%c11_67, %c0_68, %c0_69] : memref<12x24x23xf32, #tpu.memory_space<vmem>>, vector<1x24x23xf32>
    %578 = vector.shape_cast %577 : vector<1x24x23xf32> to vector<24x23xf32>
    %579 = vector.broadcast %0 : f32 to vector<24x23xf32>
    %580 = arith.mulf %578, %579 : vector<24x23xf32>
    %581 = vector.broadcast %4 : f32 to vector<24x23xf32>
    %582 = arith.mulf %576, %581 : vector<24x23xf32>
    %583 = arith.addf %580, %582 : vector<24x23xf32>
    %584 = vector.broadcast %8 : f32 to vector<24x23xf32>
    %585 = arith.addf %583, %584 : vector<24x23xf32>
    %586 = arith.negf %585 : vector<24x23xf32>
    %587 = math.exp %586 : vector<24x23xf32>
    %cst_70 = arith.constant 1.000000e+00 : f32
    %588 = vector.broadcast %cst_70 : f32 to vector<24x23xf32>
    %589 = arith.addf %588, %587 : vector<24x23xf32>
    %590 = arith.divf %588, %589 : vector<24x23xf32>
    %591 = vector.broadcast %1 : f32 to vector<24x23xf32>
    %592 = arith.mulf %578, %591 : vector<24x23xf32>
    %593 = vector.broadcast %5 : f32 to vector<24x23xf32>
    %594 = arith.mulf %576, %593 : vector<24x23xf32>
    %595 = arith.addf %592, %594 : vector<24x23xf32>
    %596 = vector.broadcast %9 : f32 to vector<24x23xf32>
    %597 = arith.addf %595, %596 : vector<24x23xf32>
    %598 = arith.negf %597 : vector<24x23xf32>
    %599 = math.exp %598 : vector<24x23xf32>
    %cst_71 = arith.constant 1.000000e+00 : f32
    %600 = vector.broadcast %cst_71 : f32 to vector<24x23xf32>
    %601 = arith.addf %600, %599 : vector<24x23xf32>
    %602 = arith.divf %600, %601 : vector<24x23xf32>
    %603 = vector.broadcast %2 : f32 to vector<24x23xf32>
    %604 = arith.mulf %578, %603 : vector<24x23xf32>
    %605 = vector.broadcast %6 : f32 to vector<24x23xf32>
    %606 = arith.mulf %576, %605 : vector<24x23xf32>
    %607 = arith.addf %604, %606 : vector<24x23xf32>
    %608 = vector.broadcast %10 : f32 to vector<24x23xf32>
    %609 = arith.addf %607, %608 : vector<24x23xf32>
    %610 = math.tanh %609 : vector<24x23xf32>
    %611 = vector.broadcast %3 : f32 to vector<24x23xf32>
    %612 = arith.mulf %578, %611 : vector<24x23xf32>
    %613 = vector.broadcast %7 : f32 to vector<24x23xf32>
    %614 = arith.mulf %576, %613 : vector<24x23xf32>
    %615 = arith.addf %612, %614 : vector<24x23xf32>
    %616 = vector.broadcast %11 : f32 to vector<24x23xf32>
    %617 = arith.addf %615, %616 : vector<24x23xf32>
    %618 = arith.negf %617 : vector<24x23xf32>
    %619 = math.exp %618 : vector<24x23xf32>
    %cst_72 = arith.constant 1.000000e+00 : f32
    %620 = vector.broadcast %cst_72 : f32 to vector<24x23xf32>
    %621 = arith.addf %620, %619 : vector<24x23xf32>
    %622 = arith.divf %620, %621 : vector<24x23xf32>
    %623 = arith.mulf %602, %574 : vector<24x23xf32>
    %624 = arith.mulf %590, %610 : vector<24x23xf32>
    %625 = arith.addf %623, %624 : vector<24x23xf32>
    %626 = math.tanh %625 : vector<24x23xf32>
    %627 = arith.mulf %622, %626 : vector<24x23xf32>
    %628 = vector.broadcast %12 : f32 to vector<24x23xf32>
    %629 = arith.mulf %628, %627 : vector<24x23xf32>
    %c0_73 = arith.constant 0 : index
    %c0_74 = arith.constant 0 : index
    %630 = vector.load %arg8[%c0_73, %c0_74] : memref<24x23xf32, #tpu.memory_space<vmem>>, vector<24x23xf32>
    tpu.vector_store %arg8[%c0_73, %c0_74], %629 {strides = array<i32>} : memref<24x23xf32, #tpu.memory_space<vmem>>, vector<24x23xf32>,
    %c0_75 = arith.constant 0 : index
    %c0_76 = arith.constant 0 : index
    %631 = vector.load %arg2[%c0_75, %c0_76] : memref<24x24xf32, #tpu.memory_space<vmem>>, vector<24x24xf32>
    %632 = tpu.iota {dimensions = array<i32: 0>} : vector<24x1xi32>
    %c23_i32 = arith.constant 23 : i32
    %633 = vector.broadcast %c23_i32 : i32 to vector<24x1xi32>
    %634 = arith.cmpi slt, %632, %633 : vector<24x1xi32>
    %635 = arith.extui %634 : vector<24x1xi1> to vector<24x1xi32>
    %636 = arith.sitofp %635 : vector<24x1xi32> to vector<24x1xf32>
    %c11_77 = arith.constant 11 : index
    %c0_78 = arith.constant 0 : index
    %c0_79 = arith.constant 0 : index
    %637 = vector.load %arg7[%c11_77, %c0_78, %c0_79] : memref<12x24x23xf32, #tpu.memory_space<vmem>>, vector<1x24x23xf32>
    %638 = vector.shape_cast %637 : vector<1x24x23xf32> to vector<24x23xf32>
    %c0_80 = arith.constant 0 : index
    %c0_81 = arith.constant 0 : index
    %639 = vector.load %arg3[%c0_80, %c0_81] : memref<23x23xf32, #tpu.memory_space<vmem>>, vector<23x23xf32>
    %cst_82 = arith.constant dense<0.000000e+00> : vector<24x23xf32>
    %640 = tpu.matmul %638, %639, %cst_82 {dimension_numbers = #tpu.dot_dimension_numbers<[1], [0], [0], [1], [0, 0, 1, 1], [], []>} : vector<24x23xf32>, vector<23x23xf32>, vector<24x23xf32> -> vector<24x23xf32>
    %c0_83 = arith.constant 0 : index
    %c0_84 = arith.constant 0 : index
    %641 = vector.load %arg4[%c0_83, %c0_84] : memref<23x2xf32, #tpu.memory_space<vmem>>, vector<23x2xf32>
    %cst_85 = arith.constant dense<0.000000e+00> : vector<24x2xf32>
    %642 = tpu.matmul %640, %641, %cst_85 {dimension_numbers = #tpu.dot_dimension_numbers<[1], [0], [0], [1], [0, 0, 1, 1], [], []>} : vector<24x23xf32>, vector<23x2xf32>, vector<24x2xf32> -> vector<24x2xf32>
    %643 = vector.extract_strided_slice %642 {offsets = [0, 0], sizes = [24, 1], strides = [1, 1]} : vector<24x2xf32> to vector<24x1xf32>
    %644 = vector.extract_strided_slice %642 {offsets = [0, 1], sizes = [24, 1], strides = [1, 1]} : vector<24x2xf32> to vector<24x1xf32>
    %645 = tpu.transpose %644, [1, 0] : vector<24x1xf32> -> vector<1x24xf32>
    %646 = vector.broadcast %643 : vector<24x1xf32> to vector<24x24xf32>
    %647 = vector.broadcast %645 : vector<1x24xf32> to vector<24x24xf32>
    %648 = arith.addf %646, %647 : vector<24x24xf32>
    %cst_86 = arith.constant 0.000000e+00 : f32
    %649 = vector.broadcast %cst_86 : f32 to vector<24x24xf32>
    %650 = arith.cmpf ogt, %648, %649 : vector<24x24xf32>
    %cst_87 = arith.constant 2.000000e-01 : f32
    %651 = vector.broadcast %cst_87 : f32 to vector<24x24xf32>
    %652 = arith.mulf %651, %648 : vector<24x24xf32>
    %653 = arith.select %650, %648, %652 : vector<24x24xi1>, vector<24x24xf32>
    %cst_88 = arith.constant 0.000000e+00 : f32
    %654 = vector.broadcast %cst_88 : f32 to vector<24x24xf32>
    %655 = arith.cmpf ogt, %631, %654 : vector<24x24xf32>
    %cst_89 = arith.constant -9.000000e+15 : f32
    %656 = vector.broadcast %cst_89 : f32 to vector<24x24xf32>
    %657 = arith.select %655, %653, %656 : vector<24x24xi1>, vector<24x24xf32>
    %cst_90 = arith.constant dense<0xFF800000> : vector<24xf32>
    %658 = vector.multi_reduction <maximumf>, %657, %cst_90 [1] : vector<24x24xf32> to vector<24xf32>
    %659 = vector.shape_cast %658 : vector<24xf32> to vector<24x1xf32>
    %660 = vector.broadcast %659 : vector<24x1xf32> to vector<24x24xf32>
    %661 = arith.subf %657, %660 : vector<24x24xf32>
    %662 = math.exp %661 : vector<24x24xf32>
    %cst_91 = arith.constant dense<0.000000e+00> : vector<24xf32>
    %663 = vector.multi_reduction <add>, %662, %cst_91 [1] : vector<24x24xf32> to vector<24xf32>
    %664 = vector.shape_cast %663 : vector<24xf32> to vector<24x1xf32>
    %665 = tpu.reciprocal %664 {approx = true} : vector<24x1xf32> -> vector<24x1xf32>
    %666 = vector.broadcast %665 : vector<24x1xf32> to vector<24x24xf32>
    %667 = arith.mulf %662, %666 : vector<24x24xf32>
    %cst_92 = arith.constant dense<0.000000e+00> : vector<24x23xf32>
    %668 = tpu.matmul %667, %640, %cst_92 {dimension_numbers = #tpu.dot_dimension_numbers<[1], [0], [0], [1], [0, 0, 1, 1], [], []>} : vector<24x24xf32>, vector<24x23xf32>, vector<24x23xf32> -> vector<24x23xf32>
    %cst_93 = arith.constant 0.000000e+00 : f32
    %669 = vector.broadcast %cst_93 : f32 to vector<24x23xf32>
    %670 = arith.cmpf ogt, %668, %669 : vector<24x23xf32>
    %cst_94 = arith.constant 0.000000e+00 : f32
    %671 = vector.broadcast %cst_94 : f32 to vector<24x23xf32>
    %672 = arith.minimumf %668, %671 : vector<24x23xf32>
    %673 = math.exp %672 : vector<24x23xf32>
    %cst_95 = arith.constant 1.000000e+00 : f32
    %674 = vector.broadcast %cst_95 : f32 to vector<24x23xf32>
    %675 = arith.subf %673, %674 : vector<24x23xf32>
    %676 = arith.select %670, %668, %675 : vector<24x23xi1>, vector<24x23xf32>
    %677 = vector.broadcast %636 : vector<24x1xf32> to vector<24x23xf32>
    %678 = arith.mulf %676, %677 : vector<24x23xf32>
    %c0_96 = arith.constant 0 : index
    %c0_97 = arith.constant 0 : index
    %679 = vector.load %arg9[%c0_96, %c0_97] : memref<24x23xf32, #tpu.memory_space<vmem>>, vector<24x23xf32>
    tpu.vector_store %arg9[%c0_96, %c0_97], %678 {strides = array<i32>} : memref<24x23xf32, #tpu.memory_space<vmem>>, vector<24x23xf32>,
    %c0_98 = arith.constant 0 : index
    %c0_99 = arith.constant 0 : index
    %680 = vector.load %arg9[%c0_98, %c0_99] : memref<24x23xf32, #tpu.memory_space<vmem>>, vector<24x23xf32>
    %c0_100 = arith.constant 0 : index
    %c0_101 = arith.constant 0 : index
    %681 = vector.load %arg5[%c0_100, %c0_101] : memref<23x23xf32, #tpu.memory_space<vmem>>, vector<23x23xf32>
    %cst_102 = arith.constant dense<0.000000e+00> : vector<24x23xf32>
    %682 = tpu.matmul %680, %681, %cst_102 {dimension_numbers = #tpu.dot_dimension_numbers<[1], [0], [0], [1], [0, 0, 1, 1], [], []>} : vector<24x23xf32>, vector<23x23xf32>, vector<24x23xf32> -> vector<24x23xf32>
    %c0_103 = arith.constant 0 : index
    %c0_104 = arith.constant 0 : index
    %683 = vector.load %arg6[%c0_103, %c0_104] : memref<23x2xf32, #tpu.memory_space<vmem>>, vector<23x2xf32>
    %cst_105 = arith.constant dense<0.000000e+00> : vector<24x2xf32>
    %684 = tpu.matmul %682, %683, %cst_105 {dimension_numbers = #tpu.dot_dimension_numbers<[1], [0], [0], [1], [0, 0, 1, 1], [], []>} : vector<24x23xf32>, vector<23x2xf32>, vector<24x2xf32> -> vector<24x2xf32>
    %685 = vector.extract_strided_slice %684 {offsets = [0, 0], sizes = [24, 1], strides = [1, 1]} : vector<24x2xf32> to vector<24x1xf32>
    %686 = vector.extract_strided_slice %684 {offsets = [0, 1], sizes = [24, 1], strides = [1, 1]} : vector<24x2xf32> to vector<24x1xf32>
    %687 = tpu.transpose %686, [1, 0] : vector<24x1xf32> -> vector<1x24xf32>
    %688 = vector.broadcast %685 : vector<24x1xf32> to vector<24x24xf32>
    %689 = vector.broadcast %687 : vector<1x24xf32> to vector<24x24xf32>
    %690 = arith.addf %688, %689 : vector<24x24xf32>
    %cst_106 = arith.constant 0.000000e+00 : f32
    %691 = vector.broadcast %cst_106 : f32 to vector<24x24xf32>
    %692 = arith.cmpf ogt, %690, %691 : vector<24x24xf32>
    %cst_107 = arith.constant 2.000000e-01 : f32
    %693 = vector.broadcast %cst_107 : f32 to vector<24x24xf32>
    %694 = arith.mulf %693, %690 : vector<24x24xf32>
    %695 = arith.select %692, %690, %694 : vector<24x24xi1>, vector<24x24xf32>
    %cst_108 = arith.constant 0.000000e+00 : f32
    %696 = vector.broadcast %cst_108 : f32 to vector<24x24xf32>
    %697 = arith.cmpf ogt, %631, %696 : vector<24x24xf32>
    %cst_109 = arith.constant -9.000000e+15 : f32
    %698 = vector.broadcast %cst_109 : f32 to vector<24x24xf32>
    %699 = arith.select %697, %695, %698 : vector<24x24xi1>, vector<24x24xf32>
    %cst_110 = arith.constant dense<0xFF800000> : vector<24xf32>
    %700 = vector.multi_reduction <maximumf>, %699, %cst_110 [1] : vector<24x24xf32> to vector<24xf32>
    %701 = vector.shape_cast %700 : vector<24xf32> to vector<24x1xf32>
    %702 = vector.broadcast %701 : vector<24x1xf32> to vector<24x24xf32>
    %703 = arith.subf %699, %702 : vector<24x24xf32>
    %704 = math.exp %703 : vector<24x24xf32>
    %cst_111 = arith.constant dense<0.000000e+00> : vector<24xf32>
    %705 = vector.multi_reduction <add>, %704, %cst_111 [1] : vector<24x24xf32> to vector<24xf32>
    %706 = vector.shape_cast %705 : vector<24xf32> to vector<24x1xf32>
    %707 = tpu.reciprocal %706 {approx = true} : vector<24x1xf32> -> vector<24x1xf32>
    %708 = vector.broadcast %707 : vector<24x1xf32> to vector<24x24xf32>
    %709 = arith.mulf %704, %708 : vector<24x24xf32>
    %cst_112 = arith.constant dense<0.000000e+00> : vector<24x23xf32>
    %710 = tpu.matmul %709, %682, %cst_112 {dimension_numbers = #tpu.dot_dimension_numbers<[1], [0], [0], [1], [0, 0, 1, 1], [], []>} : vector<24x24xf32>, vector<24x23xf32>, vector<24x23xf32> -> vector<24x23xf32>
    %c0_113 = arith.constant 0 : index
    %c0_114 = arith.constant 0 : index
    %711 = vector.load %arg8[%c0_113, %c0_114] : memref<24x23xf32, #tpu.memory_space<vmem>>, vector<24x23xf32>
    %712 = vector.broadcast %13 : f32 to vector<24x23xf32>
    %713 = arith.mulf %712, %710 : vector<24x23xf32>
    %714 = arith.addf %711, %713 : vector<24x23xf32>
    %c0_115 = arith.constant 0 : index
    %c0_116 = arith.constant 0 : index
    %715 = vector.load %arg8[%c0_115, %c0_116] : memref<24x23xf32, #tpu.memory_space<vmem>>, vector<24x23xf32>
    tpu.vector_store %arg8[%c0_115, %c0_116], %714 {strides = array<i32>} : memref<24x23xf32, #tpu.memory_space<vmem>>, vector<24x23xf32>,
    return
  }
  func.func @transform_0(%arg0: i32) -> i32 {
    %c0_i32 = arith.constant 0 : i32
    %c0_i32_0 = arith.constant 0 : i32
    return %c0_i32 : i32
  }
  func.func @transform_1(%arg0: i32) -> (i32, i32) {
    %c0_i32 = arith.constant 0 : i32
    %c0_i32_0 = arith.constant 0 : i32
    %c0_i32_1 = arith.constant 0 : i32
    return %c0_i32, %c0_i32_0 : i32, i32
  }
  func.func @transform_2(%arg0: i32) -> (i32, i32) {
    %c0_i32 = arith.constant 0 : i32
    %c0_i32_0 = arith.constant 0 : i32
    %c0_i32_1 = arith.constant 0 : i32
    return %c0_i32, %c0_i32_0 : i32, i32
  }
  func.func @transform_3(%arg0: i32) -> (i32, i32) {
    %c0_i32 = arith.constant 0 : i32
    %c0_i32_0 = arith.constant 0 : i32
    %c0_i32_1 = arith.constant 0 : i32
    return %c0_i32, %c0_i32_0 : i32, i32
  }
  func.func @transform_4(%arg0: i32) -> (i32, i32) {
    %c0_i32 = arith.constant 0 : i32
    %c0_i32_0 = arith.constant 0 : i32
    %c0_i32_1 = arith.constant 0 : i32
    return %c0_i32, %c0_i32_0 : i32, i32
  }
  func.func @transform_5(%arg0: i32) -> (i32, i32) {
    %c0_i32 = arith.constant 0 : i32
    %c0_i32_0 = arith.constant 0 : i32
    %c0_i32_1 = arith.constant 0 : i32
    return %c0_i32, %c0_i32_0 : i32, i32
  }
  func.func @transform_6(%arg0: i32) -> (i32, i32, i32) {
    %c0_i32 = arith.constant 0 : i32
    %c0_i32_0 = arith.constant 0 : i32
    %c0_i32_1 = arith.constant 0 : i32
    return %c0_i32, %arg0, %c0_i32_0 : i32, i32, i32
  }
  func.func @transform_7(%arg0: i32) -> (i32, i32) {
    %c0_i32 = arith.constant 0 : i32
    %c0_i32_0 = arith.constant 0 : i32
    return %arg0, %c0_i32 : i32, i32
  }
}

</mosaic_0001>

<bundles_post_ra>
// kernel: lstm_gat2_forward.1
= control target key start
LH: loop header
LB: loop body
LE: loop exit
PB: predicated region body
PF: predicated region fallthrough
CT: control target
= control target key end

     0   :  { %12 = vsyncpa [#allocation4], 0  ;;  %s4907_s24 = smov 0   ;;  %s4909_s25 = smov 0   ;;  %s8062_s0 = inlined_call_operand.vmem [shape: f32[14], index: 0, kind: input, shape index: {}]   ;;  %s8063_s1 = inlined_call_operand.vmem [shape: f32[24,24], index: 1, kind: input, shape index: {}]   ;;  %s8064_s2 = inlined_call_operand.vmem [shape: f32[23,23], index: 2, kind: input, shape index: {}]   ;;  %s8065_s3 = inlined_call_operand.vmem [shape: f32[23,2], index: 3, kind: input, shape index: {}]   ;;  %s8066_s4 = inlined_call_operand.vmem [shape: f32[23,23], index: 4, kind: input, shape index: {}]   ;;  %s8067_s5 = inlined_call_operand.vmem [shape: f32[23,2], index: 5, kind: input, shape index: {}]   ;;  %s8068_s6 = inlined_call_operand.vmem [shape: f32[12,48,23], index: 6, kind: input, shape index: {}]   ;;  %s8069_s7 = inlined_call_operand.vmem [shape: f32[48,23], index: 7, kind: output, shape index: {}]  }
   0x1   :  { %s4911_s26 = smov 0  }
   0x2 LB: > { %s3970_s27 = sadd.s32 4294967295, %s4861_s26   ;;  %s4924_s28 = sadd.s32 1, %s4861_s26   ;;  %s4861_s26 = sphi %s4911_s26, %s8371_s26   ;;  %s4857_s25 = sphi %s4909_s25, %s8370_s25   ;;  %s4853_s24 = sphi %s4907_s24, %s8369_s24  }
   0x3   : > { %s148_s29 = ssub.s32 %s4861_s26, %s4924_s28  ;;  %s151_s30 = sadd.s32 1, %s4857_s25 }
   0x4   : > { %p149_p0 = scmp.eq.s32.totalorder %s148_s29, 0  ;;  %p158_p1 = scmp.ne.s32.totalorder %s4857_s25, %s4853_s24 }
   0x5   : > { %p159_p2 = scmp.eq.s32.totalorder %s4861_s26, 0  ;;  %p3972_p3 = scmp.ge.s32.totalorder %s4861_s26, 1 }
   0x6   : > { %s4934_s8 = scalar_select %p149_p0, %s4857_s25, %s151_s30  }
   0x7   : > { %p160_p4 = por %p159_p2, %p158_p1  ;;  %p201_p5 = scmp.lt.s32.totalorder %s4861_s26, 3 }
   0x8   : > { %p4939_p6 = scmp.eq.s32.totalorder %s3970_s27, 0  ;;  %s213_s13 = sshll.u32 %s8062_s0, 4  ;;  %s214_s13 = int_to_ptr.vmem [resolvable:$true] %s213_s13 }
   0x9   : > { %p4943_p7 = pnand %p3972_p3, %p201_p5  ;;  %s4863_s14 = smov [#allocation3]  }
   0xa   : > { %p3974_p10 = scmp.ge.s32.totalorder %s4861_s26, 2 }
   0xb   : > { %p4177_p8 = pneg %p4943_p7 }
   0xc   : > { %235 = sbr.rel (%p3974_p10) target bundleno = 58 (0x3a), region = 40 }
   0xd   : > { %p4178_p9 = pnand %p4939_p6, %p4177_p8 }
   0xf   : > { %4180 = dma.vmem_to_smem (!%p4178_p9), %s214_s13, 16, %s4863_s14, [#allocation4]  }
  0x11   : > { %238 = sbr.rel (!%p160_p4) target bundleno = 58 (0x3a), region = 44  ;;  %s240_s15 = sand.u32 (%p160_p4), 1, %s4857_s25  }
  0x12   : > { %s4164_s16 = smul.u32 (%p160_p4), 24, %s4861_s26 }
  0x13   : > { %s4171_s17 = smul.u32 (%p160_p4), 288, %s240_s15 }
  0x14   : > { %s4960_s20 = scalar_lea.vmem (%p160_p4), %s8068_s6, %s4164_s16 }
  0x15   : > { %v344_v0 = vld [vmem:[%s4960_s20] sm:$0xff] (%p160_p4)  ;;  %v346_v1 = vld [vmem:[%s4960_s20 + $0x8] sm:$0xff] (%p160_p4)  ;;  %v348_v2 = vld [vmem:[%s4960_s20 + $0x10] sm:$0xff] (%p160_p4)  ;;  %s4965_s21 = scalar_lea.vmem (%p160_p4), [#allocation5], %s4171_s17 }
  0x16   : > { %345 = vst [vmem:[%s4965_s21] sm:$0xff] %v344_v0  ;;  %v350_v3 = vld [vmem:[%s4960_s20 + $0x30] sm:$0xff]  ;;  %v352_v4 = vld [vmem:[%s4960_s20 + $0x38] sm:$0xff]  ;;  %v354_v5 = vld [vmem:[%s4960_s20 + $0x40] sm:$0xff] }
  0x17   : > { %347 = vst [vmem:[%s4965_s21 + $0x8] sm:$0xff] %v346_v1  ;;  %v356_v6 = vld [vmem:[%s4960_s20 + $0x60] sm:$0xff]  ;;  %v358_v7 = vld [vmem:[%s4960_s20 + $0x68] sm:$0xff]  ;;  %v360_v8 = vld [vmem:[%s4960_s20 + $0x70] sm:$0xff] }
  0x18   : > { %349 = vst [vmem:[%s4965_s21 + $0x10] sm:$0xff] %v348_v2  ;;  %v362_v9 = vld [vmem:[%s4960_s20 + $0x90] sm:$0xff]  ;;  %v364_v10 = vld [vmem:[%s4960_s20 + $0x98] sm:$0xff]  ;;  %v366_v11 = vld [vmem:[%s4960_s20 + $0xa0] sm:$0xff] }
  0x19   : > { %351 = vst [vmem:[%s4965_s21 + $0x18] sm:$0xff] %v350_v3  ;;  %v368_v12 = vld [vmem:[%s4960_s20 + $0xc0] sm:$0xff]  ;;  %v370_v13 = vld [vmem:[%s4960_s20 + $0xc8] sm:$0xff]  ;;  %v372_v14 = vld [vmem:[%s4960_s20 + $0xd0] sm:$0xff] }
  0x1a   : > { %353 = vst [vmem:[%s4965_s21 + $0x20] sm:$0xff] %v352_v4  ;;  %v374_v15 = vld [vmem:[%s4960_s20 + $0xf0] sm:$0xff]  ;;  %v376_v16 = vld [vmem:[%s4960_s20 + $0xf8] sm:$0xff]  ;;  %v378_v17 = vld [vmem:[%s4960_s20 + $0x100] sm:$0xff] }
  0x1b   : > { %355 = vst [vmem:[%s4965_s21 + $0x28] sm:$0xff] %v354_v5  ;;  %v380_v18 = vld [vmem:[%s4960_s20 + $0x120] sm:$0xff]  ;;  %v382_v19 = vld [vmem:[%s4960_s20 + $0x128] sm:$0xff]  ;;  %v384_v20 = vld [vmem:[%s4960_s20 + $0x130] sm:$0xff] }
  0x1c   : > { %357 = vst [vmem:[%s4965_s21 + $0x30] sm:$0xff] %v356_v6  ;;  %v386_v21 = vld [vmem:[%s4960_s20 + $0x150] sm:$0xff]  ;;  %v388_v22 = vld [vmem:[%s4960_s20 + $0x158] sm:$0xff]  ;;  %v390_v23 = vld [vmem:[%s4960_s20 + $0x160] sm:$0xff] }
  0x1d   : > { %359 = vst [vmem:[%s4965_s21 + $0x38] sm:$0xff] %v358_v7  ;;  %v392_v24 = vld [vmem:[%s4960_s20 + $0x180] sm:$0xff]  ;;  %v394_v25 = vld [vmem:[%s4960_s20 + $0x188] sm:$0xff]  ;;  %v396_v26 = vld [vmem:[%s4960_s20 + $0x190] sm:$0xff] }
  0x1e   : > { %361 = vst [vmem:[%s4965_s21 + $0x40] sm:$0xff] %v360_v8  ;;  %v398_v27 = vld [vmem:[%s4960_s20 + $0x1b0] sm:$0xff]  ;;  %v400_v28 = vld [vmem:[%s4960_s20 + $0x1b8] sm:$0xff]  ;;  %v402_v29 = vld [vmem:[%s4960_s20 + $0x1c0] sm:$0xff] }
  0x1f   : > { %363 = vst [vmem:[%s4965_s21 + $0x48] sm:$0xff] %v362_v9  ;;  %v404_v30 = vld [vmem:[%s4960_s20 + $0x1e0] sm:$0xff]  ;;  %v406_v31 = vld [vmem:[%s4960_s20 + $0x1e8] sm:$0xff]  ;;  %v408_v32 = vld [vmem:[%s4960_s20 + $0x1f0] sm:$0xff] }
  0x20   : > { %365 = vst [vmem:[%s4965_s21 + $0x50] sm:$0xff] %v364_v10  ;;  %v410_v33 = vld [vmem:[%s4960_s20 + $0x210] sm:$0xff]  ;;  %v412_v34 = vld [vmem:[%s4960_s20 + $0x218] sm:$0xff]  ;;  %v414_v35 = vld [vmem:[%s4960_s20 + $0x220] sm:$0xff] }
  0x21   : > { %367 = vst [vmem:[%s4965_s21 + $0x58] sm:$0xff] %v366_v11 }
  0x22   : > { %369 = vst [vmem:[%s4965_s21 + $0x60] sm:$0xff] %v368_v12 }
  0x23   : > { %371 = vst [vmem:[%s4965_s21 + $0x68] sm:$0xff] %v370_v13 }
  0x24   : > { %373 = vst [vmem:[%s4965_s21 + $0x70] sm:$0xff] %v372_v14 }
  0x25   : > { %375 = vst [vmem:[%s4965_s21 + $0x78] sm:$0xff] %v374_v15 }
  0x26   : > { %377 = vst [vmem:[%s4965_s21 + $0x80] sm:$0xff] %v376_v16 }
  0x27   : > { %379 = vst [vmem:[%s4965_s21 + $0x88] sm:$0xff] %v378_v17 }
  0x28   : > { %381 = vst [vmem:[%s4965_s21 + $0x90] sm:$0xff] %v380_v18 }
  0x29   : > { %383 = vst [vmem:[%s4965_s21 + $0x98] sm:$0xff] %v382_v19 }
  0x2a   : > { %385 = vst [vmem:[%s4965_s21 + $0xa0] sm:$0xff] %v384_v20 }
  0x2b   : > { %387 = vst [vmem:[%s4965_s21 + $0xa8] sm:$0xff] %v386_v21 }
  0x2c   : > { %389 = vst [vmem:[%s4965_s21 + $0xb0] sm:$0xff] %v388_v22 }
  0x2d   : > { %391 = vst [vmem:[%s4965_s21 + $0xb8] sm:$0xff] %v390_v23 }
  0x2e   : > { %393 = vst [vmem:[%s4965_s21 + $0xc0] sm:$0xff] %v392_v24 }
  0x2f   : > { %395 = vst [vmem:[%s4965_s21 + $0xc8] sm:$0xff] %v394_v25 }
  0x30   : > { %397 = vst [vmem:[%s4965_s21 + $0xd0] sm:$0xff] %v396_v26 }
  0x31   : > { %399 = vst [vmem:[%s4965_s21 + $0xd8] sm:$0xff] %v398_v27 }
  0x32   : > { %401 = vst [vmem:[%s4965_s21 + $0xe0] sm:$0xff] %v400_v28 }
  0x33   : > { %403 = vst [vmem:[%s4965_s21 + $0xe8] sm:$0xff] %v402_v29 }
  0x34   : > { %405 = vst [vmem:[%s4965_s21 + $0xf0] sm:$0xff] %v404_v30 }
  0x35   : > { %407 = vst [vmem:[%s4965_s21 + $0xf8] sm:$0xff] %v406_v31 }
  0x36   : > { %409 = vst [vmem:[%s4965_s21 + $0x100] sm:$0xff] %v408_v32 }
  0x37   : > { %411 = vst [vmem:[%s4965_s21 + $0x108] sm:$0xff] %v410_v33 }
  0x38   : > { %413 = vst [vmem:[%s4965_s21 + $0x110] sm:$0xff] %v412_v34 }
  0x39   : > { %415 = vst [vmem:[%s4965_s21 + $0x118] sm:$0xff] %v414_v35 }
  0x3a PF: > { %424 = sbr.rel (%p4943_p7) target bundleno = 2247 (0x8c7), region = 82 }
  0x3f   : > { %4848 = dma.done.wait (%p4939_p6), [#allocation4], 16  }
  0x40   : > { %4850 = vsyncadd (%p4939_p6), [#allocation4], 4294967280  ;;  %s432_s22 = sand.u32 1, %s4853_s24  }
  0x41   : > { %s4172_s23 = smul.u32 288, %s432_s22 }
  0x43   : > { %s5043_s29 = scalar_lea.vmem [#allocation5], %s4172_s23 }
  0x44   : > { %438 = sfence }
  0x45   : > { %v3409_v36 = vld [vmem:[%s8064_s2 + $0x10] sm:$0x7f]  ;;  %vm3419_vm0 = vcmask 1046528   ;;  %v3408_v37 = vld [vmem:[%s8064_s2 + $0x8] sm:$0xff]  ;;  %v3407_v38 = vld [vmem:[%s8064_s2] sm:$0xff]  ;;  %vm8070_vm1 = vcmask 187392  }
  0x46   : > { %4165 = vmatpush.msk.msra.mxu2 %vm3419_vm0, %v3409_v36  ;;  %4137 = vmatpush.msk.msra.mxu0 %vm3419_vm0, %v3409_v36  ;;  %v3451_v39 = vld [vmem:[%s8065_s3 + $0x10] sm:$0x7f]  ;;  %v4135_v40 = vld [vmem:[%s5043_s29 + $0x110] sm:$0xff]  ;;  %v4134_v41 = vld [vmem:[%s5043_s29 + $0x108] sm:$0xff]  ;;  %v4864_v48 = vmov 0   ;;  %s4865_s19 = smov 127  }
  0x47   : > { %4141 = vmatpush.msk.msra.mxu1 %vm3419_vm0, %v3451_v39  ;;  %4168 = vmatpush.msk.msra.mxu3 %vm3419_vm0, %v3451_v39  ;;  %v3450_v42 = vld [vmem:[%s8065_s3 + $0x8] sm:$0xff]  ;;  %v4136_v43 = vld [vmem:[%s5043_s29 + $0x118] sm:$0xff]  ;;  %v3449_v44 = vld [vmem:[%s8065_s3] sm:$0xff]  ;;  %vm3565_vm6 = vcmask 195584   ;;  %s471_s22 = sld [smem:[#allocation3]]  ;;  %s7691_s17 = smul.u32 3, %s3970_s27 }
  0x48   : > { %4166 = vmatpush.msra.mxu2 %v3408_v37  ;;  %3437 = vmatpush.msra.mxu0 %v3408_v37  ;;  %v5082_v58 = vld [vmem:[%s8063_s1 + $0x8] sm:$0xff]  ;;  %v5087_v59 = vld [vmem:[%s8063_s1] sm:$0xff]  ;;  %v5098_v8 = vld [vmem:[%s8063_s1 + $0x10] sm:$0xff]  ;;  %s3979_s23 = sld [smem:[#allocation3 + $0x1]] }
  0x49   : > { %3478 = vmatpush.msra.mxu1 %v3450_v42  ;;  %4169 = vmatpush.msra.mxu3 %v3450_v42  ;;  %vm3560_vm2 = vcmp.gt.f32.partialorder %v5082_v58, 0.0  ;;  %vm3559_vm3 = vcmp.gt.f32.partialorder %v5087_v59, 0.0  ;;  %vm8071_vm8 = vcmp.gt.f32.partialorder %v5098_v8, 0.0  ;;  %v3662_v39 = vld [vmem:[%s8066_s4 + $0x8] sm:$0xff]  ;;  %s3982_s30 = sld [smem:[#allocation3 + $0x4]]  ;;  %p466_p11 = scmp.lt.s32.totalorder %s7691_s17, 5 }
  0x4a   : > { %4167 = vmatpush.msra.mxu2 %v3407_v38  ;;  %3438 = vmatpush.msra.mxu0 %v3407_v38  ;;  %v3663_v38 = vld [vmem:[%s8066_s4 + $0x10] sm:$0x7f]  ;;  %s3983_s11 = sld [smem:[#allocation3 + $0x5]] }
  0x4b   : > { %4139 = vmatmul.msk.f32.vlgmr.msra.gmra.mxu2 %vm8070_vm1, %v4135_v40  ;;  %4138 = vmatmul.msk.f32.vlgmr.msra.gmra.mxu0 %vm8070_vm1, %v4134_v41  ;;  %v3661_v40 = vld [vmem:[%s8066_s4] sm:$0xff]  ;;  %s3986_s10 = sld [smem:[#allocation3 + $0x8]]  ;;  %s8373_s17 = smov (!%p466_p11, %s7691_s17), 5 }
  0x4c   : > { %3479 = vmatpush.msra.mxu1 %v3449_v44  ;;  %4170 = vmatpush.msra.mxu3 %v3449_v44  ;;  %s3987_s12 = sld [smem:[#allocation3 + $0x9]]  ;;  %s3978_s26 = sshll.u32 %s8373_s17, 3 }
  0x4d   : > { %4212 = vset.pattern.permute.xlu2 %v4864_v48  ;;  %4211 = vset.pattern.permute.xlu1 %v4864_v48  ;;  %s3985_s24 = sld [smem:[#allocation3 + $0x7]]  ;;  %s7802_s20 = scalar_lea.vmem %s8069_s7, %s3978_s26 }
  0x4e   : > { %4151 = vmatpush.msk.msrb.mxu3 %vm3419_vm0, %v3663_v38  ;;  %s3989_s9 = sld [smem:[#allocation3 + $0xb]] }
  0x4f   : > { %s3980_s13 = sld [smem:[#allocation3 + $0x2]] }
  0x50   : > { %3690 = vmatpush.msrb.mxu3 %v3662_v39  ;;  %s3984_s14 = sld [smem:[#allocation3 + $0x6]] }
  0x51   : > { %s3988_s15 = sld [smem:[#allocation3 + $0xa]] }
  0x52   : > { %3691 = vmatpush.msrb.mxu3 %v3661_v40  ;;  %s7637_s16 = sld [smem:[#allocation3 + $0xc]] }
  0x53   : > { %4140 = vmatmul.msk.f32.gmra.mxu2 %vm8070_vm1, %v4136_v43  ;;  %s3991_s21 = sld [smem:[#allocation3 + $0xd]] }
  0xc8   : > { %v3440_v45 = vpop.f32.mrf.mxu0 }
  0xc9   : > { %4142 = vmatmul.msk.f32.vlgmr.msra.gmra.mxu1 %vm8070_vm1, %v3440_v45 }
  0xce   : > { %v3443_v46 = vpop.f32.mrf.mxu2 }
  0xcf   : > { %4143 = vmatmul.msk.f32.vlgmr.msra.gmra.mxu3 %vm8070_vm1, %v3443_v46 }
  0xd6   : > { %v3446_v47 = vpop.f32.mrf.mxu2 }
  0xd7   : > { %4144 = vmatmul.msk.f32.gmra.mxu3 %vm8070_vm1, %v3446_v47  ;;  %3621 = vmatpush.msrb.mxu2 %v3446_v47  ;;  %v3703_v47 = vld [vmem:[%s8067_s5 + $0x8] sm:$0xff] }
  0xd9   : > { %3622 = vmatpush.msrb.mxu2 %v3443_v46  ;;  %v3704_v46 = vld [vmem:[%s8067_s5 + $0x10] sm:$0x7f] }
  0xda   : > { %4155 = vmatpush.msk.msrb.mxu0 %vm3419_vm0, %v3704_v46  ;;  %v5189_v46 = vstv %s3989_s9 }
  0xdb   : > { %3623 = vmatpush.msrb.mxu2 %v3440_v45 }
  0xdc   : > { %3731 = vmatpush.msrb.mxu0 %v3703_v47 }
 0x146   : > { %v3481_v49 = vpop.f32.mrf.mxu1 }
 0x147   : > { %3493 = vrot.lane.b32.xlu0 %v3481_v49, %s4865_s19 }
 0x152   : > { %v3484_v50 = vpop.f32.mrf.mxu3 }
 0x153   : > { %3539 = vperm.xlu2 %4212, %v3484_v50   ;;  %3495 = vrot.lane.b32.xlu0 %v3484_v50, %s4865_s19 }
 0x15a   : > { %v3487_v51 = vpop.f32.mrf.mxu3 }
 0x15b   : > { %3543 = vperm.xlu2 %4212, %v3487_v51   ;;  %3497 = vrot.lane.b32.xlu1 %v3487_v51, %s4865_s19  ;;  %v3391_v51 = vlaneseq }
 0x163   : > { %3535 = vperm.xlu1 %4211, %v3481_v49  }
 0x1ad   : > { %v3540_v55 = vpop.permute.xlu2 %3539 }
 0x1b5   : > { %v3544_v60 = vpop.permute.xlu2 %3543 }
 0x1b9   : > { %v3494_v52 = vpop.permute.xlu0 %3493 }
 0x1ba   : > { %3502 = vxpose.xlu0.b32.start [1/3] (short) (narrow) %v3494_v52, 8 }
 0x1c5   : > { %v3496_v53 = vpop.permute.xlu0 %3495 }
 0x1c6   : > { %3503 = vxpose.xlu0.b32.cont [2/3] (short) (narrow) %v3496_v53, 8 }
 0x1cd   : > { %v3498_v54 = vpop.permute.xlu1 %3497 }
 0x1ce   : > { %3504 = vxpose.xlu0.b32.end [3/3] (short) (narrow) %v3498_v54, 8  ;;  %v3392_v54 = vshrl.u32 %v3391_v51, 7 }
 0x1d5   : > { %v3536_v61 = vpop.permute.xlu1 %3535 }
 0x235   : > { %4213 = vset.pattern.permute.xlu0 %v4864_v48 }
 0x262   : > { %v3518_v56 = vpop.trf.xlu0 }
 0x263   : > { %v3546_v57 = vperm.slane %v3518_v56, 0 }
 0x265   : > { %v3547_v62 = vadd.f32 %v3546_v57, %v3536_v61  ;;  %v3548_v63 = vadd.f32 %v3546_v57, %v3540_v55  ;;  %v3549_v0 = vadd.f32 %v3546_v57, %v3544_v60  ;;  %v3394_v61 = vadd.s32 16, %v3392_v54 }
 0x267   : > { %vm3551_vm4 = vcmp.gt.f32.partialorder %v3548_v63, 0.0  ;;  %v3554_v1 = vmul.f32 0.2, %v3548_v63  ;;  %vm3550_vm5 = vcmp.gt.f32.partialorder %v3547_v62, 0.0  ;;  %v3553_v2 = vmul.f32 0.2, %v3547_v62 }
 0x268   : > { %v3555_v5 = vmul.f32 0.2, %v3549_v0  ;;  %vm3552_vm7 = vcmp.gt.f32.partialorder %v3549_v0, 0.0  ;;  %vm3397_vm11 = vcmp.lt.s32.totalorder %v3394_v61, 23 }
 0x269   : > { %v3557_v3 = vsel %vm3551_vm4, %v3548_v63, %v3554_v1  ;;  %v3556_v4 = vsel %vm3550_vm5, %v3547_v62, %v3553_v2  ;;  %v4866_v1 = vmov 0.0  }
 0x26a   : > { %v3563_v6 = vsel %vm3560_vm2, %v3557_v3, -9e+15  ;;  %v3562_v7 = vsel %vm3559_vm3, %v3556_v4, -9e+15  ;;  %v3558_v11 = vsel %vm3552_vm7, %v3549_v0, %v3555_v5  ;;  %v4133_v2 = vsel %vm3397_vm11, 1.0, %v4866_v1 }
 0x26b   : > { %v3569_v9 = vsel %vm3565_vm6, %v3563_v6, -inf  ;;  %v3566_v10 = vsel %vm3565_vm6, %v3562_v7, -inf  ;;  %v3564_v12 = vsel %vm8071_vm8, %v3558_v11, -9e+15 }
 0x26c   : > { %3570 = vmax.xlane.f32.xlu2 %v3569_v9  ;;  %3567 = vmax.xlane.f32.xlu1 %v3566_v10  ;;  %v3572_v13 = vsel %vm3565_vm6, %v3564_v12, -inf  ;;  %v3702_v9 = vld [vmem:[%s8067_s5] sm:$0xff] }
 0x26d   : > { %3732 = vmatpush.msrb.mxu0 %v3702_v9 }
 0x274   : > { %3573 = vmax.xlane.f32.xlu2 %v3572_v13 }
 0x2df   : > { %v3571_v14 = vpop.xlane.xlu2 %3570  ;;  %v3568_v15 = vpop.xlane.xlu1 %3567 }
 0x2e0   : > { %v3576_v16 = vsub.f32 %v3563_v6, %v3571_v14  ;;  %v3575_v17 = vsub.f32 %v3562_v7, %v3568_v15 }
 0x2e2   : > { %v3580_v18 = vmul.f32 1.442695, %v3576_v16  ;;  %v3578_v19 = vmul.f32 1.442695, %v3575_v17  ;;  %v485_v16 = vld [vmem:[%s5043_s29] sm:$0xff]  ;;  %v5145_v17 = vstv %s471_s22 }
 0x2e4   : > { %4214 = vpow2.f32 %v3580_v18  ;;  %v5147_v18 = vstv %s3982_s30 }
 0x2e5   : > { %4216 = vpow2.f32 %v3578_v19  ;;  %v5149_v19 = vstv %s3979_s23 }
 0x2e7   : > { %v3574_v20 = vpop.xlane.xlu2 %3573 }
 0x2e8   : > { %v3577_v21 = vsub.f32 %v3564_v12, %v3574_v20  ;;  %v489_v20 = vmul.f32 %v5145_v17, %v485_v16 }
 0x2ea   : > { %v4215_v22 = vpop.eup %4214  ;;  %v3582_v23 = vmul.f32 1.442695, %v3577_v21  ;;  %v5153_v21 = vmul.f32 0.0, %v5147_v18 }
 0x2eb   : > { %v4217_v24 = vpop.eup %4216  ;;  %v3587_v25 = vsel %vm3565_vm6, %v4215_v22, 0.0 }
 0x2ec   : > { %4218 = vpow2.f32 %v3582_v23  ;;  %3588 = vadd.xlane.f32.xlu2 %v3587_v25  ;;  %v3584_v26 = vsel %vm3565_vm6, %v4217_v24, 0.0  ;;  %v5156_v23 = vstv %s3983_s11  ;;  %v494_v25 = vadd.f32 %v5153_v21, %v489_v20 }
 0x2ed   : > { %3585 = vadd.xlane.f32.xlu1 %v3584_v26  ;;  %v5162_v26 = vstv %s3986_s10 }
 0x2f2   : > { %v4219_v27 = vpop.eup %4218 }
 0x2f3   : > { %v3590_v28 = vsel %vm3565_vm6, %v4219_v27, 0.0 }
 0x2f4   : > { %3591 = vadd.xlane.f32.xlu0 %v3590_v28  ;;  %v5165_v28 = vstv %s3987_s12 }
 0x35f   : > { %v3589_v30 = vpop.xlane.xlu2 %3588 }
 0x360   : > { %v3586_v29 = vpop.xlane.xlu1 %3585 }
 0x361   : > { %4220 = vrcp.f32 %v3586_v29  ;;  %v498_v29 = vadd.f32 %v5162_v26, %v494_v25 }
 0x362   : > { %4222 = vrcp.f32 %v3589_v30 }
 0x367   : > { %v4221_v31 = vpop.eup %4220  ;;  %v3592_v33 = vpop.xlane.xlu0 %3591 }
 0x368   : > { %v3596_v32 = vmul.f32 %v4221_v31, %v4217_v24  ;;  %v4223_v34 = vpop.eup %4222  ;;  %4224 = vrcp.f32 %v3592_v33  ;;  %v5159_v24 = vmul.f32 0.0, %v5156_v23  ;;  %v3992_v31 = vmul.f32 -1.442695, %v498_v29  ;;  %v5170_v33 = vld [vmem:[%s5043_s29 + $0x8] sm:$0xff] }
 0x369   : > { %v3597_v35 = vmul.f32 %v4223_v34, %v4215_v22  ;;  %v559_v22 = vmul.f32 %v5149_v19, %v485_v16  ;;  %v490_v34 = vmul.f32 %v5145_v17, %v5170_v33 }
 0x36a   : > { %4145 = vmatmul.msk.f32.vlgmr.msrb.gmra.mxu2 %vm3565_vm6, %v3596_v32 }
 0x36b   : > { %v495_v38 = vadd.f32 %v5153_v21, %v490_v34 }
 0x36e   : > { %v4225_v36 = vpop.eup %4224 }
 0x36f   : > { %v3598_v37 = vmul.f32 %v4225_v36, %v4219_v27  ;;  %v564_v27 = vadd.f32 %v5159_v24, %v559_v22 }
 0x371   : > { %v568_v30 = vadd.f32 %v5165_v28, %v564_v27 }
 0x372   : > { %4146 = vmatmul.msk.f32.gmra.mxu2 %vm3565_vm6, %v3597_v35  ;;  %v560_v35 = vmul.f32 %v5149_v19, %v5170_v33 }
 0x373   : > { %v3995_v32 = vmul.f32 -1.442695, %v568_v30 }
 0x374   : > { %v565_v39 = vadd.f32 %v5159_v24, %v560_v35 }
 0x37a   : > { %4147 = vmatmul.msk.f32.gmra.mxu2 %vm3565_vm6, %v3598_v37  ;;  %v5178_v37 = vstv %s3985_s24 }
 0x3ed   : > { %v3625_v41 = vpop.f32.mrf.mxu2 }
 0x3ee   : > { %v3637_v42 = vmin.f32 %v3625_v41, 0.0  ;;  %vm3634_vm9 = vcmp.gt.f32.partialorder %v3625_v41, 0.0 }
 0x3f0   : > { %v3640_v43 = vmul.f32 1.442695, %v3637_v42  ;;  %v499_v42 = vadd.f32 %v5162_v26, %v495_v38 }
 0x3f2   : > { %4226 = vpow2.f32 %v3640_v43  ;;  %v569_v43 = vadd.f32 %v5165_v28, %v565_v39  ;;  %v3993_v47 = vmul.f32 -1.442695, %v499_v42 }
 0x3f5   : > { %v3628_v44 = vpop.f32.mrf.mxu2 }
 0x3f6   : > { %v3638_v45 = vmin.f32 %v3628_v44, 0.0  ;;  %vm3635_vm10 = vcmp.gt.f32.partialorder %v3628_v44, 0.0 }
 0x3f8   : > { %v4227_v48 = vpop.eup %4226  ;;  %v3642_v49 = vmul.f32 1.442695, %v3638_v45 }
 0x3f9   : > { %v4148_v50 = vadd.f32 -1.0, %v4227_v48 }
 0x3fa   : > { %4228 = vpow2.f32 %v3642_v49 }
 0x3fb   : > { %v3649_v52 = vsel %vm3634_vm9, %v3625_v41, %v4148_v50  ;;  %v5184_v41 = vmul.f32 0.0, %v5178_v37 }
 0x3fc   : > { %3655 = vst.msk [vmem:[#allocation2] sm:$0xff] %vm8070_vm1, %v3649_v52  ;;  %v3996_v52 = vmul.f32 -1.442695, %v569_v43 }
 0x3fd   : > { %v3631_v53 = vpop.f32.mrf.mxu2 }
 0x3fe   : > { %v3639_v55 = vmin.f32 %v3631_v53, 0.0  ;;  %vm3636_vm12 = vcmp.gt.f32.partialorder %v3631_v53, 0.0 }
 0x400   : > { %v4229_v56 = vpop.eup %4228  ;;  %v3644_v57 = vmul.f32 1.442695, %v3639_v55  ;;  %v5194_v55 = vstv %s3980_s13 }
 0x401   : > { %v4149_v60 = vadd.f32 -1.0, %v4229_v56  ;;  %v5196_v56 = vstv %s3984_s14 }
 0x402   : > { %4230 = vpow2.f32 %v3644_v57  ;;  %v629_v57 = vmul.f32 %v5194_v55, %v485_v16 }
 0x403   : > { %v3650_v62 = vsel %vm3635_vm10, %v3628_v44, %v4149_v60  ;;  %v3658_v63 = vld [vmem:[#allocation2] sm:$0xff]  ;;  %4232 = vpow2.f32 %v3992_v31  ;;  %v5200_v60 = vmul.f32 0.0, %v5196_v56 }
 0x404   : > { %3656 = vst.msk [vmem:[#allocation2 + $0x8] sm:$0xff] %vm8070_vm1, %v3650_v62  ;;  %4152 = vmatmul.msk.f32.vlgmr.msrb.gmra.mxu3 %vm8070_vm1, %v3658_v63  ;;  %4234 = vpow2.f32 %v3995_v32 }
 0x405   : > { %4236 = vpow2.f32 %v3993_v47  ;;  %v630_v47 = vmul.f32 %v5194_v55, %v5170_v33 }
 0x408   : > { %v4231_v0 = vpop.eup %4230 }
 0x409   : > { %v4150_v3 = vadd.f32 -1.0, %v4231_v0  ;;  %v4233_v45 = vpop.eup %4232  ;;  %v634_v0 = vadd.f32 %v5200_v60, %v629_v57 }
 0x40a   : > { %v4235_v48 = vpop.eup %4234  ;;  %v510_v49 = vadd.f32 1.0, %v4233_v45 }
 0x40b   : > { %v3651_v4 = vsel %vm3636_vm12, %v3631_v53, %v4150_v3  ;;  %v3659_v5 = vld [vmem:[#allocation2 + $0x8] sm:$0xff]  ;;  %v580_v51 = vadd.f32 1.0, %v4235_v48  ;;  %v4237_v62 = vpop.eup %4236 }
 0x40c   : > { %v3654_v6 = vmul.f32 %v4133_v2, %v3651_v4  ;;  %4153 = vmatmul.msk.f32.gmra.mxu3 %vm8070_vm1, %v3659_v5  ;;  %4238 = vrcp.f32 %v510_v49  ;;  %v5204_v1 = vadd.f32 1.0, %v4237_v62  ;;  %v5206_v4 = vstv %s3988_s15 }
 0x40d   : > { %4240 = vrcp.f32 %v580_v51  ;;  %v638_v9 = vadd.f32 %v5206_v4, %v634_v0  ;;  %v524_v20 = vand.u32 2147483648, %v510_v49  ;;  %v594_v25 = vand.u32 2147483648, %v580_v51 }
 0x40e   : > { %3657 = vst.msk [vmem:[#allocation2 + $0x10] sm:$0xff] %vm8070_vm1, %v3654_v6  ;;  %vm518_vm13 = vweird.f32 %v510_v49  ;;  %v522_v29 = vand.u32 2147483647, %v510_v49  ;;  %vm588_vm0 = vweird.f32 %v580_v51  ;;  %v592_v35 = vand.u32 2147483647, %v580_v51 }
 0x40f   : > { %v525_v31 = vor.u32 1.1754944e-38, %v524_v20  ;;  %v595_v38 = vor.u32 1.1754944e-38, %v594_v25  ;;  %v539_v62 = vand.u32 2147483648, %v5204_v1  ;;  %vm533_vm10 = vweird.f32 %v5204_v1 }
 0x410   : > { %vm523_vm5 = vcmp.eq.f32.partialorder %v522_v29, 8.507059e+37  ;;  %vm593_vm9 = vcmp.eq.f32.partialorder %v592_v35, 8.507059e+37  ;;  %v5255_v35 = vld [vmem:[%s5043_s29 + $0x18] sm:$0xff] }
 0x411   : > { %v540_v29 = vor.u32 1.1754944e-38, %v539_v62 }
 0x412   : > { %v4239_v63 = vpop.eup %4238 }
 0x413   : > { %v4241_v2 = vpop.eup %4240  ;;  %v514_v3 = vmul.f32 %v4239_v63, %v510_v49  ;;  %vm519_vm14 = vweird.f32 %v4239_v63 }
 0x414   : > { %vm520_vm15 = vmor %vm518_vm13, %vm519_vm14  ;;  %vm589_vm4 = vweird.f32 %v4241_v2 }
 0x415   : > { %v3660_v7 = vld [vmem:[#allocation2 + $0x10] sm:$0xff]  ;;  %vm590_vm7 = vmor %vm588_vm0, %vm589_vm4 }
 0x416   : > { %4154 = vmatmul.msk.f32.gmra.mxu3 %vm8070_vm1, %v3660_v7  ;;  %v584_v7 = vmul.f32 %v4241_v2, %v580_v51 }
 0x487   : > { %v3693_v10 = vpop.f32.mrf.mxu3 }
 0x488   : > { %4156 = vmatmul.msk.f32.vlgmr.msrb.gmra.mxu0 %vm8070_vm1, %v3693_v10 }
 0x48f   : > { %v3696_v11 = vpop.f32.mrf.mxu3 }
 0x490   : > { %4157 = vmatmul.msk.f32.gmra.mxu0 %vm8070_vm1, %v3696_v11 }
 0x499   : > { %v3699_v12 = vpop.f32.mrf.mxu3 }
 0x49a   : > { %4158 = vmatmul.msk.f32.gmra.mxu0 %vm8070_vm1, %v3699_v12  ;;  %3870 = vmatpush.msrb.mxu1 %v3699_v12 }
 0x49c   : > { %3871 = vmatpush.msrb.mxu1 %v3696_v11  ;;  %v515_v11 = vsub.f32 1.0, %v514_v3 }
 0x49e   : > { %3872 = vmatpush.msrb.mxu1 %v3693_v10 }
 0x505   : > { %v3734_v13 = vpop.f32.mrf.mxu0 }
 0x506   : > { %3746 = vrot.lane.b32.xlu1 %v3734_v13, %s4865_s19 }
 0x50d   : > { %v3737_v14 = vpop.f32.mrf.mxu0 }
 0x50e   : > { %3792 = vperm.xlu1 %4211, %v3737_v14   ;;  %3748 = vrot.lane.b32.xlu2 %v3737_v14, %s4865_s19 }
 0x516   : > { %3788 = vperm.xlu2 %4212, %v3734_v13   ;;  %v585_v13 = vsub.f32 1.0, %v584_v7 }
 0x517   : > { %v3740_v15 = vpop.f32.mrf.mxu0 }
 0x518   : > { %3750 = vrot.lane.b32.xlu1 %v3740_v15, %s4865_s19  ;;  %s3981_s19 = sld [smem:[#allocation3 + $0x3]]  ;;  %v586_v22 = vmul.f32 %v4241_v2, %v585_v13 }
 0x51a   : > { %v587_v32 = vadd.f32 %v4241_v2, %v586_v22 }
 0x51c   : > { %v591_v42 = vsel %vm590_vm7, %v4241_v2, %v587_v32 }
 0x51d   : > { %v596_v49 = vsel %vm593_vm9, %v595_v38, %v591_v42 }
 0x51e   : > { %3796 = vperm.xlu2 %4212, %v3740_v15   ;;  %v5176_v36 = vstv %s3981_s19  ;;  %v516_v15 = vmul.f32 %v4239_v63, %v515_v11 }
 0x51f   : > { %v645_v40 = vmul.f32 %v5176_v36, %v485_v16  ;;  %v646_v54 = vmul.f32 %v5176_v36, %v5170_v33 }
 0x520   : > { %v517_v27 = vadd.f32 %v4239_v63, %v516_v15 }
 0x521   : > { %v650_v44 = vadd.f32 %v5184_v41, %v645_v40  ;;  %v651_v61 = vadd.f32 %v5184_v41, %v646_v54 }
 0x522   : > { %v521_v34 = vsel %vm520_vm15, %v4239_v63, %v517_v27  ;;  %v635_v63 = vadd.f32 %v5200_v60, %v630_v47 }
 0x523   : > { %v654_v50 = vadd.f32 %v5189_v46, %v650_v44  ;;  %v655_v5 = vadd.f32 %v5189_v46, %v651_v61  ;;  %v526_v40 = vsel %vm523_vm5, %v525_v31, %v521_v34 }
 0x524   : > { %v639_v27 = vadd.f32 %v5206_v4, %v635_v63 }
 0x525   : > { %v3998_v53 = vmul.f32 -1.442695, %v654_v50  ;;  %v3999_v16 = vmul.f32 -1.442695, %v655_v5 }
 0x527   : > { %4242 = vpow2.f32 %v3998_v53  ;;  %v714_v53 = vmul.f32 0.0, %v596_v49 }
 0x528   : > { %4244 = vpow2.f32 %v3996_v52 }
 0x529   : > { %4246 = vrcp.f32 %v5204_v1 }
 0x52a   : > { %4248 = vtanh.f32 %v638_v9 }
 0x52d   : > { %v4243_v6 = vpop.eup %4242 }
 0x52e   : > { %v4245_v10 = vpop.eup %4244  ;;  %v5211_v12 = vadd.f32 1.0, %v4243_v6 }
 0x52f   : > { %v5213_v14 = vadd.f32 1.0, %v4245_v10  ;;  %v5217_v30 = vpop.eup %4246  ;;  %v537_v10 = vand.u32 2147483647, %v5204_v1 }
 0x530   : > { %4250 = vrcp.f32 %v5211_v12  ;;  %v4249_v39 = vpop.eup %4248  ;;  %v529_v43 = vmul.f32 %v5217_v30, %v5204_v1  ;;  %v680_v3 = vand.u32 2147483648, %v5211_v12  ;;  %vm534_vm11 = vweird.f32 %v5217_v30 }
 0x531   : > { %4252 = vrcp.f32 %v5213_v14  ;;  %v717_v45 = vmul.f32 %v4249_v39, %v526_v40  ;;  %v609_v2 = vand.u32 2147483648, %v5213_v14  ;;  %vm603_vm12 = vweird.f32 %v5213_v14  ;;  %vm5249_vm7 = vmor %vm533_vm10, %vm534_vm11 }
 0x532   : > { %v530_v52 = vsub.f32 1.0, %v529_v43  ;;  %4254 = vpow2.f32 %v3999_v16  ;;  %vm674_vm13 = vweird.f32 %v5211_v12  ;;  %v678_v6 = vand.u32 2147483647, %v5211_v12 }
 0x533   : > { %v5225_v57 = vadd.f32 %v717_v45, %v714_v53  ;;  %v681_v9 = vor.u32 1.1754944e-38, %v680_v3  ;;  %v607_v20 = vand.u32 2147483647, %v5213_v14  ;;  %v610_v31 = vor.u32 1.1754944e-38, %v609_v2 }
 0x534   : > { %v531_v61 = vmul.f32 %v5217_v30, %v530_v52  ;;  %vm679_vm4 = vcmp.eq.f32.partialorder %v678_v6, 8.507059e+37  ;;  %vm538_vm9 = vcmp.eq.f32.partialorder %v537_v10, 8.507059e+37  ;;  %v733_v39 = vmul.f32 %v5255_v35, %v5145_v17 }
 0x535   : > { %4256 = vtanh.f32 %v5225_v57  ;;  %v802_v40 = vmul.f32 %v5255_v35, %v5149_v19 }
 0x536   : > { %v4251_v44 = vpop.eup %4250  ;;  %v532_v15 = vadd.f32 %v5217_v30, %v531_v61  ;;  %4258 = vtanh.f32 %v639_v27 }
 0x537   : > { %v4253_v48 = vpop.eup %4252  ;;  %v670_v50 = vmul.f32 %v4251_v44, %v5211_v12  ;;  %vm675_vm14 = vweird.f32 %v4251_v44 }
 0x538   : > { %v599_v51 = vmul.f32 %v4253_v48, %v5213_v14  ;;  %v4255_v7 = vpop.eup %4254  ;;  %vm676_vm15 = vmor %vm674_vm13, %vm675_vm14  ;;  %vm604_vm0 = vweird.f32 %v4253_v48  ;;  %v536_v42 = vsel %vm5249_vm7, %v5217_v30, %v532_v15 }
 0x539   : > { %v671_v54 = vsub.f32 1.0, %v670_v50  ;;  %vm5240_vm5 = vmor %vm603_vm12, %vm604_vm0  ;;  %v667_v32 = vadd.f32 1.0, %v4255_v7  ;;  %vm608_vm12 = vcmp.eq.f32.partialorder %v607_v20, 8.507059e+37  ;;  %v541_v47 = vsel %vm538_vm9, %v540_v29, %v536_v42 }
 0x53a   : > { %v600_v33 = vsub.f32 1.0, %v599_v51 }
 0x53b   : > { %v672_v0 = vmul.f32 %v4251_v44, %v671_v54  ;;  %v4257_v34 = vpop.eup %4256  ;;  %4260 = vrcp.f32 %v667_v32  ;;  %vm689_vm10 = vweird.f32 %v667_v32  ;;  %v693_v2 = vand.u32 2147483647, %v667_v32 }
 0x53c   : > { %v601_v11 = vmul.f32 %v4253_v48, %v600_v33  ;;  %v4259_v50 = vpop.eup %4258  ;;  %v695_v33 = vand.u32 2147483648, %v667_v32 }
 0x53d   : > { %v673_v5 = vadd.f32 %v4251_v44, %v672_v0  ;;  %v718_v30 = vmul.f32 %v4259_v50, %v541_v47  ;;  %vm694_vm14 = vcmp.eq.f32.partialorder %v693_v2, 8.507059e+37  ;;  %v871_v50 = vmul.f32 %v5255_v35, %v5194_v55 }
 0x53e   : > { %v602_v25 = vadd.f32 %v4253_v48, %v601_v11  ;;  %v886_v11 = vmul.f32 %v5255_v35, %v5176_v36 }
 0x53f   : > { %v677_v13 = vsel %vm676_vm15, %v4251_v44, %v673_v5  ;;  %v5277_v5 = vld [vmem:[%s5043_s29 + $0x10] sm:$0xff] }
 0x540   : > { %v682_v22 = vsel %vm679_vm4, %v681_v9, %v677_v13  ;;  %v606_v14 = vsel %vm5240_vm5, %v4253_v48, %v602_v25  ;;  %v491_v9 = vmul.f32 %v5145_v17, %v5277_v5  ;;  %v561_v10 = vmul.f32 %v5149_v19, %v5277_v5 }
 0x541   : > { %v5259_v38 = vmul.f32 %v4257_v34, %v682_v22  ;;  %v611_v45 = vsel %vm608_vm12, %v610_v31, %v606_v14  ;;  %v4261_v54 = vpop.eup %4260  ;;  %v696_v22 = vor.u32 1.1754944e-38, %v695_v33  ;;  %v5296_v34 = vld [vmem:[%s5043_s29 + $0x20] sm:$0xff] }
 0x542   : > { %v715_v52 = vmul.f32 0.0, %v611_v45  ;;  %v685_v0 = vmul.f32 %v4261_v54, %v667_v32  ;;  %vm690_vm11 = vweird.f32 %v4261_v54  ;;  %v496_v16 = vadd.f32 %v5153_v21, %v491_v9 }
 0x543   : > { %v736_v43 = vmul.f32 %v5259_v38, %v5147_v18  ;;  %v805_v44 = vmul.f32 %v5259_v38, %v5156_v23  ;;  %v889_v13 = vmul.f32 %v5259_v38, %v5178_v37  ;;  %vm691_vm13 = vmor %vm689_vm10, %vm690_vm11  ;;  %v566_v25 = vadd.f32 %v5159_v24, %v561_v10 }
 0x544   : > { %v5274_v3 = vadd.f32 %v718_v30, %v715_v52  ;;  %v686_v7 = vsub.f32 1.0, %v685_v0  ;;  %v500_v14 = vadd.f32 %v5162_v26, %v496_v16  ;;  %v734_v45 = vmul.f32 %v5296_v34, %v5145_v17 }
 0x545   : > { %v739_v48 = vadd.f32 %v736_v43, %v733_v39  ;;  %v808_v49 = vadd.f32 %v805_v44, %v802_v40  ;;  %v892_v20 = vadd.f32 %v889_v13, %v886_v11  ;;  %v570_v44 = vadd.f32 %v5165_v28, %v566_v25 }
 0x546   : > { %v687_v15 = vmul.f32 %v4261_v54, %v686_v7  ;;  %v803_v47 = vmul.f32 %v5296_v34, %v5149_v19  ;;  %v874_v52 = vmul.f32 %v5259_v38, %v5196_v56 }
 0x547   : > { %v742_v53 = vadd.f32 %v739_v48, %v5162_v26  ;;  %v811_v51 = vadd.f32 %v808_v49, %v5165_v28  ;;  %v895_v27 = vadd.f32 %v892_v20, %v5189_v46  ;;  %v887_v48 = vmul.f32 %v5296_v34, %v5176_v36 }
 0x548   : > { %v688_v12 = vadd.f32 %v4261_v54, %v687_v15  ;;  %v3994_v49 = vmul.f32 -1.442695, %v500_v14 }
 0x549   : > { %v4004_v62 = vmul.f32 -1.442695, %v742_v53  ;;  %v4007_v63 = vmul.f32 -1.442695, %v811_v51  ;;  %v4010_v21 = vmul.f32 -1.442695, %v895_v27 }
 0x54a   : > { %v692_v31 = vsel %vm691_vm13, %v4261_v54, %v688_v12  ;;  %v3997_v54 = vmul.f32 -1.442695, %v570_v44 }
 0x54b   : > { %4262 = vpow2.f32 %v4004_v62  ;;  %v697_v40 = vsel %vm694_vm14, %v696_v22, %v692_v31 }
 0x54c   : > { %4264 = vpow2.f32 %v4007_v63 }
 0x54d   : > { %4266 = vtanh.f32 %v5274_v3 }
 0x551   : > { %v4263_v29 = vpop.eup %4262 }
 0x552   : > { %v754_v39 = vadd.f32 1.0, %v4263_v29 }
 0x554   : > { %4268 = vrcp.f32 %v754_v39  ;;  %v768_v25 = vand.u32 2147483648, %v754_v39  ;;  %vm762_vm15 = vweird.f32 %v754_v39  ;;  %v766_v14 = vand.u32 2147483647, %v754_v39 }
 0x556   : > { %vm767_vm9 = vcmp.eq.f32.partialorder %v766_v14, 8.507059e+37 }
 0x568   : > { %v3749_v61 = vpop.permute.xlu2 %3748 }
 0x578   : > { %v3747_v1 = vpop.permute.xlu1 %3746 }
 0x579   : > { %3755 = vxpose.xlu1.b32.start [1/3] (short) (narrow) %v3747_v1, 8  ;;  %v4265_v1 = vpop.eup %4264 }
 0x57a   : > { %v4267_v42 = vpop.eup %4266  ;;  %v5299_v43 = vadd.f32 1.0, %v4265_v1 }
 0x57b   : > { %v5302_v24 = vmul.f32 %v4267_v42, %v697_v40  ;;  %v4269_v33 = vpop.eup %4268  ;;  %v769_v40 = vor.u32 1.1754944e-38, %v768_v25 }
 0x57c   : > { %4270 = vrcp.f32 %v5299_v43  ;;  %v758_v7 = vmul.f32 %v4269_v33, %v754_v39  ;;  %v837_v29 = vand.u32 2147483648, %v5299_v43  ;;  %vm763_vm0 = vweird.f32 %v4269_v33 }
 0x57d   : > { %4272 = vpow2.f32 %v4010_v21  ;;  %v737_v53 = vmul.f32 %v5302_v24, %v5147_v18  ;;  %v806_v51 = vmul.f32 %v5302_v24, %v5156_v23  ;;  %v890_v30 = vmul.f32 %v5302_v24, %v5178_v37  ;;  %vm5329_vm4 = vmor %vm762_vm15, %vm763_vm0 }
 0x57e   : > { %4274 = vpow2.f32 %v3994_v49  ;;  %v759_v16 = vsub.f32 1.0, %v758_v7  ;;  %vm831_vm5 = vweird.f32 %v5299_v43  ;;  %v838_v39 = vor.u32 1.1754944e-38, %v837_v29 }
 0x57f   : > { %v740_v62 = vadd.f32 %v737_v53, %v734_v45  ;;  %v809_v63 = vadd.f32 %v806_v51, %v803_v47  ;;  %v893_v0 = vadd.f32 %v890_v30, %v887_v48  ;;  %4276 = vpow2.f32 %v3997_v54 }
 0x580   : > { %v5279_v6 = vpop.permute.xlu1 %3792  ;;  %v760_v31 = vmul.f32 %v4269_v33, %v759_v16  ;;  %v835_v47 = vand.u32 2147483647, %v5299_v43 }
 0x581   : > { %3756 = vxpose.xlu1.b32.cont [2/3] (short) (narrow) %v3749_v61, 8  ;;  %v877_v61 = vadd.f32 %v874_v52, %v871_v50  ;;  %v743_v38 = vadd.f32 %v740_v62, %v5162_v26  ;;  %v812_v9 = vadd.f32 %v809_v63, %v5165_v28  ;;  %v896_v10 = vadd.f32 %v893_v0, %v5189_v46 }
 0x582   : > { %v4271_v2 = vpop.eup %4270  ;;  %v761_v44 = vadd.f32 %v4269_v33, %v760_v31  ;;  %vm836_vm10 = vcmp.eq.f32.partialorder %v835_v47, 8.507059e+37  ;;  %v875_v63 = vmul.f32 %v5302_v24, %v5196_v56 }
 0x583   : > { %v880_v35 = vadd.f32 %v877_v61, %v5206_v4  ;;  %v4273_v11 = vpop.eup %4272  ;;  %v827_v13 = vmul.f32 %v4271_v2, %v5299_v43  ;;  %v4005_v15 = vmul.f32 -1.442695, %v743_v38  ;;  %v4008_v22 = vmul.f32 -1.442695, %v812_v9 }
 0x584   : > { %v5326_v20 = vadd.f32 1.0, %v4273_v11  ;;  %v4011_v12 = vmul.f32 -1.442695, %v896_v10  ;;  %v4275_v1 = vpop.eup %4274  ;;  %vm832_vm7 = vweird.f32 %v4271_v2  ;;  %v765_v50 = vsel %vm5329_vm4, %v4269_v33, %v761_v44 }
 0x585   : > { %4278 = vtanh.f32 %v880_v35  ;;  %v828_v27 = vsub.f32 1.0, %v827_v13  ;;  %vm5334_vm12 = vmor %vm831_vm5, %vm832_vm7  ;;  %v5342_v52 = vadd.f32 1.0, %v4275_v1  ;;  %v770_v51 = vsel %vm767_vm9, %v769_v40, %v765_v50  ;;  %v5375_v40 = vld [vmem:[%s5043_s29 + $0x30] sm:$0xff] }
 0x586   : > { %4280 = vpow2.f32 %v4005_v15  ;;  %v872_v43 = vmul.f32 %v5296_v34, %v5194_v55  ;;  %vm915_vm11 = vweird.f32 %v5326_v20  ;;  %v921_v24 = vand.u32 2147483648, %v5326_v20 }
 0x587   : > { %v829_v42 = vmul.f32 %v4271_v2, %v828_v27  ;;  %4282 = vrcp.f32 %v5326_v20  ;;  %v919_v10 = vand.u32 2147483647, %v5326_v20  ;;  %v974_v50 = vmul.f32 %v5375_v40, %v5145_v17 }
 0x588   : > { %4284 = vpow2.f32 %v4008_v22  ;;  %v922_v27 = vor.u32 1.1754944e-38, %v921_v24 }
 0x589   : > { %v830_v49 = vadd.f32 %v4271_v2, %v829_v42  ;;  %4286 = vpow2.f32 %v4011_v12  ;;  %v647_v12 = vmul.f32 %v5176_v36, %v5277_v5  ;;  %vm920_vm15 = vcmp.eq.f32.partialorder %v919_v10, 8.507059e+37 }
 0x58a   : > { %v3751_v32 = vpop.permute.xlu1 %3750 }
 0x58b   : > { %3757 = vxpose.xlu1.b32.end [3/3] (short) (narrow) %v3751_v32, 8  ;;  %v4277_v32 = vpop.eup %4276  ;;  %v834_v30 = vsel %vm5334_vm12, %v4271_v2, %v830_v49  ;;  %v878_v2 = vadd.f32 %v875_v63, %v872_v43  ;;  %v652_v44 = vadd.f32 %v5184_v41, %v647_v12 }
 0x58c   : > { %v4279_v48 = vpop.eup %4278  ;;  %v839_v54 = vsel %vm836_vm10, %v838_v39, %v834_v30  ;;  %v5355_v34 = vadd.f32 1.0, %v4277_v32 }
 0x58d   : > { %v4281_v53 = vpop.eup %4280  ;;  %v958_v61 = vmul.f32 %v4279_v48, %v770_v51  ;;  %v955_v0 = vmul.f32 %v839_v54, %v5225_v57  ;;  %v881_v22 = vadd.f32 %v878_v2, %v5206_v4 }
 0x58e   : > { %v755_v62 = vadd.f32 1.0, %v4281_v53  ;;  %v4283_v33 = vpop.eup %4282  ;;  %v1043_v53 = vmul.f32 %v5375_v40, %v5149_v19 }
 0x58f   : > { %v5351_v35 = vadd.f32 %v958_v61, %v955_v0  ;;  %v4285_v38 = vpop.eup %4284  ;;  %v911_v7 = vmul.f32 %v4283_v33, %v5326_v20  ;;  %vm916_vm13 = vweird.f32 %v4283_v33 }
 0x590   : > { %4288 = vrcp.f32 %v755_v62  ;;  %v4287_v9 = vpop.eup %4286  ;;  %v824_v11 = vadd.f32 1.0, %v4285_v38  ;;  %vm5366_vm14 = vmor %vm915_vm11, %vm916_vm13  ;;  %v781_v31 = vand.u32 2147483647, %v755_v62  ;;  %v783_v1 = vand.u32 2147483648, %v755_v62 }
 0x591   : > { %4290 = vrcp.f32 %v5342_v52  ;;  %v912_v57 = vsub.f32 1.0, %v911_v7  ;;  %v5361_v13 = vadd.f32 1.0, %v4287_v9  ;;  %vm777_vm0 = vweird.f32 %v755_v62 }
 0x592   : > { %4292 = vtanh.f32 %v5351_v35  ;;  %vm5380_vm5 = vcmp.eq.f32.partialorder %v781_v31, 8.507059e+37  ;;  %v784_v41 = vor.u32 1.1754944e-38, %v783_v1  ;;  %v850_v61 = vand.u32 2147483647, %v824_v11 }
 0x593   : > { %v913_v16 = vmul.f32 %v4283_v33, %v912_v57  ;;  %4294 = vrcp.f32 %v824_v11  ;;  %v852_v38 = vand.u32 2147483648, %v824_v11  ;;  %vm846_vm9 = vweird.f32 %v824_v11 }
 0x594   : > { %4296 = vrcp.f32 %v5361_v13  ;;  %vm5409_vm10 = vcmp.eq.f32.partialorder %v850_v61, 8.507059e+37  ;;  %vm930_vm13 = vweird.f32 %v5361_v13  ;;  %v554_v61 = vand.u32 2147483648, %v5342_v52 }
 0x595   : > { %v914_v14 = vadd.f32 %v4283_v33, %v913_v16  ;;  %4298 = vrcp.f32 %v5355_v34  ;;  %v656_v16 = vadd.f32 %v5189_v46, %v652_v44  ;;  %v853_v1 = vor.u32 1.1754944e-38, %v852_v38 }
 0x596   : > { %v4289_v15 = vpop.eup %4288  ;;  %4300 = vtanh.f32 %v881_v22 }
 0x597   : > { %v773_v29 = vmul.f32 %v4289_v15, %v755_v62  ;;  %v5371_v20 = vpop.eup %4290  ;;  %vm778_vm4 = vweird.f32 %v4289_v15  ;;  %v918_v32 = vsel %vm5366_vm14, %v4283_v33, %v914_v14 }
 0x598   : > { %v4293_v21 = vpop.eup %4292  ;;  %v923_v45 = vsel %vm920_vm15, %v922_v27, %v918_v32  ;;  %vm5390_vm7 = vmor %vm777_vm0, %vm778_vm4  ;;  %v544_v62 = vmul.f32 %v5371_v20, %v5342_v52  ;;  %v936_v32 = vand.u32 2147483648, %v5361_v13  ;;  %vm548_vm0 = vweird.f32 %v5342_v52 }
 0x599   : > { %v774_v42 = vsub.f32 1.0, %v773_v29  ;;  %v4295_v48 = vpop.eup %4294  ;;  %v5384_v49 = vmul.f32 %v4293_v21, %v923_v45  ;;  %vm549_vm4 = vweird.f32 %v5371_v20 }
 0x59a   : > { %v5394_v30 = vpop.eup %4296  ;;  %v842_v54 = vmul.f32 %v4295_v48, %v824_v11  ;;  %vm847_vm12 = vweird.f32 %v4295_v48  ;;  %v545_v44 = vsub.f32 1.0, %v544_v62  ;;  %v624_v62 = vand.u32 2147483648, %v5355_v34 }
 0x59b   : > { %v775_v47 = vmul.f32 %v4289_v15, %v774_v42  ;;  %v5398_v63 = vpop.eup %4298  ;;  %v977_v0 = vmul.f32 %v5384_v49, %v5147_v18  ;;  %v1046_v33 = vmul.f32 %v5384_v49, %v5156_v23  ;;  %v926_v7 = vmul.f32 %v5394_v30, %v5361_v13  ;;  %vm5421_vm11 = vmor %vm846_vm9, %vm847_vm12 }
 0x59c   : > { %v843_v9 = vsub.f32 1.0, %v842_v54  ;;  %v4301_v22 = vpop.eup %4300  ;;  %v614_v27 = vmul.f32 %v5398_v63, %v5355_v34  ;;  %v1130_v39 = vmul.f32 %v5384_v49, %v5178_v37  ;;  %vm931_vm14 = vweird.f32 %v5394_v30  ;;  %vm5468_vm12 = vmor %vm548_vm0, %vm549_vm4 }
 0x59d   : > { %v776_v43 = vadd.f32 %v4289_v15, %v775_v47  ;;  %v980_v24 = vadd.f32 %v977_v0, %v974_v50  ;;  %v1049_v57 = vadd.f32 %v1046_v33, %v1043_v53  ;;  %v927_v10 = vsub.f32 1.0, %v926_v7  ;;  %vm5446_vm15 = vmor %vm930_vm13, %vm931_vm14 }
 0x59e   : > { %v844_v12 = vmul.f32 %v4295_v48, %v843_v9  ;;  %v1127_v47 = vmul.f32 %v5375_v40, %v5176_v36  ;;  %v615_v51 = vsub.f32 1.0, %v614_v27  ;;  %v934_v33 = vand.u32 2147483647, %v5361_v13 }
 0x59f   : > { %v780_v2 = vsel %vm5390_vm7, %v4289_v15, %v776_v43  ;;  %v631_v15 = vmul.f32 %v5194_v55, %v5277_v5  ;;  %v983_v11 = vadd.f32 %v980_v24, %v5162_v26  ;;  %v1052_v29 = vadd.f32 %v1049_v57, %v5165_v28 }
 0x5a0   : > { %v785_v31 = vsel %vm5380_vm5, %v784_v41, %v780_v2  ;;  %v845_v21 = vadd.f32 %v4295_v48, %v844_v12  ;;  %v928_v42 = vmul.f32 %v5394_v30, %v927_v10  ;;  %v1133_v41 = vadd.f32 %v1130_v39, %v1127_v47 }
 0x5a1   : > { %v4016_v45 = vmul.f32 -1.442695, %v983_v11  ;;  %v4019_v5 = vmul.f32 -1.442695, %v1052_v29  ;;  %v959_v53 = vmul.f32 %v4301_v22, %v785_v31  ;;  %v546_v38 = vmul.f32 %v5371_v20, %v545_v44 }
 0x5a2   : > { %v849_v50 = vsel %vm5421_vm11, %v4295_v48, %v845_v21  ;;  %v1136_v48 = vadd.f32 %v1133_v41, %v5189_v46  ;;  %v929_v0 = vadd.f32 %v5394_v30, %v928_v42  ;;  %v616_v9 = vmul.f32 %v5398_v63, %v615_v51  ;;  %v4014_v21 = vld [vmem:[%s5043_s29 + $0x38] sm:$0xff] }
 0x5a3   : > { %4302 = vpow2.f32 %v4016_v45  ;;  %v854_v43 = vsel %vm5409_vm10, %v853_v1, %v849_v50  ;;  %v937_v57 = vor.u32 1.1754944e-38, %v936_v32  ;;  %v4000_v10 = vmul.f32 -1.442695, %v656_v16 }
 0x5a4   : > { %4304 = vpow2.f32 %v4019_v5  ;;  %v956_v54 = vmul.f32 %v854_v43, %v5274_v3  ;;  %v552_v3 = vand.u32 2147483647, %v5342_v52  ;;  %v4022_v24 = vmul.f32 -1.442695, %v1136_v48 }
 0x5a5   : > { %vm618_vm5 = vweird.f32 %v5355_v34  ;;  %vm619_vm7 = vweird.f32 %v5398_v63  ;;  %v636_v13 = vadd.f32 %v5200_v60, %v631_v15  ;;  %v933_v12 = vsel %vm5446_vm15, %v5394_v30, %v929_v0 }
 0x5a6   : > { %v5450_v2 = vadd.f32 %v959_v53, %v956_v54  ;;  %vm935_vm9 = vcmp.eq.f32.partialorder %v934_v33, 8.507059e+37  ;;  %v547_v25 = vadd.f32 %v5371_v20, %v546_v38  ;;  %vm5472_vm10 = vcmp.eq.f32.partialorder %v552_v3, 8.507059e+37  ;;  %vm5488_vm11 = vmor %vm618_vm5, %vm619_vm7 }
 0x5a7   : > { %v617_v15 = vadd.f32 %v5398_v63, %v616_v9  ;;  %v622_v30 = vand.u32 2147483647, %v5355_v34  ;;  %v1112_v31 = vmul.f32 %v5375_v40, %v5194_v55  ;;  %v1115_v52 = vmul.f32 %v5384_v49, %v5196_v56 }
 0x5a8   : > { %4306 = vtanh.f32 %v5450_v2  ;;  %v938_v1 = vsel %vm935_vm9, %v937_v57, %v933_v12  ;;  %v555_v42 = vor.u32 1.1754944e-38, %v554_v61  ;;  %v640_v32 = vadd.f32 %v5206_v4, %v636_v13 }
 0x5a9   : > { %v4303_v22 = vpop.eup %4302  ;;  %4308 = vpow2.f32 %v4022_v24  ;;  %v1118_v40 = vadd.f32 %v1115_v52, %v1112_v31  ;;  %v551_v49 = vsel %vm5468_vm12, %v5371_v20, %v547_v25  ;;  %v625_v34 = vor.u32 1.1754944e-38, %v624_v62 }
 0x5aa   : > { %v4305_v27 = vpop.eup %4304  ;;  %v5464_v16 = vadd.f32 1.0, %v4303_v22  ;;  %4310 = vpow2.f32 %v4000_v10  ;;  %v621_v45 = vsel %vm5488_vm11, %v5398_v63, %v617_v15  ;;  %vm623_vm13 = vcmp.eq.f32.partialorder %v622_v30, 8.507059e+37 }
 0x5ab   : > { %v5478_v29 = vadd.f32 1.0, %v4305_v27  ;;  %v1121_v47 = vadd.f32 %v1118_v40, %v5206_v4  ;;  %v975_v50 = vmul.f32 %v4014_v21, %v5145_v17  ;;  %v1044_v51 = vmul.f32 %v4014_v21, %v5149_v19 }
 0x5ac   : > { %4312 = vrcp.f32 %v5464_v16  ;;  %v5509_v20 = vsel %vm5472_vm10, %v555_v42, %v551_v49  ;;  %v1128_v43 = vmul.f32 %v4014_v21, %v5176_v36  ;;  %v626_v54 = vsel %vm623_vm13, %v625_v34, %v621_v45 }
 0x5ad   : > { %4314 = vrcp.f32 %v5478_v29  ;;  %v1009_v7 = vand.u32 2147483648, %v5464_v16  ;;  %v1078_v3 = vand.u32 2147483648, %v5478_v29  ;;  %vm1003_vm14 = vweird.f32 %v5464_v16 }
 0x5ae   : > { %v4307_v44 = vpop.eup %4306  ;;  %4316 = vtanh.f32 %v640_v32  ;;  %v1007_v24 = vand.u32 2147483647, %v5464_v16  ;;  %vm1072_vm0 = vweird.f32 %v5478_v29  ;;  %v1076_v27 = vand.u32 2147483647, %v5478_v29 }
 0x5af   : > { %v4309_v5 = vpop.eup %4308  ;;  %v968_v39 = vmul.f32 %v4307_v44, %v938_v1  ;;  %4318 = vtanh.f32 %v1121_v47  ;;  %v1010_v13 = vor.u32 1.1754944e-38, %v1009_v7  ;;  %v1079_v11 = vor.u32 1.1754944e-38, %v1078_v3 }
 0x5b0   : > { %v5504_v53 = vadd.f32 1.0, %v4309_v5  ;;  %v4311_v41 = vpop.eup %4310  ;;  %vm5525_vm5 = vcmp.eq.f32.partialorder %v1007_v24, 8.507059e+37  ;;  %v1113_v52 = vmul.f32 %v4014_v21, %v5194_v55  ;;  %vm5539_vm9 = vcmp.eq.f32.partialorder %v1076_v27, 8.507059e+37 }
 0x5b1   : > { %v978_v63 = vmul.f32 %v968_v39, %v5147_v18  ;;  %v1047_v62 = vmul.f32 %v968_v39, %v5156_v23  ;;  %v1131_v48 = vmul.f32 %v968_v39, %v5178_v37  ;;  %v5516_v0 = vadd.f32 1.0, %v4311_v41 }
 0x5b2   : > { %v4313_v61 = vpop.eup %4312  ;;  %4320 = vrcp.f32 %v5504_v53  ;;  %v1116_v40 = vmul.f32 %v968_v39, %v5196_v56  ;;  %vm1156_vm10 = vweird.f32 %v5504_v53 }
 0x5b3   : > { %v4315_v33 = vpop.eup %4314  ;;  %v999_v38 = vmul.f32 %v4313_v61, %v5464_v16  ;;  %v981_v9 = vadd.f32 %v978_v63, %v975_v50  ;;  %vm1004_vm15 = vweird.f32 %v4313_v61  ;;  %v1050_v31 = vadd.f32 %v1047_v62, %v1044_v51 }
 0x5b4   : > { %v1068_v57 = vmul.f32 %v4315_v33, %v5478_v29  ;;  %vm1073_vm4 = vweird.f32 %v4315_v33  ;;  %v4317_v22 = vpop.eup %4316  ;;  %vm5535_vm7 = vmor %vm1003_vm14, %vm1004_vm15  ;;  %v1134_v49 = vadd.f32 %v1131_v48, %v1128_v43  ;;  %v1119_v47 = vadd.f32 %v1116_v40, %v1113_v52 }
 0x5b5   : > { %v1000_v10 = vsub.f32 1.0, %v999_v38  ;;  %v4319_v60 = vpop.eup %4318  ;;  %v984_v30 = vadd.f32 %v981_v9, %v5162_v26  ;;  %vm5547_vm12 = vmor %vm1072_vm0, %vm1073_vm4  ;;  %v1053_v45 = vadd.f32 %v1050_v31, %v5165_v28  ;;  %4322 = vrcp.f32 %v5516_v0 }
 0x5b6   : > { %v1069_v25 = vsub.f32 1.0, %v1068_v57  ;;  %v1137_v50 = vadd.f32 %v1134_v49, %v5189_v46  ;;  %v1122_v43 = vadd.f32 %v1119_v47, %v5206_v4  ;;  %v716_v9 = vmul.f32 0.0, %v626_v54 }
 0x5b7   : > { %v1001_v15 = vmul.f32 %v4313_v61, %v1000_v10  ;;  %v4017_v44 = vmul.f32 -1.442695, %v984_v30  ;;  %v4020_v29 = vmul.f32 -1.442695, %v1053_v45  ;;  %v719_v24 = vmul.f32 %v4317_v22, %v5509_v20 }
 0x5b8   : > { %v4321_v14 = vpop.eup %4320  ;;  %v1070_v42 = vmul.f32 %v4315_v33, %v1069_v25  ;;  %v4023_v62 = vmul.f32 -1.442695, %v1137_v50  ;;  %vm704_vm15 = vweird.f32 %v5516_v0  ;;  %v708_v31 = vand.u32 2147483647, %v5516_v0 }
 0x5b9   : > { %v1002_v34 = vadd.f32 %v4313_v61, %v1001_v15  ;;  %v1152_v16 = vmul.f32 %v4321_v14, %v5504_v53  ;;  %4324 = vpow2.f32 %v4017_v44  ;;  %vm1157_vm11 = vweird.f32 %v4321_v14 }
 0x5ba   : > { %v1071_v5 = vadd.f32 %v4315_v33, %v1070_v42  ;;  %4326 = vpow2.f32 %v4020_v29  ;;  %vm5571_vm13 = vmor %vm1156_vm10, %vm1157_vm11  ;;  %v5593_v42 = vld [vmem:[%s5043_s29 + $0x48] sm:$0xff] }
 0x5bb   : > { %v1006_v39 = vsel %vm5535_vm7, %v4313_v61, %v1002_v34  ;;  %v1153_v51 = vsub.f32 1.0, %v1152_v16  ;;  %v1162_v61 = vand.u32 2147483648, %v5504_v53  ;;  %v5569_v10 = vpop.eup %4322  ;;  %4328 = vpow2.f32 %v4023_v62 }
 0x5bc   : > { %v1011_v41 = vsel %vm5525_vm5, %v1010_v13, %v1006_v39  ;;  %v1075_v63 = vsel %vm5547_vm12, %v4315_v33, %v1071_v5  ;;  %v1160_v33 = vand.u32 2147483647, %v5504_v53  ;;  %4330 = vtanh.f32 %v1122_v43 }
 0x5bd   : > { %v1080_v48 = vsel %vm5539_vm9, %v1079_v11, %v1075_v63  ;;  %v1154_v38 = vmul.f32 %v4321_v14, %v1153_v51  ;;  %v1199_v7 = vmul.f32 %v4319_v60, %v1011_v41  ;;  %v700_v20 = vmul.f32 %v5569_v10, %v5516_v0  ;;  %v5585_v60 = vld [vmem:[%s5043_s29 + $0x28] sm:$0xff] }
 0x5be   : > { %v1196_v3 = vmul.f32 %v1080_v48, %v5351_v35  ;;  %v1163_v54 = vor.u32 1.1754944e-38, %v1162_v61  ;;  %vm1161_vm14 = vcmp.eq.f32.partialorder %v1160_v33, 8.507059e+37  ;;  %v5582_v11 = vadd.f32 %v719_v24, %v716_v9 }
 0x5bf   : > { %v1155_v57 = vadd.f32 %v4321_v14, %v1154_v38  ;;  %v4325_v35 = vpop.eup %4324  ;;  %v701_v27 = vsub.f32 1.0, %v700_v20  ;;  %vm705_vm0 = vweird.f32 %v5569_v10  ;;  %v735_v40 = vmul.f32 %v5585_v60, %v5145_v17 }
 0x5c0   : > { %v5575_v12 = vadd.f32 %v1199_v7, %v1196_v3  ;;  %v996_v53 = vadd.f32 1.0, %v4325_v35  ;;  %v4327_v22 = vpop.eup %4326  ;;  %v1215_v5 = vmul.f32 %v5593_v42, %v5145_v17  ;;  %v1284_v47 = vmul.f32 %v5593_v42, %v5149_v19  ;;  %vm5614_vm4 = vmor %vm704_vm15, %vm705_vm0 }
 0x5c1   : > { %v1159_v25 = vsel %vm5571_vm13, %v4321_v14, %v1155_v57  ;;  %v5587_v15 = vadd.f32 1.0, %v4327_v22  ;;  %v702_v30 = vmul.f32 %v5569_v10, %v701_v27  ;;  %v4329_v52 = vpop.eup %4328  ;;  %v710_v14 = vand.u32 2147483648, %v5516_v0 }
 0x5c2   : > { %4332 = vtanh.f32 %v5575_v12  ;;  %v1164_v1 = vsel %vm1161_vm14, %v1163_v54, %v1159_v25  ;;  %v5598_v32 = vpop.eup %4330  ;;  %v1022_v34 = vand.u32 2147483647, %v996_v53  ;;  %v1024_v21 = vand.u32 2147483648, %v996_v53 }
 0x5c3   : > { %4334 = vrcp.f32 %v996_v53  ;;  %v5603_v16 = vadd.f32 1.0, %v4329_v52  ;;  %v703_v44 = vadd.f32 %v5569_v10, %v702_v30  ;;  %vm5618_vm5 = vcmp.eq.f32.partialorder %v708_v31, 8.507059e+37 }
 0x5c4   : > { %4336 = vtanh.f32 %v5582_v11  ;;  %v1091_v29 = vand.u32 2147483647, %v5587_v15  ;;  %v711_v41 = vor.u32 1.1754944e-38, %v710_v14  ;;  %v804_v63 = vmul.f32 %v5585_v60, %v5149_v19 }
 0x5c5   : > { %4338 = vrcp.f32 %v5587_v15  ;;  %vm1018_vm7 = vweird.f32 %v996_v53  ;;  %vm5630_vm9 = vcmp.eq.f32.partialorder %v1022_v34, 8.507059e+37  ;;  %v1025_v7 = vor.u32 1.1754944e-38, %v1024_v21 }
 0x5c6   : > { %4340 = vrcp.f32 %v5603_v16  ;;  %vm1087_vm12 = vweird.f32 %v5587_v15  ;;  %v707_v61 = vsel %vm5614_vm4, %v5569_v10, %v703_v44  ;;  %vm5639_vm11 = vcmp.eq.f32.partialorder %v1091_v29, 8.507059e+37 }
 0x5c7   : > { %v1093_v35 = vand.u32 2147483648, %v5587_v15  ;;  %v712_v20 = vsel %vm5618_vm5, %v711_v41, %v707_v61  ;;  %v1368_v30 = vmul.f32 %v5593_v42, %v5176_v36  ;;  %vm1171_vm0 = vweird.f32 %v5603_v16 }
 0x5c8   : > { %v4333_v49 = vpop.eup %4332 }
 0x5c9   : > { %v5606_v45 = vmul.f32 %v4333_v49, %v1164_v1  ;;  %v4335_v51 = vpop.eup %4334 }
 0x5ca   : > { %v1014_v62 = vmul.f32 %v4335_v51, %v996_v53  ;;  %v4337_v48 = vpop.eup %4336  ;;  %vm1019_vm10 = vweird.f32 %v4335_v51 }
 0x5cb   : > { %v1218_v0 = vmul.f32 %v5606_v45, %v5147_v18  ;;  %v1287_v43 = vmul.f32 %v5606_v45, %v5156_v23  ;;  %v4339_v3 = vpop.eup %4338  ;;  %v5648_v25 = vmul.f32 %v4337_v48, %v712_v20  ;;  %v1371_v31 = vmul.f32 %v5606_v45, %v5178_v37  ;;  %vm5657_vm13 = vmor %vm1018_vm7, %vm1019_vm10 }
 0x5cc   : > { %v1015_v57 = vsub.f32 1.0, %v1014_v62  ;;  %v1083_v33 = vmul.f32 %v4339_v3, %v5587_v15  ;;  %v5650_v27 = vpop.eup %4340  ;;  %vm1088_vm14 = vweird.f32 %v4339_v3 }
 0x5cd   : > { %v1221_v9 = vadd.f32 %v1218_v0, %v1215_v5  ;;  %v1290_v24 = vadd.f32 %v1287_v43, %v1284_v47  ;;  %v1167_v21 = vmul.f32 %v5650_v27, %v5603_v16  ;;  %v1374_v44 = vadd.f32 %v1371_v31, %v1368_v30  ;;  %vm1089_vm15 = vmor %vm1087_vm12, %vm1088_vm14  ;;  %v4026_v31 = vld [vmem:[%s5043_s29 + $0x50] sm:$0xff] }
 0x5ce   : > { %v1016_v22 = vmul.f32 %v4335_v51, %v1015_v57  ;;  %v1084_v1 = vsub.f32 1.0, %v1083_v33  ;;  %v1094_v47 = vor.u32 1.1754944e-38, %v1093_v35  ;;  %v738_v50 = vmul.f32 %v5648_v25, %v5147_v18 }
 0x5cf   : > { %v1224_v54 = vadd.f32 %v1221_v9, %v5162_v26  ;;  %v1293_v10 = vadd.f32 %v1290_v24, %v5165_v28  ;;  %v1168_v39 = vsub.f32 1.0, %v1167_v21  ;;  %v807_v29 = vmul.f32 %v5648_v25, %v5156_v23 }
 0x5d0   : > { %v1017_v34 = vadd.f32 %v4335_v51, %v1016_v22  ;;  %v1085_v5 = vmul.f32 %v4339_v3, %v1084_v1  ;;  %v1377_v41 = vadd.f32 %v1374_v44, %v5189_v46  ;;  %v741_v62 = vadd.f32 %v738_v50, %v735_v40 }
 0x5d1   : > { %v4028_v14 = vmul.f32 -1.442695, %v1224_v54  ;;  %v4031_v49 = vmul.f32 -1.442695, %v1293_v10  ;;  %v810_v9 = vadd.f32 %v807_v29, %v804_v63  ;;  %v1169_v15 = vmul.f32 %v5650_v27, %v1168_v39 }
 0x5d2   : > { %v1021_v53 = vsel %vm5657_vm13, %v4335_v51, %v1017_v34  ;;  %v1086_v43 = vadd.f32 %v4339_v3, %v1085_v5  ;;  %v4034_v48 = vmul.f32 -1.442695, %v1377_v41  ;;  %v744_v57 = vadd.f32 %v741_v62, %v5162_v26 }
 0x5d3   : > { %4342 = vpow2.f32 %v4028_v14  ;;  %v1026_v0 = vsel %vm5630_vm9, %v1025_v7, %v1021_v53  ;;  %vm1172_vm4 = vweird.f32 %v5650_v27  ;;  %v1175_v40 = vand.u32 2147483647, %v5603_v16 }
 0x5d4   : > { %4344 = vpow2.f32 %v4031_v49  ;;  %v1090_v61 = vsel %vm1089_vm15, %v4339_v3, %v1086_v43  ;;  %v1200_v24 = vmul.f32 %v5598_v32, %v1026_v0  ;;  %v1177_v63 = vand.u32 2147483648, %v5603_v16  ;;  %vm5696_vm5 = vmor %vm1171_vm0, %vm1172_vm4 }
 0x5d5   : > { %v1095_v51 = vsel %vm5639_vm11, %v1094_v47, %v1090_v61  ;;  %4346 = vpow2.f32 %v4034_v48  ;;  %v4006_v3 = vmul.f32 -1.442695, %v744_v57  ;;  %v1353_v32 = vmul.f32 %v5593_v42, %v5194_v55 }
 0x5d6   : > { %v1197_v38 = vmul.f32 %v1095_v51, %v5450_v2  ;;  %v1356_v35 = vmul.f32 %v5606_v45, %v5196_v56  ;;  %v813_v20 = vadd.f32 %v810_v9, %v5165_v28  ;;  %v1170_v54 = vadd.f32 %v5650_v27, %v1169_v15 }
 0x5d7   : > { %4348 = vpow2.f32 %v4006_v3  ;;  %v1178_v45 = vor.u32 1.1754944e-38, %v1177_v63  ;;  %vm1176_vm7 = vcmp.eq.f32.partialorder %v1175_v40, 8.507059e+37  ;;  %v1216_v34 = vmul.f32 %v4026_v31, %v5145_v17 }
 0x5d8   : > { %v5690_v10 = vadd.f32 %v1200_v24, %v1197_v38  ;;  %v1359_v22 = vadd.f32 %v1356_v35, %v1353_v32  ;;  %v4009_v52 = vmul.f32 -1.442695, %v813_v20  ;;  %v1174_v14 = vsel %vm5696_vm5, %v5650_v27, %v1170_v54  ;;  %v5787_v54 = vld [vmem:[%s5043_s29 + $0x60] sm:$0xff] }
 0x5d9   : > { %v4343_v7 = vpop.eup %4342  ;;  %v1285_v21 = vmul.f32 %v4026_v31, %v5149_v19  ;;  %v1179_v5 = vsel %vm1176_vm7, %v1178_v45, %v1174_v14  ;;  %v888_v47 = vmul.f32 %v5585_v60, %v5176_v36  ;;  %v891_v50 = vmul.f32 %v5648_v25, %v5178_v37 }
 0x5da   : > { %v4345_v33 = vpop.eup %4344  ;;  %v1236_v13 = vadd.f32 1.0, %v4343_v7  ;;  %v1362_v16 = vadd.f32 %v1359_v22, %v5206_v4  ;;  %v1369_v48 = vmul.f32 %v4026_v31, %v5176_v36 }
 0x5db   : > { %v1305_v2 = vadd.f32 1.0, %v4345_v33  ;;  %v4347_v42 = vpop.eup %4346 }
 0x5dc   : > { %4350 = vrcp.f32 %v1236_v13  ;;  %v5702_v1 = vadd.f32 1.0, %v4347_v42  ;;  %v1248_v39 = vand.u32 2147483647, %v1236_v13  ;;  %v1250_v29 = vand.u32 2147483648, %v1236_v13 }
 0x5dd   : > { %4352 = vrcp.f32 %v1305_v2  ;;  %v4349_v49 = vpop.eup %4348  ;;  %v1319_v62 = vand.u32 2147483648, %v1305_v2  ;;  %vm1244_vm9 = vweird.f32 %v1236_v13  ;;  %v1317_v9 = vand.u32 2147483647, %v1305_v2 }
 0x5de   : > { %4354 = vtanh.f32 %v5690_v10  ;;  %v5715_v41 = vadd.f32 1.0, %v4349_v49  ;;  %vm1313_vm10 = vweird.f32 %v1305_v2  ;;  %vm5720_vm13 = vcmp.eq.f32.partialorder %v1248_v39, 8.507059e+37 }
 0x5df   : > { %4356 = vrcp.f32 %v5702_v1  ;;  %v1251_v7 = vor.u32 1.1754944e-38, %v1250_v29  ;;  %vm5738_vm0 = vcmp.eq.f32.partialorder %v1317_v9, 8.507059e+37  ;;  %v1320_v22 = vor.u32 1.1754944e-38, %v1319_v62 }
 0x5e0   : > { %4358 = vpow2.f32 %v4009_v52  ;;  %vm1397_vm4 = vweird.f32 %v5702_v1  ;;  %v894_v62 = vadd.f32 %v891_v50, %v888_v47  ;;  %v1401_v38 = vand.u32 2147483647, %v5702_v1 }
 0x5e1   : > { %4360 = vtanh.f32 %v1362_v16 }
 0x5e2   : > { %v4351_v44 = vpop.eup %4350  ;;  %4362 = vrcp.f32 %v5715_v41 }
 0x5e3   : > { %v4353_v27 = vpop.eup %4352  ;;  %v1240_v53 = vmul.f32 %v4351_v44, %v1236_v13  ;;  %vm1245_vm12 = vweird.f32 %v4351_v44 }
 0x5e4   : > { %v4355_v0 = vpop.eup %4354  ;;  %v1309_v43 = vmul.f32 %v4353_v27, %v1305_v2  ;;  %vm1314_vm11 = vweird.f32 %v4353_v27  ;;  %vm5725_vm14 = vmor %vm1244_vm9, %vm1245_vm12  ;;  %v1354_v2 = vmul.f32 %v4026_v31, %v5194_v55  ;;  %vm1402_vm9 = vcmp.eq.f32.partialorder %v1401_v38, 8.507059e+37 }
 0x5e5   : > { %v1241_v61 = vsub.f32 1.0, %v1240_v53  ;;  %v1209_v15 = vmul.f32 %v4355_v0, %v1179_v5  ;;  %v5718_v24 = vpop.eup %4356  ;;  %vm5734_vm15 = vmor %vm1313_vm10, %vm1314_vm11  ;;  %vm792_vm10 = vweird.f32 %v5715_v41 }
 0x5e6   : > { %v1310_v51 = vsub.f32 1.0, %v1309_v43  ;;  %v4359_v40 = vpop.eup %4358  ;;  %v1393_v33 = vmul.f32 %v5718_v24, %v5702_v1  ;;  %vm1398_vm5 = vweird.f32 %v5718_v24 }
 0x5e7   : > { %v1242_v57 = vmul.f32 %v4351_v44, %v1241_v61  ;;  %v1219_v13 = vmul.f32 %v1209_v15, %v5147_v18  ;;  %v1288_v32 = vmul.f32 %v1209_v15, %v5156_v23  ;;  %v1372_v30 = vmul.f32 %v1209_v15, %v5178_v37  ;;  %v4361_v42 = vpop.eup %4360  ;;  %vm5769_vm7 = vmor %vm1397_vm4, %vm1398_vm5 }
 0x5e8   : > { %v1311_v3 = vmul.f32 %v4353_v27, %v1310_v51  ;;  %v1394_v52 = vsub.f32 1.0, %v1393_v33  ;;  %v5752_v43 = vpop.eup %4362  ;;  %v1357_v31 = vmul.f32 %v1209_v15, %v5196_v56 }
 0x5e9   : > { %v1243_v35 = vadd.f32 %v4351_v44, %v1242_v57  ;;  %v1222_v14 = vadd.f32 %v1219_v13, %v1216_v34  ;;  %v1291_v16 = vadd.f32 %v1288_v32, %v1285_v21  ;;  %v1375_v5 = vadd.f32 %v1372_v30, %v1369_v48 }
 0x5ea   : > { %v1312_v45 = vadd.f32 %v4353_v27, %v1311_v3  ;;  %v1395_v29 = vmul.f32 %v5718_v24, %v1394_v52  ;;  %v1403_v48 = vand.u32 2147483648, %v5702_v1  ;;  %v1360_v47 = vadd.f32 %v1357_v31, %v1354_v2 }
 0x5eb   : > { %v1247_v49 = vsel %vm5725_vm14, %v4351_v44, %v1243_v35  ;;  %v1225_v0 = vadd.f32 %v1222_v14, %v5162_v26  ;;  %v1294_v44 = vadd.f32 %v1291_v16, %v5165_v28  ;;  %v1378_v15 = vadd.f32 %v1375_v5, %v5189_v46 }
 0x5ec   : > { %v1252_v53 = vsel %vm5720_vm13, %v1251_v7, %v1247_v49  ;;  %v1316_v39 = vsel %vm5734_vm15, %v4353_v27, %v1312_v45  ;;  %v873_v27 = vmul.f32 %v5585_v60, %v5194_v55  ;;  %v1396_v57 = vadd.f32 %v5718_v24, %v1395_v29 }
 0x5ed   : > { %v1321_v34 = vsel %vm5738_vm0, %v1320_v22, %v1316_v39  ;;  %v1440_v21 = vmul.f32 %v4361_v42, %v1252_v53  ;;  %v4029_v9 = vmul.f32 -1.442695, %v1225_v0  ;;  %v4032_v51 = vmul.f32 -1.442695, %v1294_v44 }
 0x5ee   : > { %v1437_v61 = vmul.f32 %v1321_v34, %v5575_v12  ;;  %v876_v7 = vmul.f32 %v5648_v25, %v5196_v56  ;;  %v788_v12 = vmul.f32 %v5752_v43, %v5715_v41  ;;  %v4035_v50 = vmul.f32 -1.442695, %v1378_v15 }
 0x5ef   : > { %4364 = vpow2.f32 %v4029_v9  ;;  %v5777_v1 = vadd.f32 1.0, %v4359_v40  ;;  %v1404_v3 = vor.u32 1.1754944e-38, %v1403_v48  ;;  %v1400_v25 = vsel %vm5769_vm7, %v5718_v24, %v1396_v57 }
 0x5f0   : > { %v5773_v60 = vadd.f32 %v1440_v21, %v1437_v61  ;;  %4366 = vpow2.f32 %v4032_v51  ;;  %v879_v33 = vadd.f32 %v876_v7, %v873_v27  ;;  %v897_v13 = vadd.f32 %v894_v62, %v5189_v46 }
 0x5f1   : > { %v1363_v32 = vadd.f32 %v1360_v47, %v5206_v4  ;;  %v789_v35 = vsub.f32 1.0, %v788_v12  ;;  %v1405_v40 = vsel %vm1402_vm9, %v1404_v3, %v1400_v25  ;;  %v798_v22 = vand.u32 2147483648, %v5715_v41 }
 0x5f2   : > { %4368 = vtanh.f32 %v5773_v60  ;;  %v882_v24 = vadd.f32 %v879_v33, %v5206_v4  ;;  %v4012_v45 = vmul.f32 -1.442695, %v897_v13  ;;  %v867_v49 = vand.u32 2147483648, %v5777_v1 }
 0x5f3   : > { %4370 = vpow2.f32 %v4035_v50  ;;  %v790_v16 = vmul.f32 %v5752_v43, %v789_v35  ;;  %v1456_v5 = vmul.f32 %v5787_v54, %v5145_v17  ;;  %v1525_v53 = vmul.f32 %v5787_v54, %v5149_v19 }
 0x5f4   : > { %4372 = vrcp.f32 %v5777_v1  ;;  %v796_v29 = vand.u32 2147483647, %v5715_v41  ;;  %v5806_v0 = vor.u32 1.1754944e-38, %v798_v22  ;;  %v865_v31 = vand.u32 2147483647, %v5777_v1 }
 0x5f5   : > { %v4365_v20 = vpop.eup %4364  ;;  %4374 = vtanh.f32 %v1363_v32  ;;  %v5818_v62 = vadd.f32 %v5752_v43, %v790_v16  ;;  %vm861_vm12 = vweird.f32 %v5777_v1  ;;  %v5821_v48 = vor.u32 1.1754944e-38, %v867_v49 }
 0x5f6   : > { %v4367_v30 = vpop.eup %4366  ;;  %v5790_v42 = vadd.f32 1.0, %v4365_v20  ;;  %vm793_vm11 = vweird.f32 %v5752_v43  ;;  %v1609_v15 = vmul.f32 %v5787_v54, %v5176_v36  ;;  %vm5849_vm0 = vcmp.eq.f32.partialorder %v865_v31, 8.507059e+37 }
 0x5f7   : > { %v5793_v14 = vadd.f32 1.0, %v4367_v30 }
 0x5f8   : > { %v4369_v52 = vpop.eup %4368  ;;  %4376 = vrcp.f32 %v5790_v42  ;;  %v1263_v51 = vand.u32 2147483647, %v5790_v42  ;;  %vm1259_vm13 = vweird.f32 %v5790_v42  ;;  %v1265_v50 = vand.u32 2147483648, %v5790_v42 }
 0x5f9   : > { %v5797_v2 = vmul.f32 %v4369_v52, %v1405_v40  ;;  %v4371_v39 = vpop.eup %4370  ;;  %4378 = vrcp.f32 %v5793_v14  ;;  %vm1328_vm14 = vweird.f32 %v5793_v14  ;;  %v1332_v13 = vand.u32 2147483647, %v5793_v14 }
 0x5fa   : > { %v5808_v34 = vpop.eup %4372  ;;  %4380 = vtanh.f32 %v882_v24  ;;  %v5815_v27 = vadd.f32 1.0, %v4371_v39  ;;  %vm5844_vm15 = vcmp.eq.f32.partialorder %v1263_v51, 8.507059e+37  ;;  %v1334_v49 = vand.u32 2147483648, %v5793_v14 }
 0x5fb   : > { %v1459_v21 = vmul.f32 %v5797_v2, %v5147_v18  ;;  %v1528_v44 = vmul.f32 %v5797_v2, %v5156_v23  ;;  %4382 = vpow2.f32 %v4012_v45  ;;  %v857_v57 = vmul.f32 %v5808_v34, %v5777_v1  ;;  %v5828_v38 = vpop.eup %4374 }
 0x5fc   : > { %v1612_v7 = vmul.f32 %v5797_v2, %v5178_v37  ;;  %4384 = vrcp.f32 %v5815_v27  ;;  %vm5864_vm9 = vcmp.eq.f32.partialorder %v1332_v13, 8.507059e+37  ;;  %vm862_vm1 = vweird.f32 %v5808_v34 }
 0x5fd   : > { %v1462_v61 = vadd.f32 %v1459_v21, %v1456_v5  ;;  %v1531_v9 = vadd.f32 %v1528_v44, %v1525_v53  ;;  %v858_v32 = vsub.f32 1.0, %v857_v57  ;;  %v1266_v5 = vor.u32 1.1754944e-38, %v1265_v50 }
 0x5fe   : > { %v4377_v63 = vpop.eup %4376  ;;  %v1615_v25 = vadd.f32 %v1612_v7, %v1609_v15  ;;  %v1335_v7 = vor.u32 1.1754944e-38, %v1334_v49  ;;  %v1418_v22 = vand.u32 2147483648, %v5815_v27 }
 0x5ff   : > { %v1465_v47 = vadd.f32 %v1462_v61, %v5162_v26  ;;  %v1534_v12 = vadd.f32 %v1531_v9, %v5165_v28  ;;  %v4379_v3 = vpop.eup %4378  ;;  %v1255_v33 = vmul.f32 %v4377_v63, %v5790_v42  ;;  %vm1260_vm4 = vweird.f32 %v4377_v63 }
 0x600   : > { %v5842_v35 = vpop.eup %4380  ;;  %v1324_v30 = vmul.f32 %v4379_v3, %v5793_v14  ;;  %v1618_v52 = vadd.f32 %v1615_v25, %v5189_v46  ;;  %vm1329_vm5 = vweird.f32 %v4379_v3  ;;  %v859_v31 = vmul.f32 %v5808_v34, %v858_v32  ;;  %vm5860_vm7 = vmor %vm1259_vm13, %vm1260_vm4 }
 0x601   : > { %v4040_v20 = vmul.f32 -1.442695, %v1465_v47  ;;  %v4043_v40 = vmul.f32 -1.442695, %v1534_v12  ;;  %v4383_v45 = vpop.eup %4382  ;;  %v1256_v16 = vsub.f32 1.0, %v1255_v33  ;;  %vm5873_vm8 = vmor %vm1328_vm14, %vm1329_vm5  ;;  %v3789_v12 = vpop.permute.xlu2 %3788  ;;  %vm1412_vm13 = vweird.f32 %v5815_v27 }
 0x602   : > { %v1325_v53 = vsub.f32 1.0, %v1324_v30  ;;  %v5855_v39 = vpop.eup %4384  ;;  %v4046_v21 = vmul.f32 -1.442695, %v1618_v52  ;;  %v860_v47 = vadd.f32 %v5808_v34, %v859_v31  ;;  %v1416_v33 = vand.u32 2147483647, %v5815_v27  ;;  %vm5882_vm4 = vmor %vm861_vm12, %vm862_vm1 }
 0x603   : > { %4386 = vpow2.f32 %v4040_v20  ;;  %v1257_v44 = vmul.f32 %v4377_v63, %v1256_v16  ;;  %v1408_v57 = vmul.f32 %v5855_v39, %v5815_v27  ;;  %v1594_v14 = vmul.f32 %v5787_v54, %v5194_v55  ;;  %vm5897_vm5 = vmor %vm792_vm10, %vm793_vm11 }
 0x604   : > { %4388 = vpow2.f32 %v4043_v40  ;;  %v1326_v9 = vmul.f32 %v4379_v3, %v1325_v53  ;;  %v1597_v32 = vmul.f32 %v5797_v2, %v5196_v56  ;;  %vm1413_vm14 = vweird.f32 %v5855_v39 }
 0x605   : > { %4390 = vpow2.f32 %v4046_v21  ;;  %v1258_v15 = vadd.f32 %v4377_v63, %v1257_v44  ;;  %v1409_v25 = vsub.f32 1.0, %v1408_v57  ;;  %v864_v30 = vsel %vm5882_vm4, %v5808_v34, %v860_v47 }
 0x606   : > { %v1327_v50 = vadd.f32 %v4379_v3, %v1326_v9  ;;  %v1600_v49 = vadd.f32 %v1597_v32, %v1594_v14  ;;  %v795_v21 = vsel %vm5897_vm5, %v5752_v43, %v5818_v62  ;;  %vm5923_vm1 = vcmp.eq.f32.partialorder %v796_v29, 8.507059e+37  ;;  %v5938_v43 = vld [vmem:[%s5043_s29 + $0x68] sm:$0xff] }
 0x607   : > { %v1262_v20 = vsel %vm5860_vm7, %v4377_v63, %v1258_v15  ;;  %v1410_v63 = vmul.f32 %v5855_v39, %v1409_v25  ;;  %v869_v41 = vsel %vm5849_vm0, %v5821_v48, %v864_v30  ;;  %v5943_v29 = vadd.f32 1.0, %v4383_v45 }
 0x608   : > { %v1267_v54 = vsel %vm5844_vm15, %v1266_v5, %v1262_v20  ;;  %v1331_v2 = vsel %vm5873_vm8, %v4379_v3, %v1327_v50  ;;  %vm5932_vm8 = vmor %vm1412_vm13, %vm1413_vm14  ;;  %v1603_v9 = vadd.f32 %v1600_v49, %v5206_v4  ;;  %vm5950_vm12 = vcmp.eq.f32.partialorder %v1416_v33, 8.507059e+37 }
 0x609   : > { %v4387_v40 = vpop.eup %4386  ;;  %v1336_v53 = vsel %vm5864_vm9, %v1335_v7, %v1331_v2  ;;  %v1411_v3 = vadd.f32 %v5855_v39, %v1410_v63  ;;  %v1441_v61 = vmul.f32 %v5828_v38, %v1267_v54  ;;  %v1419_v15 = vor.u32 1.1754944e-38, %v1418_v22 }
 0x60a   : > { %v4389_v52 = vpop.eup %4388  ;;  %v5909_v16 = vadd.f32 1.0, %v4387_v40  ;;  %v1438_v51 = vmul.f32 %v1336_v53, %v5690_v10  ;;  %v800_v48 = vsel %vm5923_vm1, %v5806_v0, %v795_v21  ;;  %v5963_v45 = vmul.f32 %v5938_v43, %v5145_v17  ;;  %v3797_v0 = vpop.permute.xlu2 %3796 }
 0x60b   : > { %v5914_v5 = vadd.f32 1.0, %v4389_v52  ;;  %v4391_v44 = vpop.eup %4390  ;;  %v1415_v24 = vsel %vm5932_vm8, %v5855_v39, %v1411_v3  ;;  %v957_v10 = vmul.f32 %v869_v41, %v5582_v11  ;;  %v5969_v47 = vmul.f32 %v5938_v43, %v5149_v19 }
 0x60c   : > { %4392 = vrcp.f32 %v5909_v16  ;;  %v5947_v27 = vadd.f32 1.0, %v4391_v44  ;;  %v5972_v50 = vadd.f32 %v1441_v61, %v1438_v51  ;;  %v949_v39 = vand.u32 2147483647, %v5943_v29 }
 0x60d   : > { %4394 = vrcp.f32 %v5914_v5  ;;  %v960_v25 = vmul.f32 %v5842_v35, %v800_v48  ;;  %v1491_v20 = vand.u32 2147483648, %v5909_v16  ;;  %v5982_v1 = vmul.f32 %v5938_v43, %v5176_v36  ;;  %v4049_v48 = vld [vmem:[%s5043_s29 + $0x78] sm:$0xff] }
 0x60e   : > { %4396 = vrcp.f32 %v5947_v27  ;;  %vm1485_vm15 = vweird.f32 %v5909_v16  ;;  %v1489_v35 = vand.u32 2147483647, %v5909_v16  ;;  %vm1554_vm7 = vweird.f32 %v5914_v5 }
 0x60f   : > { %4398 = vrcp.f32 %v5943_v29  ;;  %vm945_vm9 = vweird.f32 %v5943_v29  ;;  %v1558_v22 = vand.u32 2147483647, %v5914_v5  ;;  %v1492_v34 = vor.u32 1.1754944e-38, %v1491_v20 }
 0x610   : > { %4400 = vtanh.f32 %v1603_v9  ;;  %v1560_v61 = vand.u32 2147483648, %v5914_v5  ;;  %vm1490_vm14 = vcmp.eq.f32.partialorder %v1489_v35, 8.507059e+37  ;;  %v951_v38 = vand.u32 2147483648, %v5943_v29  ;;  %v6041_v35 = vld [vmem:[%s5043_s29 + $0x40] sm:$0xff] }
 0x611   : > { %4402 = vtanh.f32 %v5972_v50  ;;  %vm1638_vm8 = vweird.f32 %v5947_v27 }
 0x612   : > { %v4393_v33 = vpop.eup %4392 }
 0x613   : > { %v1481_v32 = vmul.f32 %v4393_v33, %v5909_v16  ;;  %vm1486_vm0 = vweird.f32 %v4393_v33 }
 0x614   : > { %vm6003_vm13 = vmor %vm1485_vm15, %vm1486_vm0  ;;  %vm8158_vm15 = vcmp.gt.f32.partialorder %v5098_v8, 0.0 }
 0x615   : > { %v1482_v63 = vsub.f32 1.0, %v1481_v32 }
 0x617   : > { %v1483_v21 = vmul.f32 %v4393_v33, %v1482_v63  ;;  %v1642_v63 = vand.u32 2147483647, %v5947_v27 }
 0x61f   : > { %v3771_v62 = vpop.trf.xlu1 }
 0x620   : > { %v3799_v57 = vperm.slane %v3771_v62, 0  ;;  %v1484_v62 = vadd.f32 %v4393_v33, %v1483_v21 }
 0x622   : > { %v3800_v42 = vadd.f32 %v3799_v57, %v3789_v12  ;;  %v3801_v7 = vadd.f32 %v3799_v57, %v5279_v6  ;;  %v3802_v13 = vadd.f32 %v3799_v57, %v3797_v0  ;;  %v1420_v6 = vsel %vm5950_vm12, %v1419_v15, %v1415_v24  ;;  %v4395_v12 = vpop.eup %4394 }
 0x623   : > { %v5986_v54 = vpop.eup %4396  ;;  %v1550_v53 = vmul.f32 %v4395_v12, %v5914_v5  ;;  %v1488_v15 = vsel %vm6003_vm13, %v4393_v33, %v1484_v62  ;;  %v1561_v24 = vor.u32 1.1754944e-38, %v1560_v61  ;;  %v1644_v5 = vand.u32 2147483648, %v5947_v27 }
 0x624   : > { %vm3803_vm10 = vcmp.gt.f32.partialorder %v3800_v42, 0.0  ;;  %v3806_v11 = vmul.f32 0.2, %v3800_v42  ;;  %v3807_v14 = vmul.f32 0.2, %v3801_v7  ;;  %vm3804_vm11 = vcmp.gt.f32.partialorder %v3801_v7, 0.0  ;;  %v5994_v30 = vpop.eup %4398 }
 0x625   : > { %v3808_v49 = vmul.f32 0.2, %v3802_v13  ;;  %v4401_v3 = vpop.eup %4400  ;;  %v1551_v31 = vsub.f32 1.0, %v1550_v53  ;;  %v1634_v41 = vmul.f32 %v5986_v54, %v5947_v27  ;;  %vm3805_vm4 = vcmp.gt.f32.partialorder %v3802_v13, 0.0 }
 0x626   : > { %v3809_v40 = vsel %vm3803_vm10, %v3800_v42, %v3806_v11  ;;  %v3810_v59 = vsel %vm3804_vm11, %v3801_v7, %v3807_v14  ;;  %v941_v9 = vmul.f32 %v5994_v30, %v5943_v29  ;;  %v6027_v7 = vadd.f32 %v960_v25, %v957_v10  ;;  %v4403_v32 = vpop.eup %4402 }
 0x627   : > { %v5990_v2 = vsel %vm3559_vm3, %v3809_v40, -9e+15  ;;  %vm1555_vm3 = vweird.f32 %v4395_v12  ;;  %v6015_v16 = vsel %vm3560_vm2, %v3810_v59, -9e+15  ;;  %v1552_v51 = vmul.f32 %v4395_v12, %v1551_v31 }
 0x628   : > { %v3815_v52 = vsel %vm3565_vm6, %v5990_v2, -inf  ;;  %v1635_v57 = vsub.f32 1.0, %v1634_v41  ;;  %vm6023_vm5 = vmor %vm1554_vm7, %vm1555_vm3  ;;  %v942_v42 = vsub.f32 1.0, %v941_v9  ;;  %v3811_v58 = vsel %vm3805_vm4, %v3802_v13, %v3808_v49 }
 0x629   : > { %3816 = vmax.xlane.f32.xlu2 %v3815_v52  ;;  %v1493_v0 = vsel %vm1490_vm14, %v1492_v34, %v1488_v15  ;;  %v1553_v11 = vadd.f32 %v4395_v12, %v1552_v51  ;;  %vm1559_vm2 = vcmp.eq.f32.partialorder %v1558_v22, 8.507059e+37  ;;  %v3818_v14 = vsel %vm3565_vm6, %v6015_v16, -inf }
 0x62a   : > { %v1636_v33 = vmul.f32 %v5986_v54, %v1635_v57  ;;  %vm946_vm1 = vweird.f32 %v5994_v30  ;;  %v1681_v10 = vmul.f32 %v4401_v3, %v1493_v0  ;;  %v943_v25 = vmul.f32 %v5994_v30, %v942_v42 }
 0x62b   : > { %v1557_v20 = vsel %vm6023_vm5, %v4395_v12, %v1553_v11  ;;  %4404 = vtanh.f32 %v6027_v7  ;;  %vm1639_vm12 = vweird.f32 %v5986_v54  ;;  %v1450_v40 = vmul.f32 %v4403_v32, %v1420_v6  ;;  %vm6050_vm10 = vmor %vm945_vm9, %vm946_vm1 }
 0x62c   : > { %v1562_v13 = vsel %vm1559_vm2, %v1561_v24, %v1557_v20  ;;  %v944_v12 = vadd.f32 %v5994_v30, %v943_v25  ;;  %v952_v53 = vor.u32 1.1754944e-38, %v951_v38  ;;  %v1637_v22 = vadd.f32 %v5986_v54, %v1636_v33  ;;  %vm6063_vm0 = vmor %vm1638_vm8, %vm1639_vm12 }
 0x62d   : > { %v1678_v52 = vmul.f32 %v1562_v13, %v5773_v60  ;;  %v1460_v6 = vmul.f32 %v1450_v40, %v5147_v18  ;;  %v1529_v3 = vmul.f32 %v1450_v40, %v5156_v23  ;;  %vm950_vm11 = vcmp.eq.f32.partialorder %v949_v39, 8.507059e+37 }
 0x62e   : > { %v6061_v60 = vsel %vm8158_vm15, %v3811_v58, -9e+15  ;;  %v1613_v21 = vmul.f32 %v1450_v40, %v5178_v37  ;;  %v976_v34 = vmul.f32 %v6041_v35, %v5145_v17  ;;  %v1645_v44 = vor.u32 1.1754944e-38, %v1644_v5 }
 0x62f   : > { %v6067_v59 = vadd.f32 %v1681_v10, %v1678_v52  ;;  %v1463_v31 = vadd.f32 %v1460_v6, %v5963_v45  ;;  %v1532_v29 = vadd.f32 %v1529_v3, %v5969_v47  ;;  %v948_v8 = vsel %vm6050_vm10, %v5994_v30, %v944_v12 }
 0x630   : > { %vm1643_vm7 = vcmp.eq.f32.partialorder %v1642_v63, 8.507059e+37  ;;  %v1616_v61 = vadd.f32 %v1613_v21, %v5982_v1  ;;  %v953_v41 = vsel %vm950_vm11, %v952_v53, %v948_v8  ;;  %v1641_v62 = vsel %vm6063_vm0, %v5986_v54, %v1637_v22 }
 0x631   : > { %3819 = vmax.xlane.f32.xlu2 %v3818_v14  ;;  %v4405_v39 = vpop.eup %4404  ;;  %4406 = vtanh.f32 %v6067_v59  ;;  %v1466_v45 = vadd.f32 %v1463_v31, %v5162_v26  ;;  %v1535_v47 = vadd.f32 %v1532_v29, %v5165_v28  ;;  %v3821_v30 = vsel %vm3565_vm6, %v6061_v60, -inf }
 0x632   : > { %v6084_v9 = vmul.f32 %v4405_v39, %v953_v41  ;;  %v1619_v51 = vadd.f32 %v1616_v61, %v5189_v46  ;;  %v1646_v15 = vsel %vm1643_vm7, %v1645_v44, %v1641_v62  ;;  %v1697_v0 = vmul.f32 %v4049_v48, %v5145_v17 }
 0x633   : > { %v4041_v57 = vmul.f32 -1.442695, %v1466_v45  ;;  %v4044_v38 = vmul.f32 -1.442695, %v1535_v47  ;;  %v1766_v11 = vmul.f32 %v4049_v48, %v5149_v19  ;;  %v1595_v14 = vmul.f32 %v5938_v43, %v5194_v55 }
 0x634   : > { %v979_v1 = vmul.f32 %v6084_v9, %v5147_v18  ;;  %v4047_v54 = vmul.f32 -1.442695, %v1619_v51  ;;  %v1598_v33 = vmul.f32 %v1450_v40, %v5196_v56  ;;  %v1850_v10 = vmul.f32 %v4049_v48, %v5176_v36 }
 0x635   : > { %4408 = vpow2.f32 %v4041_v57  ;;  %v1045_v43 = vmul.f32 %v6041_v35, %v5149_v19  ;;  %v1048_v6 = vmul.f32 %v6084_v9, %v5156_v23  ;;  %v1129_v41 = vmul.f32 %v6041_v35, %v5176_v36 }
 0x636   : > { %v982_v24 = vadd.f32 %v979_v1, %v976_v34  ;;  %4410 = vpow2.f32 %v4044_v38  ;;  %v1601_v53 = vadd.f32 %v1598_v33, %v1595_v14  ;;  %v1132_v62 = vmul.f32 %v6084_v9, %v5178_v37 }
 0x637   : > { %v4407_v42 = vpop.eup %4406  ;;  %4412 = vpow2.f32 %v4047_v54  ;;  %v1051_v61 = vadd.f32 %v1048_v6, %v1045_v43  ;;  %v1835_v47 = vmul.f32 %v4049_v48, %v5194_v55 }
 0x638   : > { %v1690_v58 = vmul.f32 %v4407_v42, %v1646_v15  ;;  %v985_v5 = vadd.f32 %v982_v24, %v5162_v26  ;;  %v1604_v39 = vadd.f32 %v1601_v53, %v5206_v4  ;;  %v1135_v54 = vadd.f32 %v1132_v62, %v1129_v41 }
 0x639   : > { %3822 = vmax.xlane.f32.xlu2 %v3821_v30  ;;  %v1054_v15 = vadd.f32 %v1051_v61, %v5165_v28 }
 0x63a   : > { %v1700_v32 = vmul.f32 %v1690_v58, %v5147_v18  ;;  %v1769_v20 = vmul.f32 %v1690_v58, %v5156_v23  ;;  %v1853_v25 = vmul.f32 %v1690_v58, %v5178_v37  ;;  %v4018_v22 = vmul.f32 -1.442695, %v985_v5 }
 0x63b   : > { %v4409_v13 = vpop.eup %4408  ;;  %v1838_v30 = vmul.f32 %v1690_v58, %v5196_v56 }
 0x63c   : > { %v1703_v63 = vadd.f32 %v1700_v32, %v1697_v0  ;;  %v1772_v52 = vadd.f32 %v1769_v20, %v1766_v11  ;;  %v1856_v12 = vadd.f32 %v1853_v25, %v1850_v10  ;;  %v4411_v49 = vpop.eup %4410  ;;  %v1478_v40 = vadd.f32 1.0, %v4409_v13 }
 0x63d   : > { %v6109_v34 = vadd.f32 1.0, %v4411_v49  ;;  %v4413_v44 = vpop.eup %4412  ;;  %v1841_v48 = vadd.f32 %v1838_v30, %v1835_v47 }
 0x63e   : > { %v1706_v3 = vadd.f32 %v1703_v63, %v5162_v26  ;;  %v1775_v27 = vadd.f32 %v1772_v52, %v5165_v28  ;;  %v1859_v21 = vadd.f32 %v1856_v12, %v5189_v46  ;;  %4414 = vrcp.f32 %v1478_v40 }
 0x63f   : > { %4416 = vrcp.f32 %v6109_v34  ;;  %v6117_v45 = vadd.f32 1.0, %v4413_v44  ;;  %v1506_v51 = vand.u32 2147483648, %v1478_v40  ;;  %vm1500_vm9 = vweird.f32 %v1478_v40 }
 0x640   : > { %v4052_v31 = vmul.f32 -1.442695, %v1706_v3  ;;  %v4055_v29 = vmul.f32 -1.442695, %v1775_v27  ;;  %v4058_v8 = vmul.f32 -1.442695, %v1859_v21  ;;  %4418 = vpow2.f32 %v4018_v22 }
 0x641   : > { %v1504_v42 = vand.u32 2147483647, %v1478_v40  ;;  %v1507_v58 = vor.u32 1.1754944e-38, %v1506_v51  ;;  %v1573_v20 = vand.u32 2147483647, %v6109_v34  ;;  %v1575_v10 = vand.u32 2147483648, %v6109_v34 }
 0x642   : > { %4420 = vpow2.f32 %v4052_v31  ;;  %vm1569_vm13 = vweird.f32 %v6109_v34  ;;  %v1844_v22 = vadd.f32 %v1841_v48, %v5206_v4  ;;  %v4021_v21 = vmul.f32 -1.442695, %v1054_v15  ;;  %v6181_v48 = vld [vmem:[%s5043_s29 + $0x80] sm:$0xff] }
 0x643   : > { %4422 = vpow2.f32 %v4055_v29  ;;  %vm1505_vm5 = vcmp.eq.f32.partialorder %v1504_v42, 8.507059e+37  ;;  %vm6145_vm2 = vcmp.eq.f32.partialorder %v1573_v20, 8.507059e+37  ;;  %v6150_v44 = vadd.f32 %v1135_v54, %v5189_v46 }
 0x644   : > { %4424 = vpow2.f32 %v4058_v8  ;;  %v4415_v57 = vpop.eup %4414  ;;  %vm1653_vm8 = vweird.f32 %v6117_v45  ;;  %v1657_v8 = vand.u32 2147483647, %v6117_v45  ;;  %v1659_v41 = vand.u32 2147483648, %v6117_v45 }
 0x645   : > { %v4417_v38 = vpop.eup %4416  ;;  %v1496_v1 = vmul.f32 %v4415_v57, %v1478_v40  ;;  %4426 = vtanh.f32 %v1604_v39  ;;  %vm1501_vm3 = vweird.f32 %v4415_v57  ;;  %v1576_v40 = vor.u32 1.1754944e-38, %v1575_v10 }
 0x646   : > { %v4419_v24 = vpop.eup %4418  ;;  %v1565_v0 = vmul.f32 %v4417_v38, %v6109_v34  ;;  %4428 = vrcp.f32 %v6117_v45  ;;  %vm6137_vm4 = vmor %vm1500_vm9, %vm1501_vm3  ;;  %vm1570_vm14 = vweird.f32 %v4417_v38 }
 0x647   : > { %v1497_v14 = vsub.f32 1.0, %v1496_v1  ;;  %v6131_v52 = vadd.f32 1.0, %v4419_v24  ;;  %vm6157_vm1 = vmor %vm1569_vm13, %vm1570_vm14 }
 0x648   : > { %v4421_v11 = vpop.eup %4420  ;;  %v1566_v32 = vsub.f32 1.0, %v1565_v0 }
 0x649   : > { %v4423_v33 = vpop.eup %4422  ;;  %v6124_v5 = vadd.f32 1.0, %v4421_v11  ;;  %v1498_v63 = vmul.f32 %v4415_v57, %v1497_v14 }
 0x64a   : > { %v4425_v25 = vpop.eup %4424  ;;  %v6128_v13 = vadd.f32 1.0, %v4423_v33  ;;  %v1567_v49 = vmul.f32 %v4417_v38, %v1566_v32 }
 0x64b   : > { %4430 = vrcp.f32 %v6124_v5  ;;  %v6134_v12 = vadd.f32 1.0, %v4425_v25  ;;  %v4427_v53 = vpop.eup %4426  ;;  %v1499_v6 = vadd.f32 %v4415_v57, %v1498_v63  ;;  %v1732_v62 = vand.u32 2147483648, %v6124_v5 }
 0x64c   : > { %4432 = vrcp.f32 %v6128_v13  ;;  %v6143_v3 = vpop.eup %4428  ;;  %v1568_v61 = vadd.f32 %v4417_v38, %v1567_v49  ;;  %v1801_v47 = vand.u32 2147483648, %v6128_v13  ;;  %vm1726_vm12 = vweird.f32 %v6124_v5 }
 0x64d   : > { %4434 = vrcp.f32 %v6134_v12  ;;  %v1503_v31 = vsel %vm6137_vm4, %v4415_v57, %v1499_v6  ;;  %v1649_v34 = vmul.f32 %v6143_v3, %v6117_v45  ;;  %v1730_v51 = vand.u32 2147483647, %v6124_v5 }
 0x64e   : > { %v1508_v39 = vsel %vm1505_vm5, %v1507_v58, %v1503_v31  ;;  %4436 = vrcp.f32 %v6131_v52  ;;  %v1572_v57 = vsel %vm6157_vm1, %v4417_v38, %v1568_v61  ;;  %vm1795_vm10 = vweird.f32 %v6128_v13 }
 0x64f   : > { %4438 = vtanh.f32 %v1844_v22  ;;  %v1682_v1 = vmul.f32 %v4427_v53, %v1508_v39  ;;  %v1577_v24 = vsel %vm6145_vm2, %v1576_v40, %v1572_v57  ;;  %v1650_v42 = vsub.f32 1.0, %v1649_v34 }
 0x650   : > { %4440 = vpow2.f32 %v4021_v21  ;;  %vm1654_vm11 = vweird.f32 %v6143_v3  ;;  %v1679_v11 = vmul.f32 %v1577_v24, %v5972_v50  ;;  %v1799_v58 = vand.u32 2147483647, %v6128_v13 }
 0x651   : > { %v4431_v30 = vpop.eup %4430  ;;  %v1651_v33 = vmul.f32 %v6143_v3, %v1650_v42  ;;  %vm6198_vm7 = vmor %vm1653_vm8, %vm1654_vm11  ;;  %v1660_v53 = vor.u32 1.1754944e-38, %v1659_v41  ;;  %v1698_v22 = vmul.f32 %v6181_v48, %v5145_v17  ;;  %v1733_v27 = vor.u32 1.1754944e-38, %v1732_v62 }
 0x652   : > { %v4433_v15 = vpop.eup %4432  ;;  %v1722_v54 = vmul.f32 %v4431_v30, %v6124_v5  ;;  %vm1727_vm15 = vweird.f32 %v4431_v30  ;;  %v6191_v25 = vadd.f32 %v1682_v1, %v1679_v11  ;;  %vm1731_vm3 = vcmp.eq.f32.partialorder %v1730_v51, 8.507059e+37 }
 0x653   : > { %v1791_v0 = vmul.f32 %v4433_v15, %v6128_v13  ;;  %v6183_v38 = vpop.eup %4434  ;;  %vm1796_vm0 = vweird.f32 %v4433_v15  ;;  %v1652_v43 = vadd.f32 %v6143_v3, %v1651_v33  ;;  %vm6206_vm9 = vmor %vm1726_vm12, %vm1727_vm15  ;;  %v1802_v5 = vor.u32 1.1754944e-38, %v1801_v47 }
 0x654   : > { %v1723_v14 = vsub.f32 1.0, %v1722_v54  ;;  %v6187_v32 = vpop.eup %4436  ;;  %v1875_v10 = vmul.f32 %v6183_v38, %v6134_v12  ;;  %4442 = vtanh.f32 %v6191_v25  ;;  %vm6214_vm13 = vmor %vm1795_vm10, %vm1796_vm0  ;;  %vm1658_vm4 = vcmp.eq.f32.partialorder %v1657_v8, 8.507059e+37 }
 0x655   : > { %v1792_v20 = vsub.f32 1.0, %v1791_v0  ;;  %v4439_v50 = vpop.eup %4438  ;;  %vm1800_vm14 = vcmp.eq.f32.partialorder %v1799_v58, 8.507059e+37  ;;  %v1656_v61 = vsel %vm6198_vm7, %v6143_v3, %v1652_v43  ;;  %v1114_v41 = vmul.f32 %v6041_v35, %v5194_v55 }
 0x656   : > { %v1724_v63 = vmul.f32 %v4431_v30, %v1723_v14  ;;  %v1876_v21 = vsub.f32 1.0, %v1875_v10  ;;  %v4441_v45 = vpop.eup %4440  ;;  %v1029_v34 = vmul.f32 %v6187_v32, %v6131_v52  ;;  %v1117_v8 = vmul.f32 %v6084_v9, %v5196_v56 }
 0x657   : > { %v1793_v40 = vmul.f32 %v4433_v15, %v1792_v20  ;;  %v1661_v57 = vsel %vm1658_vm4, %v1660_v53, %v1656_v61  ;;  %v6232_v3 = vadd.f32 1.0, %v4441_v45  ;;  %vm1879_vm5 = vweird.f32 %v6134_v12 }
 0x658   : > { %v1725_v31 = vadd.f32 %v4431_v30, %v1724_v63  ;;  %v1877_v13 = vmul.f32 %v6183_v38, %v1876_v21  ;;  %vm1880_vm2 = vweird.f32 %v6183_v38  ;;  %v1883_v54 = vand.u32 2147483647, %v6134_v12 }
 0x659   : > { %v1794_v39 = vadd.f32 %v4433_v15, %v1793_v40  ;;  %v1885_v24 = vand.u32 2147483648, %v6134_v12  ;;  %4444 = vrcp.f32 %v6232_v3  ;;  %v1767_v0 = vmul.f32 %v6181_v48, %v5149_v19  ;;  %vm6245_vm1 = vmor %vm1879_vm5, %vm1880_vm2 }
 0x65a   : > { %v1729_v62 = vsel %vm6206_vm9, %v4431_v30, %v1725_v31  ;;  %v4443_v30 = vpop.eup %4442  ;;  %v1851_v11 = vmul.f32 %v6181_v48, %v5176_v36  ;;  %v1030_v12 = vsub.f32 1.0, %v1029_v34  ;;  %v1120_v10 = vadd.f32 %v1117_v8, %v1114_v41 }
 0x65b   : > { %v1734_v47 = vsel %vm1731_vm3, %v1733_v27, %v1729_v62  ;;  %v1798_v51 = vsel %vm6214_vm13, %v4433_v15, %v1794_v39  ;;  %v1878_v15 = vadd.f32 %v6183_v38, %v1877_v13  ;;  %v1691_v42 = vmul.f32 %v4443_v30, %v1661_v57 }
 0x65c   : > { %v1803_v1 = vsel %vm1800_vm14, %v1802_v5, %v1798_v51  ;;  %v1922_v35 = vmul.f32 %v4439_v50, %v1734_v47  ;;  %vm6254_vm8 = vcmp.eq.f32.partialorder %v1883_v54, 8.507059e+37  ;;  %v1886_v63 = vor.u32 1.1754944e-38, %v1885_v24 }
 0x65d   : > { %v1919_v9 = vmul.f32 %v1803_v1, %v6067_v59  ;;  %v1701_v59 = vmul.f32 %v1691_v42, %v5147_v18  ;;  %v1770_v33 = vmul.f32 %v1691_v42, %v5156_v23  ;;  %v1854_v20 = vmul.f32 %v1691_v42, %v5178_v37 }
 0x65e   : > { %v4024_v43 = vmul.f32 -1.442695, %v6150_v44  ;;  %v1882_v49 = vsel %vm6245_vm1, %v6183_v38, %v1878_v15  ;;  %v1037_v21 = vand.u32 2147483647, %v6131_v52  ;;  %v1031_v5 = vmul.f32 %v6187_v32, %v1030_v12  ;;  %v6273_v38 = vld [vmem:[%s5043_s29 + $0x90] sm:$0xff] }
 0x65f   : > { %v6249_v58 = vadd.f32 %v1922_v35, %v1919_v9  ;;  %v1704_v53 = vadd.f32 %v1701_v59, %v1698_v22  ;;  %v1773_v6 = vadd.f32 %v1770_v33, %v1767_v0  ;;  %v1857_v27 = vadd.f32 %v1854_v20, %v1851_v11  ;;  %v4445_v40 = vpop.eup %4444 }
 0x660   : > { %vm1033_vm12 = vweird.f32 %v6131_v52  ;;  %vm1034_vm10 = vweird.f32 %v6187_v32  ;;  %v1887_v44 = vsel %vm6254_vm8, %v1886_v63, %v1882_v49  ;;  %v1098_v22 = vmul.f32 %v4445_v40, %v6232_v3 }
 0x661   : > { %4446 = vtanh.f32 %v6249_v58  ;;  %v1707_v45 = vadd.f32 %v1704_v53, %v5162_v26  ;;  %v1776_v31 = vadd.f32 %v1773_v6, %v5165_v28  ;;  %v1860_v29 = vadd.f32 %v1857_v27, %v5189_v46  ;;  %vm6313_vm9 = vmor %vm1033_vm12, %vm1034_vm10 }
 0x662   : > { %v1108_v39 = vand.u32 2147483648, %v6232_v3  ;;  %4448 = vpow2.f32 %v4024_v43  ;;  %v1123_v13 = vadd.f32 %v1120_v10, %v5206_v4  ;;  %v1099_v8 = vsub.f32 1.0, %v1098_v22 }
 0x663   : > { %v4053_v61 = vmul.f32 -1.442695, %v1707_v45  ;;  %v4056_v41 = vmul.f32 -1.442695, %v1776_v31  ;;  %v4059_v62 = vmul.f32 -1.442695, %v1860_v29  ;;  %vm1102_vm11 = vweird.f32 %v6232_v3 }
 0x664   : > { %vm1103_vm15 = vweird.f32 %v4445_v40  ;;  %v1106_v47 = vand.u32 2147483647, %v6232_v3  ;;  %v1938_v57 = vmul.f32 %v6273_v38, %v5145_v17  ;;  %v2007_v1 = vmul.f32 %v6273_v38, %v5149_v19 }
 0x665   : > { %4450 = vpow2.f32 %v4053_v61  ;;  %v2091_v35 = vmul.f32 %v6273_v38, %v5176_v36  ;;  %v1100_v30 = vmul.f32 %v4445_v40, %v1099_v8  ;;  %v1109_v54 = vor.u32 1.1754944e-38, %v1108_v39  ;;  %vm6291_vm0 = vmor %vm1102_vm11, %vm1103_vm15 }
 0x666   : > { %4452 = vpow2.f32 %v4056_v41  ;;  %v1836_v14 = vmul.f32 %v6181_v48, %v5194_v55  ;;  %v1839_v12 = vmul.f32 %v1691_v42, %v5196_v56  ;;  %vm1107_vm7 = vcmp.eq.f32.partialorder %v1106_v47, 8.507059e+37 }
 0x667   : > { %v4447_v34 = vpop.eup %4446  ;;  %4454 = vpow2.f32 %v4059_v62  ;;  %v1101_v59 = vadd.f32 %v4445_v40, %v1100_v30  ;;  %v1032_v63 = vadd.f32 %v6187_v32, %v1031_v5  ;;  %v1039_v3 = vand.u32 2147483648, %v6131_v52 }
 0x668   : > { %v1931_v51 = vmul.f32 %v4447_v34, %v1887_v44  ;;  %v4449_v11 = vpop.eup %4448  ;;  %4456 = vtanh.f32 %v1123_v13  ;;  %v1842_v31 = vadd.f32 %v1839_v12, %v1836_v14  ;;  %vm1038_vm3 = vcmp.eq.f32.partialorder %v1037_v21, 8.507059e+37 }
 0x669   : > { %v6298_v50 = vadd.f32 1.0, %v4449_v11  ;;  %v1105_v43 = vsel %vm6291_vm0, %v4445_v40, %v1101_v59  ;;  %v1040_v61 = vor.u32 1.1754944e-38, %v1039_v3  ;;  %v1036_v62 = vsel %vm6313_vm9, %v6187_v32, %v1032_v63 }
 0x66a   : > { %v1941_v24 = vmul.f32 %v1931_v51, %v5147_v18  ;;  %v2010_v9 = vmul.f32 %v1931_v51, %v5156_v23  ;;  %v2094_v15 = vmul.f32 %v1931_v51, %v5178_v37  ;;  %v1110_v6 = vsel %vm1107_vm7, %v1109_v54, %v1105_v43 }
 0x66b   : > { %v4451_v49 = vpop.eup %4450  ;;  %4458 = vrcp.f32 %v6298_v50  ;;  %v6319_v39 = vmul.f32 %v1110_v6, %v6027_v7  ;;  %v2076_v34 = vmul.f32 %v6273_v38, %v5194_v55  ;;  %v2079_v7 = vmul.f32 %v1931_v51, %v5196_v56 }
 0x66c   : > { %v1944_v33 = vadd.f32 %v1941_v24, %v1938_v57  ;;  %v2013_v20 = vadd.f32 %v2010_v9, %v2007_v1  ;;  %v2097_v10 = vadd.f32 %v2094_v15, %v2091_v35  ;;  %v4453_v27 = vpop.eup %4452  ;;  %v6307_v45 = vadd.f32 1.0, %v4451_v49 }
 0x66d   : > { %v4455_v40 = vpop.eup %4454  ;;  %v6322_v41 = vadd.f32 1.0, %v4453_v27  ;;  %v1845_v8 = vadd.f32 %v1842_v31, %v5206_v4  ;;  %v1041_v47 = vsel %vm1038_vm3, %v1040_v61, %v1036_v62  ;;  %v2082_v57 = vadd.f32 %v2079_v7, %v2076_v34 }
 0x66e   : > { %v1947_v48 = vadd.f32 %v1944_v33, %v5162_v26  ;;  %v2016_v42 = vadd.f32 %v2013_v20, %v5165_v28  ;;  %v2100_v53 = vadd.f32 %v2097_v10, %v5189_v46  ;;  %4460 = vrcp.f32 %v6307_v45  ;;  %v4457_v13 = vpop.eup %4456 }
 0x66f   : > { %v6324_v52 = vadd.f32 1.0, %v4455_v40  ;;  %v1745_v1 = vand.u32 2147483647, %v6307_v45  ;;  %v1747_v35 = vand.u32 2147483648, %v6307_v45  ;;  %vm1741_vm13 = vweird.f32 %v6307_v45 }
 0x670   : > { %v4064_v5 = vmul.f32 -1.442695, %v1947_v48  ;;  %v4067_v44 = vmul.f32 -1.442695, %v2016_v42  ;;  %v4070_v22 = vmul.f32 -1.442695, %v2100_v53  ;;  %v1201_v24 = vmul.f32 %v4457_v13, %v1041_v47 }
 0x671   : > { %v6333_v21 = vpop.eup %4458  ;;  %v1190_v54 = vand.u32 2147483647, %v6298_v50  ;;  %v1814_v0 = vand.u32 2147483647, %v6322_v41  ;;  %v1816_v11 = vand.u32 2147483648, %v6322_v41  ;;  %v1900_v14 = vand.u32 2147483648, %v6324_v52 }
 0x672   : > { %4462 = vpow2.f32 %v4064_v5  ;;  %v1182_v38 = vmul.f32 %v6333_v21, %v6298_v50  ;;  %v2085_v33 = vadd.f32 %v2082_v57, %v5206_v4  ;;  %vm6355_vm4 = vcmp.eq.f32.partialorder %v1745_v1, 8.507059e+37 }
 0x673   : > { %4464 = vpow2.f32 %v4067_v44  ;;  %vm1186_vm14 = vweird.f32 %v6298_v50  ;;  %v1748_v43 = vor.u32 1.1754944e-38, %v1747_v35  ;;  %vm1810_vm2 = vweird.f32 %v6322_v41 }
 0x674   : > { %4466 = vpow2.f32 %v4070_v22  ;;  %v6338_v32 = vpop.eup %4460  ;;  %v1183_v49 = vsub.f32 1.0, %v1182_v38  ;;  %v1898_v42 = vand.u32 2147483647, %v6324_v52  ;;  %vm6373_vm1 = vcmp.eq.f32.partialorder %v1814_v0, 8.507059e+37 }
 0x675   : > { %4468 = vrcp.f32 %v6322_v41  ;;  %v1737_v30 = vmul.f32 %v6338_v32, %v6307_v45  ;;  %vm1742_vm5 = vweird.f32 %v6338_v32  ;;  %v1817_v31 = vor.u32 1.1754944e-38, %v1816_v11 }
 0x676   : > { %4470 = vrcp.f32 %v6324_v52  ;;  %v6377_v29 = vor.u32 1.1754944e-38, %v1900_v14  ;;  %vm1187_vm8 = vweird.f32 %v6333_v21  ;;  %vm6386_vm10 = vmor %vm1741_vm13, %vm1742_vm5  ;;  %v1184_v61 = vmul.f32 %v6333_v21, %v1183_v49 }
 0x677   : > { %4472 = vtanh.f32 %v1845_v8  ;;  %v1738_v20 = vsub.f32 1.0, %v1737_v30  ;;  %v1192_v62 = vand.u32 2147483648, %v6298_v50  ;;  %vm6397_vm15 = vcmp.eq.f32.partialorder %v1190_v54, 8.507059e+37 }
 0x678   : > { %v4463_v51 = vpop.eup %4462  ;;  %vm1894_vm7 = vweird.f32 %v6324_v52  ;;  %v6405_v1 = vadd.f32 %v1201_v24, %v6319_v39 }
 0x679   : > { %v4465_v9 = vpop.eup %4464  ;;  %v6347_v15 = vadd.f32 1.0, %v4463_v51  ;;  %v1739_v40 = vmul.f32 %v6338_v32, %v1738_v20 }
 0x67a   : > { %v4467_v12 = vpop.eup %4466  ;;  %v6352_v59 = vadd.f32 1.0, %v4465_v9 }
 0x67b   : > { %v6360_v63 = vpop.eup %4468  ;;  %4474 = vrcp.f32 %v6347_v15  ;;  %v6363_v3 = vadd.f32 1.0, %v4467_v12  ;;  %v1973_v6 = vand.u32 2147483648, %v6347_v15  ;;  %vm1967_vm12 = vweird.f32 %v6347_v15 }
 0x67c   : > { %v6365_v48 = vpop.eup %4470  ;;  %4476 = vrcp.f32 %v6352_v59  ;;  %v1806_v5 = vmul.f32 %v6360_v63, %v6322_v41  ;;  %v1971_v13 = vand.u32 2147483647, %v6347_v15  ;;  %v1740_v34 = vadd.f32 %v6338_v32, %v1739_v40 }
 0x67d   : > { %v4473_v53 = vpop.eup %4472  ;;  %4478 = vrcp.f32 %v6363_v3  ;;  %v1890_v22 = vmul.f32 %v6365_v48, %v6324_v52  ;;  %vm1811_vm11 = vweird.f32 %v6360_v63  ;;  %v1974_v47 = vor.u32 1.1754944e-38, %v1973_v6 }
 0x67e   : > { %4480 = vtanh.f32 %v2085_v33  ;;  %v1807_v7 = vsub.f32 1.0, %v1806_v5  ;;  %vm2036_vm0 = vweird.f32 %v6352_v59  ;;  %v2040_v57 = vand.u32 2147483647, %v6352_v59  ;;  %vm6420_vm3 = vmor %vm1810_vm2, %vm1811_vm11 }
 0x67f   : > { %v1744_v51 = vsel %vm6386_vm10, %v6338_v32, %v1740_v34  ;;  %v1891_v54 = vsub.f32 1.0, %v1890_v22  ;;  %v2042_v11 = vand.u32 2147483648, %v6352_v59  ;;  %v1185_v32 = vadd.f32 %v6333_v21, %v1184_v61  ;;  %vm6438_vm2 = vmor %vm1186_vm14, %vm1187_vm8  ;;  %v6459_v34 = vld [vmem:[%s5043_s29 + $0x58] sm:$0xff] }
 0x680   : > { %v1808_v30 = vmul.f32 %v6360_v63, %v1807_v7  ;;  %v1749_v33 = vsel %vm6355_vm4, %v1748_v43, %v1744_v51  ;;  %vm6430_vm13 = vcmp.eq.f32.partialorder %v1971_v13, 8.507059e+37  ;;  %4482 = vtanh.f32 %v6405_v1 }
 0x681   : > { %v4475_v8 = vpop.eup %4474  ;;  %v1892_v5 = vmul.f32 %v6365_v48, %v1891_v54  ;;  %vm6454_vm14 = vcmp.eq.f32.partialorder %v2040_v57, 8.507059e+37  ;;  %v1923_v61 = vmul.f32 %v4473_v53, %v1749_v33  ;;  %v1193_v13 = vor.u32 1.1754944e-38, %v1192_v62 }
 0x682   : > { %v4477_v35 = vpop.eup %4476  ;;  %v1963_v38 = vmul.f32 %v4475_v8, %v6347_v15  ;;  %vm1968_vm9 = vweird.f32 %v4475_v8  ;;  %v1809_v20 = vadd.f32 %v6360_v63, %v1808_v30  ;;  %v2043_v15 = vor.u32 1.1754944e-38, %v2042_v11 }
 0x683   : > { %v6412_v9 = vpop.eup %4478  ;;  %v2032_v0 = vmul.f32 %v4477_v35, %v6352_v59  ;;  %vm2037_vm5 = vweird.f32 %v4477_v35  ;;  %vm6450_vm4 = vmor %vm1967_vm12, %vm1968_vm9  ;;  %v1189_v57 = vsel %vm6438_vm2, %v6333_v21, %v1185_v32  ;;  %vm1895_vm12 = vweird.f32 %v6365_v48 }
 0x684   : > { %v4481_v24 = vpop.eup %4480  ;;  %v1964_v14 = vsub.f32 1.0, %v1963_v38  ;;  %v2116_v12 = vmul.f32 %v6412_v9, %v6363_v3  ;;  %v1813_v40 = vsel %vm6420_vm3, %v6360_v63, %v1809_v20  ;;  %vm6463_vm8 = vmor %vm2036_vm0, %vm2037_vm5  ;;  %vm2120_vm10 = vweird.f32 %v6363_v3 }
 0x685   : > { %v2033_v41 = vsub.f32 1.0, %v2032_v0  ;;  %v1818_v38 = vsel %vm6373_vm1, %v1817_v31, %v1813_v40  ;;  %v1893_v30 = vadd.f32 %v6365_v48, %v1892_v5  ;;  %v1217_v27 = vmul.f32 %v6459_v34, %v5145_v17  ;;  %vm6494_vm11 = vmor %vm1894_vm7, %vm1895_vm12  ;;  %v4073_v5 = vld [vmem:[%s5043_s29 + $0xa8] sm:$0xff] }
 0x686   : > { %v1965_v10 = vmul.f32 %v4475_v8, %v1964_v14  ;;  %v2117_v43 = vsub.f32 1.0, %v2116_v12  ;;  %v1920_v62 = vmul.f32 %v1818_v38, %v6191_v25  ;;  %v4483_v31 = vpop.eup %4482  ;;  %v1194_v25 = vsel %vm6397_vm15, %v1193_v13, %v1189_v57 }
 0x687   : > { %v2034_v50 = vmul.f32 %v4477_v35, %v2033_v41  ;;  %vm2121_vm1 = vweird.f32 %v6412_v9  ;;  %v2124_v45 = vand.u32 2147483647, %v6363_v3  ;;  %v2126_v32 = vand.u32 2147483648, %v6363_v3 }
 0x688   : > { %v1966_v7 = vadd.f32 %v4475_v8, %v1965_v10  ;;  %v2118_v53 = vmul.f32 %v6412_v9, %v2117_v43  ;;  %v6485_v0 = vadd.f32 %v1923_v61, %v1920_v62  ;;  %v1286_v12 = vmul.f32 %v6459_v34, %v5149_v19  ;;  %vm6513_vm15 = vmor %vm2120_vm10, %vm2121_vm1  ;;  %v4062_v10 = vld [vmem:[%s5043_s29 + $0x98] sm:$0xff] }
 0x689   : > { %v2035_v51 = vadd.f32 %v4477_v35, %v2034_v50  ;;  %vm1899_vm0 = vcmp.eq.f32.partialorder %v1898_v42, 8.507059e+37  ;;  %v2127_v6 = vor.u32 1.1754944e-38, %v2126_v32  ;;  %vm2125_vm7 = vcmp.eq.f32.partialorder %v2124_v45, 8.507059e+37 }
 0x68a   : > { %v1970_v59 = vsel %vm6450_vm4, %v4475_v8, %v1966_v7  ;;  %4484 = vtanh.f32 %v6485_v0  ;;  %v1939_v52 = vmul.f32 %v4062_v10, %v5145_v17  ;;  %v2008_v22 = vmul.f32 %v4062_v10, %v5149_v19 }
 0x68b   : > { %v1975_v21 = vsel %vm6430_vm13, %v1974_v47, %v1970_v59  ;;  %v2039_v54 = vsel %vm6463_vm8, %v4477_v35, %v2035_v51  ;;  %v6498_v47 = vmul.f32 %v4483_v31, %v1194_v25  ;;  %v2119_v35 = vadd.f32 %v6412_v9, %v2118_v53 }
 0x68c   : > { %v2044_v8 = vsel %vm6454_vm14, %v2043_v15, %v2039_v54  ;;  %v2163_v11 = vmul.f32 %v4481_v24, %v1975_v21  ;;  %v2179_v13 = vmul.f32 %v4073_v5, %v5145_v17  ;;  %v2248_v7 = vmul.f32 %v4073_v5, %v5149_v19 }
 0x68d   : > { %v2160_v14 = vmul.f32 %v2044_v8, %v6249_v58  ;;  %v1220_v24 = vmul.f32 %v6498_v47, %v5147_v18  ;;  %v1289_v33 = vmul.f32 %v6498_v47, %v5156_v23  ;;  %v1897_v58 = vsel %vm6494_vm11, %v6365_v48, %v1893_v30 }
 0x68e   : > { %v2123_v3 = vsel %vm6513_vm15, %v6412_v9, %v2119_v35  ;;  %v1902_v40 = vsel %vm1899_vm0, %v6377_v29, %v1897_v58  ;;  %v2092_v9 = vmul.f32 %v4062_v10, %v5176_v36  ;;  %v2332_v59 = vmul.f32 %v4073_v5, %v5176_v36 }
 0x68f   : > { %v6517_v49 = vadd.f32 %v2163_v11, %v2160_v14  ;;  %v1223_v41 = vadd.f32 %v1220_v24, %v1217_v27  ;;  %v1292_v43 = vadd.f32 %v1289_v33, %v1286_v12  ;;  %v2128_v42 = vsel %vm2125_vm7, %v2127_v6, %v2123_v3 }
 0x690   : > { %v4485_v48 = vpop.eup %4484  ;;  %v2077_v30 = vmul.f32 %v4062_v10, %v5194_v55 }
 0x691   : > { %4486 = vtanh.f32 %v6517_v49  ;;  %v1226_v44 = vadd.f32 %v1223_v41, %v5162_v26  ;;  %v1932_v50 = vmul.f32 %v4485_v48, %v1902_v40  ;;  %v1295_v61 = vadd.f32 %v1292_v43, %v5165_v28 }
 0x693   : > { %v1942_v15 = vmul.f32 %v1932_v50, %v5147_v18  ;;  %v2011_v38 = vmul.f32 %v1932_v50, %v5156_v23  ;;  %v2095_v57 = vmul.f32 %v1932_v50, %v5178_v37  ;;  %v4030_v51 = vmul.f32 -1.442695, %v1226_v44 }
 0x694   : > { %v2080_v21 = vmul.f32 %v1932_v50, %v5196_v56  ;;  %v4033_v54 = vmul.f32 -1.442695, %v1295_v61  ;;  %v1370_v50 = vmul.f32 %v6459_v34, %v5176_v36 }
 0x695   : > { %v1945_v27 = vadd.f32 %v1942_v15, %v1939_v52  ;;  %v2014_v31 = vadd.f32 %v2011_v38, %v2008_v22  ;;  %v2098_v45 = vadd.f32 %v2095_v57, %v2092_v9  ;;  %4488 = vpow2.f32 %v4030_v51 }
 0x696   : > { %v2083_v20 = vadd.f32 %v2080_v21, %v2077_v30  ;;  %v1358_v21 = vmul.f32 %v6498_v47, %v5196_v56 }
 0x697   : > { %v4487_v63 = vpop.eup %4486  ;;  %v1948_v35 = vadd.f32 %v1945_v27, %v5162_v26  ;;  %v2101_v43 = vadd.f32 %v2098_v45, %v5189_v46 }
 0x698   : > { %v2172_v62 = vmul.f32 %v4487_v63, %v2128_v42  ;;  %v2086_v42 = vadd.f32 %v2083_v20, %v5206_v4  ;;  %v1373_v63 = vmul.f32 %v6498_v47, %v5178_v37 }
 0x699   : > { %v4065_v12 = vmul.f32 -1.442695, %v1948_v35  ;;  %v4071_v9 = vmul.f32 -1.442695, %v2101_v43 }
 0x69a   : > { %v2182_v8 = vmul.f32 %v2172_v62, %v5147_v18  ;;  %v2251_v11 = vmul.f32 %v2172_v62, %v5156_v23  ;;  %v2335_v39 = vmul.f32 %v2172_v62, %v5178_v37 }
 0x69b   : > { %v4489_v48 = vpop.eup %4488 }
 0x69c   : > { %v3817_v29 = vpop.xlane.xlu2 %3816  ;;  %v2185_v32 = vadd.f32 %v2182_v8, %v2179_v13  ;;  %v2254_v14 = vadd.f32 %v2251_v11, %v2248_v7  ;;  %v2338_v24 = vadd.f32 %v2335_v39, %v2332_v59  ;;  %v2317_v13 = vmul.f32 %v4073_v5, %v5194_v55 }
 0x69d   : > { %v3824_v53 = vsub.f32 %v5990_v2, %v3817_v29  ;;  %v2017_v2 = vadd.f32 %v2014_v31, %v5165_v28  ;;  %v2320_v7 = vmul.f32 %v2172_v62, %v5196_v56  ;;  %v6566_v15 = vadd.f32 1.0, %v4489_v48 }
 0x69e   : > { %v2188_v58 = vadd.f32 %v2185_v32, %v5162_v26  ;;  %v2257_v41 = vadd.f32 %v2254_v14, %v5165_v28  ;;  %v2341_v6 = vadd.f32 %v2338_v24, %v5189_v46  ;;  %v1376_v59 = vadd.f32 %v1373_v63, %v1370_v50 }
 0x69f   : > { %v3827_v25 = vmul.f32 1.442695, %v3824_v53  ;;  %v4068_v33 = vmul.f32 -1.442695, %v2017_v2  ;;  %v2323_v29 = vadd.f32 %v2320_v7, %v2317_v13  ;;  %v1355_v31 = vmul.f32 %v6459_v34, %v5194_v55 }
 0x6a0   : > { %v4076_v40 = vmul.f32 -1.442695, %v2188_v58  ;;  %v4079_v44 = vmul.f32 -1.442695, %v2257_v41  ;;  %v4082_v52 = vmul.f32 -1.442695, %v2341_v6  ;;  %v1379_v47 = vadd.f32 %v1376_v59, %v5189_v46 }
 0x6a1   : > { %4490 = vpow2.f32 %v3827_v25  ;;  %v2326_v5 = vadd.f32 %v2323_v29, %v5206_v4  ;;  %v1280_v45 = vand.u32 2147483648, %v6566_v15  ;;  %v6595_v14 = vadd.f32 %v1358_v21, %v1355_v31 }
 0x6a2   : > { %4492 = vpow2.f32 %v4065_v12  ;;  %v1278_v6 = vand.u32 2147483647, %v6566_v15 }
 0x6a3   : > { %4494 = vpow2.f32 %v4033_v54 }
 0x6a4   : > { %v3820_v10 = vpop.xlane.xlu2 %3819  ;;  %4496 = vpow2.f32 %v4068_v33 }
 0x6a5   : > { %v3825_v3 = vsub.f32 %v6015_v16, %v3820_v10  ;;  %4498 = vpow2.f32 %v4076_v40  ;;  %v6613_v40 = vmul.f32 -1.442695, %v1379_v47 }
 0x6a6   : > { %4500 = vpow2.f32 %v4079_v44 }
 0x6a7   : > { %v6558_v22 = vpop.eup %4490  ;;  %v3829_v61 = vmul.f32 1.442695, %v3825_v3 }
 0x6a8   : > { %v3833_v16 = vsel %vm3565_vm6, %v6558_v22, 0.0  ;;  %v4493_v38 = vpop.eup %4492 }
 0x6a9   : > { %4502 = vpow2.f32 %v3829_v61  ;;  %3834 = vadd.xlane.f32.xlu2 %v3833_v16  ;;  %v4495_v57 = vpop.eup %4494  ;;  %v6569_v51 = vadd.f32 1.0, %v4493_v38 }
 0x6aa   : > { %4504 = vpow2.f32 %v4082_v52  ;;  %v4497_v53 = vpop.eup %4496  ;;  %v6593_v32 = vadd.f32 1.0, %v4495_v57 }
 0x6ab   : > { %4506 = vtanh.f32 %v2086_v42  ;;  %v4499_v30 = vpop.eup %4498  ;;  %v1986_v20 = vand.u32 2147483647, %v6569_v51  ;;  %vm1982_vm9 = vweird.f32 %v6569_v51  ;;  %v1988_v52 = vand.u32 2147483648, %v6569_v51 }
 0x6ac   : > { %v3823_v62 = vpop.xlane.xlu2 %3822  ;;  %4508 = vpow2.f32 %v4071_v9  ;;  %v4501_v54 = vpop.eup %4500  ;;  %v6577_v25 = vadd.f32 1.0, %v4499_v30  ;;  %v1349_v10 = vand.u32 2147483648, %v6593_v32  ;;  %v1347_v3 = vand.u32 2147483647, %v6593_v32 }
 0x6ad   : > { %v3826_v27 = vsub.f32 %v6061_v60, %v3823_v62  ;;  %4510 = vrcp.f32 %v6566_v15  ;;  %v6582_v39 = vadd.f32 1.0, %v4501_v54  ;;  %v6584_v60 = vadd.f32 1.0, %v4497_v53 }
 0x6ae   : > { %4512 = vrcp.f32 %v6569_v51  ;;  %v2212_v12 = vand.u32 2147483647, %v6577_v25  ;;  %v2214_v41 = vand.u32 2147483648, %v6577_v25  ;;  %vm2208_vm3 = vweird.f32 %v6577_v25 }
 0x6af   : > { %v6580_v8 = vpop.eup %4502  ;;  %v3831_v11 = vmul.f32 1.442695, %v3826_v27  ;;  %4514 = vtanh.f32 %v2326_v5  ;;  %vm2277_vm5 = vweird.f32 %v6582_v39  ;;  %v2281_v13 = vand.u32 2147483647, %v6582_v39 }
 0x6b0   : > { %v4505_v35 = vpop.eup %4504  ;;  %v3836_v34 = vsel %vm3565_vm6, %v6580_v8, 0.0  ;;  %4516 = vrcp.f32 %v6577_v25  ;;  %vm6624_vm13 = vcmp.eq.f32.partialorder %v2212_v12, 8.507059e+37  ;;  %vm6630_vm2 = vcmp.eq.f32.partialorder %v1986_v20, 8.507059e+37 }
 0x6b1   : > { %v6590_v2 = vpop.eup %4506  ;;  %4518 = vpow2.f32 %v3831_v11  ;;  %3837 = vadd.xlane.f32.xlu1 %v3836_v34  ;;  %v6599_v33 = vadd.f32 1.0, %v4505_v35  ;;  %v2215_v63 = vor.u32 1.1754944e-38, %v2214_v41  ;;  %v2283_v29 = vand.u32 2147483648, %v6582_v39 }
 0x6b2   : > { %v4509_v24 = vpop.eup %4508  ;;  %4520 = vrcp.f32 %v6582_v39  ;;  %v2055_v53 = vand.u32 2147483647, %v6584_v60  ;;  %vm6649_vm8 = vcmp.eq.f32.partialorder %v2281_v13, 8.507059e+37  ;;  %v1989_v54 = vor.u32 1.1754944e-38, %v1988_v52 }
 0x6b3   : > { %v6602_v58 = vpop.eup %4510  ;;  %4522 = vrcp.f32 %v6584_v60  ;;  %v6620_v42 = vadd.f32 1.0, %v4509_v24  ;;  %v2057_v35 = vand.u32 2147483648, %v6584_v60  ;;  %vm2051_vm11 = vweird.f32 %v6584_v60 }
 0x6b4   : > { %v6608_v43 = vpop.eup %4512  ;;  %4524 = vrcp.f32 %v6599_v33  ;;  %vm6676_vm15 = vcmp.eq.f32.partialorder %v2055_v53, 8.507059e+37  ;;  %v2367_v7 = vand.u32 2147483648, %v6599_v33 }
 0x6b5   : > { %v6615_v44 = vpop.eup %4514  ;;  %v1978_v48 = vmul.f32 %v6608_v43, %v6569_v51  ;;  %4526 = vrcp.f32 %v6593_v32  ;;  %vm1983_vm4 = vweird.f32 %v6608_v43  ;;  %v2058_v53 = vor.u32 1.1754944e-38, %v2057_v35 }
 0x6b6   : > { %v4517_v50 = vpop.eup %4516  ;;  %4528 = vrcp.f32 %v6620_v42  ;;  %vm6664_vm10 = vmor %vm1982_vm9, %vm1983_vm4  ;;  %vm2361_vm9 = vweird.f32 %v6599_v33  ;;  %vm1343_vm4 = vweird.f32 %v6593_v32  ;;  %v2368_v13 = vor.u32 1.1754944e-38, %v2367_v7 }
 0x6b7   : > { %v6634_v16 = vpop.eup %4518  ;;  %v2204_v9 = vmul.f32 %v4517_v50, %v6577_v25  ;;  %v1979_v38 = vsub.f32 1.0, %v1978_v48  ;;  %vm2209_vm14 = vweird.f32 %v4517_v50  ;;  %v2284_v48 = vor.u32 1.1754944e-38, %v2283_v29 }
 0x6b8   : > { %v4521_v57 = vpop.eup %4520  ;;  %v3839_v5 = vsel %vm3565_vm6, %v6634_v16, 0.0  ;;  %vm6670_vm1 = vmor %vm2208_vm3, %vm2209_vm14  ;;  %vm2135_vm3 = vweird.f32 %v6620_v42 }
 0x6b9   : > { %v6643_v62 = vpop.eup %4522  ;;  %3840 = vadd.xlane.f32.xlu2 %v3839_v5  ;;  %v2205_v59 = vsub.f32 1.0, %v2204_v9  ;;  %v2273_v30 = vmul.f32 %v4521_v57, %v6582_v39  ;;  %v1980_v27 = vmul.f32 %v6608_v43, %v1979_v38  ;;  %vm2278_vm12 = vweird.f32 %v4521_v57 }
 0x6ba   : > { %v6647_v31 = vpop.eup %4524  ;;  %v2047_v11 = vmul.f32 %v6643_v62, %v6584_v60  ;;  %vm6684_vm0 = vmor %vm2277_vm5, %vm2278_vm12  ;;  %vm2052_vm7 = vweird.f32 %v6643_v62  ;;  %vm1274_vm5 = vweird.f32 %v6566_v15 }
 0x6bb   : > { %v6656_v34 = vpop.eup %4526  ;;  %v2206_v47 = vmul.f32 %v4517_v50, %v2205_v59  ;;  %v2274_v24 = vsub.f32 1.0, %v2273_v30  ;;  %v2357_v12 = vmul.f32 %v6647_v31, %v6599_v33  ;;  %v1981_v52 = vadd.f32 %v6608_v43, %v1980_v27 }
 0x6bc   : > { %v2048_v5 = vsub.f32 1.0, %v2047_v11  ;;  %v6680_v59 = vpop.eup %4528  ;;  %v1270_v30 = vmul.f32 %v6602_v58, %v6566_v15  ;;  %vm2362_vm14 = vweird.f32 %v6647_v31  ;;  %v1339_v25 = vmul.f32 %v6656_v34, %v6593_v32 }
 0x6bd   : > { %v2207_v51 = vadd.f32 %v4517_v50, %v2206_v47  ;;  %v2275_v9 = vmul.f32 %v4521_v57, %v2274_v24  ;;  %v2358_v38 = vsub.f32 1.0, %v2357_v12  ;;  %v1985_v29 = vsel %vm6664_vm10, %v6608_v43, %v1981_v52 }
 0x6be   : > { %v2049_v35 = vmul.f32 %v6643_v62, %v2048_v5  ;;  %v2131_v47 = vmul.f32 %v6680_v59, %v6620_v42  ;;  %v1990_v61 = vsel %vm6630_vm2, %v1989_v54, %v1985_v29  ;;  %v1271_v41 = vsub.f32 1.0, %v1270_v30 }
 0x6bf   : > { %v2211_v27 = vsel %vm6670_vm1, %v4517_v50, %v2207_v51  ;;  %v2276_v11 = vadd.f32 %v4521_v57, %v2275_v9  ;;  %v2359_v43 = vmul.f32 %v6647_v31, %v2358_v38  ;;  %vm2136_vm2 = vweird.f32 %v6680_v59 }
 0x6c0   : > { %v2216_v39 = vsel %vm6624_vm13, %v2215_v63, %v2211_v27  ;;  %vm6716_vm13 = vmor %vm2051_vm11, %vm2052_vm7  ;;  %v2132_v20 = vsub.f32 1.0, %v2131_v47  ;;  %v2139_v38 = vand.u32 2147483647, %v6620_v42  ;;  %vm1275_vm1 = vweird.f32 %v6602_v58 }
 0x6c1   : > { %v2280_v50 = vsel %vm6684_vm0, %v4521_v57, %v2276_v11  ;;  %v2404_v24 = vmul.f32 %v6615_v44, %v2216_v39  ;;  %v2050_v57 = vadd.f32 %v6643_v62, %v2049_v35  ;;  %v2365_v44 = vand.u32 2147483647, %v6599_v33  ;;  %vm6761_vm10 = vmor %vm2135_vm3, %vm2136_vm2 }
 0x6c2   : > { %v2285_v12 = vsel %vm6649_vm8, %v2284_v48, %v2280_v50  ;;  %v2360_v60 = vadd.f32 %v6647_v31, %v2359_v43  ;;  %v2133_v21 = vmul.f32 %v6680_v59, %v2132_v20  ;;  %v2164_v48 = vmul.f32 %v6590_v2, %v1990_v61  ;;  %vm6737_vm8 = vmor %vm2361_vm9, %vm2362_vm14  ;;  %v4085_v43 = vld [vmem:[%s5043_s29 + $0xc0] sm:$0xff] }
 0x6c3   : > { %v2401_v54 = vmul.f32 %v2285_v12, %v6517_v49  ;;  %v2054_v52 = vsel %vm6716_vm13, %v6643_v62, %v2050_v57  ;;  %v2141_v62 = vand.u32 2147483648, %v6620_v42  ;;  %v1272_v33 = vmul.f32 %v6602_v58, %v1271_v41  ;;  %vm6787_vm0 = vmor %vm1274_vm5, %vm1275_vm1 }
 0x6c4   : > { %v2059_v9 = vsel %vm6676_vm15, %v2058_v53, %v2054_v52  ;;  %v2134_v5 = vadd.f32 %v6680_v59, %v2133_v21  ;;  %vm6752_vm12 = vcmp.eq.f32.partialorder %v2365_v44, 8.507059e+37  ;;  %v1340_v27 = vsub.f32 1.0, %v1339_v25 }
 0x6c5   : > { %v6741_v49 = vadd.f32 %v2404_v24, %v2401_v54  ;;  %v2161_v2 = vmul.f32 %v2059_v9, %v6485_v0  ;;  %v2364_v0 = vsel %vm6737_vm8, %v6647_v31, %v2360_v60  ;;  %vm1344_vm11 = vweird.f32 %v6656_v34  ;;  %v4074_v24 = vld [vmem:[%s5043_s29 + $0xb0] sm:$0xff] }
 0x6c6   : > { %vm6772_vm15 = vcmp.eq.f32.partialorder %v2139_v38, 8.507059e+37  ;;  %v2142_v42 = vor.u32 1.1754944e-38, %v2141_v62  ;;  %v1364_v39 = vadd.f32 %v6595_v14, %v5206_v4  ;;  %v2138_v31 = vsel %vm6761_vm10, %v6680_v59, %v2134_v5  ;;  %vm6796_vm7 = vmor %vm1343_vm4, %vm1344_vm11 }
 0x6c7   : > { %4530 = vtanh.f32 %v6741_v49  ;;  %v6769_v30 = vadd.f32 %v2164_v48, %v2161_v2  ;;  %v1273_v35 = vadd.f32 %v6602_v58, %v1272_v33  ;;  %v1341_v50 = vmul.f32 %v6656_v34, %v1340_v27 }
 0x6c8   : > { %4532 = vpow2.f32 %v6613_v40  ;;  %v2369_v14 = vsel %vm6752_vm12, %v2368_v13, %v2364_v0  ;;  %v1350_v59 = vor.u32 1.1754944e-38, %v1349_v10  ;;  %vm6805_vm9 = vcmp.eq.f32.partialorder %v1278_v6, 8.507059e+37 }
 0x6c9   : > { %4534 = vtanh.f32 %v6769_v30  ;;  %v1281_v63 = vor.u32 1.1754944e-38, %v1280_v45  ;;  %v1342_v12 = vadd.f32 %v6656_v34, %v1341_v50  ;;  %vm1348_vm3 = vcmp.eq.f32.partialorder %v1347_v3, 8.507059e+37 }
 0x6ca   : > { %v2420_v20 = vmul.f32 %v4085_v43, %v5145_v17  ;;  %v2489_v10 = vmul.f32 %v4085_v43, %v5149_v19  ;;  %v2143_v41 = vsel %vm6772_vm15, %v2142_v42, %v2138_v31  ;;  %4536 = vtanh.f32 %v1364_v39 }
 0x6cb   : > { %v2573_v44 = vmul.f32 %v4085_v43, %v5176_v36  ;;  %v1277_v15 = vsel %vm6787_vm0, %v6602_v58, %v1273_v35  ;;  %v1346_v45 = vsel %vm6796_vm7, %v6656_v34, %v1342_v12  ;;  %v2180_v3 = vmul.f32 %v4074_v24, %v5145_v17 }
 0x6cc   : > { %v2249_v7 = vmul.f32 %v4074_v24, %v5149_v19  ;;  %v1351_v54 = vsel %vm1348_vm3, %v1350_v59, %v1346_v45  ;;  %v2333_v9 = vmul.f32 %v4074_v24, %v5176_v36  ;;  %v1282_v34 = vsel %vm6805_vm9, %v1281_v63, %v1277_v15 }
 0x6cd   : > { %v4531_v57 = vpop.eup %4530  ;;  %v1439_v38 = vmul.f32 %v1351_v54, %v6405_v1  ;;  %v2318_v13 = vmul.f32 %v4074_v24, %v5194_v55  ;;  %v2558_v50 = vmul.f32 %v4085_v43, %v5194_v55 }
 0x6ce   : > { %v2413_v6 = vmul.f32 %v4531_v57, %v2369_v14  ;;  %v4533_v32 = vpop.eup %4532 }
 0x6cf   : > { %v4535_v60 = vpop.eup %4534  ;;  %v6830_v51 = vadd.f32 1.0, %v4533_v32 }
 0x6d0   : > { %v2423_v52 = vmul.f32 %v2413_v6, %v5147_v18  ;;  %v2492_v21 = vmul.f32 %v2413_v6, %v5156_v23  ;;  %v2576_v48 = vmul.f32 %v2413_v6, %v5178_v37  ;;  %v2173_v58 = vmul.f32 %v4535_v60, %v2143_v41  ;;  %v4537_v33 = vpop.eup %4536 }
 0x6d1   : > { %4538 = vrcp.f32 %v6830_v51  ;;  %v2561_v14 = vmul.f32 %v2413_v6, %v5196_v56  ;;  %v1442_v61 = vmul.f32 %v4537_v33, %v1282_v34  ;;  %vm1427_vm5 = vweird.f32 %v6830_v51  ;;  %v6869_v34 = vld [vmem:[%s5043_s29 + $0x70] sm:$0xff] }
 0x6d2   : > { %v2426_v62 = vadd.f32 %v2423_v52, %v2420_v20  ;;  %v2495_v5 = vadd.f32 %v2492_v21, %v2489_v10  ;;  %v2579_v2 = vadd.f32 %v2576_v48, %v2573_v44  ;;  %v2183_v25 = vmul.f32 %v2173_v58, %v5147_v18 }
 0x6d3   : > { %v2252_v29 = vmul.f32 %v2173_v58, %v5156_v23  ;;  %v2336_v53 = vmul.f32 %v2173_v58, %v5178_v37  ;;  %v2321_v11 = vmul.f32 %v2173_v58, %v5196_v56  ;;  %v2564_v12 = vadd.f32 %v2561_v14, %v2558_v50 }
 0x6d4   : > { %v2429_v0 = vadd.f32 %v2426_v62, %v5162_v26  ;;  %v2498_v27 = vadd.f32 %v2495_v5, %v5165_v28  ;;  %v2582_v1 = vadd.f32 %v2579_v2, %v5189_v46  ;;  %v2186_v42 = vadd.f32 %v2183_v25, %v2180_v3 }
 0x6d5   : > { %v2255_v39 = vadd.f32 %v2252_v29, %v2249_v7  ;;  %v2339_v31 = vadd.f32 %v2336_v53, %v2333_v9  ;;  %v2324_v57 = vadd.f32 %v2321_v11, %v2318_v13  ;;  %v2567_v6 = vadd.f32 %v2564_v12, %v5206_v4 }
 0x6d6   : > { %v4088_v35 = vmul.f32 -1.442695, %v2429_v0  ;;  %v4091_v47 = vmul.f32 -1.442695, %v2498_v27  ;;  %v4094_v40 = vmul.f32 -1.442695, %v2582_v1  ;;  %v2189_v59 = vadd.f32 %v2186_v42, %v5162_v26 }
 0x6d7   : > { %v2258_v24 = vadd.f32 %v2255_v39, %v5165_v28  ;;  %v6849_v63 = vpop.eup %4538  ;;  %v2342_v20 = vadd.f32 %v2339_v31, %v5189_v46  ;;  %v2327_v15 = vadd.f32 %v2324_v57, %v5206_v4  ;;  %v6856_v45 = vadd.f32 %v1442_v61, %v1439_v38 }
 0x6d8   : > { %4540 = vpow2.f32 %v4088_v35  ;;  %v4077_v10 = vmul.f32 -1.442695, %v2189_v59  ;;  %v1423_v43 = vmul.f32 %v6849_v63, %v6830_v51  ;;  %v1433_v58 = vand.u32 2147483648, %v6830_v51 }
 0x6d9   : > { %4542 = vpow2.f32 %v4091_v47  ;;  %v4080_v41 = vmul.f32 -1.442695, %v2258_v24  ;;  %v4083_v44 = vmul.f32 -1.442695, %v2342_v20  ;;  %v1431_v9 = vand.u32 2147483647, %v6830_v51 }
 0x6da   : > { %4544 = vpow2.f32 %v4094_v40  ;;  %v1424_v32 = vsub.f32 1.0, %v1423_v43  ;;  %vm1428_vm4 = vweird.f32 %v6849_v63  ;;  %v6888_v27 = vor.u32 1.1754944e-38, %v1433_v58 }
 0x6db   : > { %4546 = vpow2.f32 %v4077_v10  ;;  %v6892_v1 = vmul.f32 %v6869_v34, %v5145_v17  ;;  %vm6911_vm8 = vmor %vm1427_vm5, %vm1428_vm4  ;;  %vm6936_vm0 = vcmp.eq.f32.partialorder %v1431_v9, 8.507059e+37 }
 0x6dc   : > { %4548 = vpow2.f32 %v4080_v41  ;;  %v1425_v48 = vmul.f32 %v6849_v63, %v1424_v32 }
 0x6dd   : > { %4550 = vtanh.f32 %v2567_v6 }
 0x6de   : > { %v4541_v3 = vpop.eup %4540  ;;  %4552 = vpow2.f32 %v4083_v44  ;;  %v6886_v0 = vadd.f32 %v6849_v63, %v1425_v48 }
 0x6df   : > { %v4543_v7 = vpop.eup %4542  ;;  %v6858_v54 = vadd.f32 1.0, %v4541_v3  ;;  %4554 = vtanh.f32 %v2327_v15 }
 0x6e0   : > { %v4545_v60 = vpop.eup %4544  ;;  %v6860_v52 = vadd.f32 1.0, %v4543_v7  ;;  %v1430_v43 = vsel %vm6911_vm8, %v6849_v63, %v6886_v0 }
 0x6e1   : > { %v4547_v21 = vpop.eup %4546  ;;  %4556 = vrcp.f32 %v6858_v54  ;;  %v2453_v62 = vand.u32 2147483647, %v6858_v54  ;;  %v2455_v5 = vand.u32 2147483648, %v6858_v54  ;;  %v6873_v2 = vadd.f32 1.0, %v4545_v60 }
 0x6e2   : > { %4558 = vrcp.f32 %v6860_v52  ;;  %v4549_v38 = vpop.eup %4548  ;;  %v6875_v33 = vadd.f32 1.0, %v4547_v21  ;;  %v2522_v29 = vand.u32 2147483647, %v6860_v52  ;;  %vm2449_vm14 = vweird.f32 %v6858_v54 }
 0x6e3   : > { %v6877_v25 = vpop.eup %4550  ;;  %v6880_v13 = vadd.f32 1.0, %v4549_v38  ;;  %4560 = vtanh.f32 %v6856_v45  ;;  %vm2518_vm13 = vweird.f32 %v6860_v52  ;;  %v2524_v42 = vand.u32 2147483648, %v6860_v52 }
 0x6e4   : > { %v4553_v53 = vpop.eup %4552  ;;  %4562 = vrcp.f32 %v6873_v2  ;;  %vm6900_vm2 = vcmp.eq.f32.partialorder %v2453_v62, 8.507059e+37  ;;  %v2456_v35 = vor.u32 1.1754944e-38, %v2455_v5  ;;  %vm6916_vm12 = vcmp.eq.f32.partialorder %v2522_v29, 8.507059e+37 }
 0x6e5   : > { %v6894_v11 = vpop.eup %4554  ;;  %4564 = vrcp.f32 %v6875_v33  ;;  %v6905_v47 = vadd.f32 1.0, %v4553_v53  ;;  %v2227_v24 = vand.u32 2147483647, %v6875_v33  ;;  %v2229_v61 = vand.u32 2147483648, %v6875_v33 }
 0x6e6   : > { %4566 = vrcp.f32 %v6880_v13  ;;  %v2296_v57 = vand.u32 2147483647, %v6880_v13  ;;  %v2298_v51 = vand.u32 2147483648, %v6880_v13  ;;  %v2525_v41 = vor.u32 1.1754944e-38, %v2524_v42 }
 0x6e7   : > { %v4557_v39 = vpop.eup %4556  ;;  %4568 = vrcp.f32 %v6905_v47  ;;  %vm2223_vm11 = vweird.f32 %v6875_v33  ;;  %vm2292_vm15 = vweird.f32 %v6880_v13  ;;  %vm6942_vm7 = vcmp.eq.f32.partialorder %v2227_v24, 8.507059e+37 }
 0x6e8   : > { %v4559_v14 = vpop.eup %4558  ;;  %v2445_v40 = vmul.f32 %v4557_v39, %v6858_v54  ;;  %vm2450_vm10 = vweird.f32 %v4557_v39  ;;  %v2230_v63 = vor.u32 1.1754944e-38, %v2229_v61  ;;  %vm6954_vm3 = vcmp.eq.f32.partialorder %v2296_v57, 8.507059e+37 }
 0x6e9   : > { %v2514_v12 = vmul.f32 %v4559_v14, %v6860_v52  ;;  %v6926_v20 = vpop.eup %4560  ;;  %vm2519_vm1 = vweird.f32 %v4559_v14  ;;  %vm6949_vm9 = vmor %vm2449_vm14, %vm2450_vm10  ;;  %v2299_v62 = vor.u32 1.1754944e-38, %v2298_v51  ;;  %v2608_v53 = vand.u32 2147483648, %v6873_v2 }
 0x6ea   : > { %v2446_v10 = vsub.f32 1.0, %v2445_v40  ;;  %v6932_v6 = vpop.eup %4562  ;;  %vm6961_vm5 = vmor %vm2518_vm13, %vm2519_vm1  ;;  %vm2602_vm4 = vweird.f32 %v6873_v2  ;;  %v2606_v61 = vand.u32 2147483647, %v6873_v2  ;;  %v2380_v48 = vand.u32 2147483647, %v6905_v47 }
 0x6eb   : > { %v2515_v44 = vsub.f32 1.0, %v2514_v12  ;;  %v4565_v32 = vpop.eup %4564  ;;  %v2598_v7 = vmul.f32 %v6932_v6, %v6873_v2  ;;  %vm2603_vm8 = vweird.f32 %v6932_v6 }
 0x6ec   : > { %v2447_v3 = vmul.f32 %v4557_v39, %v2446_v10  ;;  %v4567_v21 = vpop.eup %4566  ;;  %v2219_v9 = vmul.f32 %v4565_v32, %v6875_v33  ;;  %vm2224_vm14 = vweird.f32 %v4565_v32  ;;  %vm7003_vm1 = vmor %vm2602_vm4, %vm2603_vm8 }
 0x6ed   : > { %v2516_v58 = vmul.f32 %v4559_v14, %v2515_v44  ;;  %v2599_v54 = vsub.f32 1.0, %v2598_v7  ;;  %v2288_v0 = vmul.f32 %v4567_v21, %v6880_v13  ;;  %v6967_v42 = vpop.eup %4568  ;;  %vm2293_vm13 = vweird.f32 %v4567_v21  ;;  %vm6984_vm10 = vmor %vm2223_vm11, %vm2224_vm14 }
 0x6ee   : > { %v2448_v5 = vadd.f32 %v4557_v39, %v2447_v3  ;;  %v2220_v40 = vsub.f32 1.0, %v2219_v9  ;;  %v2372_v31 = vmul.f32 %v6967_v42, %v6905_v47  ;;  %vm7012_vm11 = vcmp.eq.f32.partialorder %v2606_v61, 8.507059e+37 }
 0x6ef   : > { %v2517_v50 = vadd.f32 %v4559_v14, %v2516_v58  ;;  %v2600_v52 = vmul.f32 %v6932_v6, %v2599_v54  ;;  %v2289_v10 = vsub.f32 1.0, %v2288_v0 }
 0x6f0   : > { %v2452_v24 = vsel %vm6949_vm9, %v4557_v39, %v2448_v5  ;;  %v2221_v51 = vmul.f32 %v4565_v32, %v2220_v40  ;;  %v2382_v5 = vand.u32 2147483648, %v6905_v47 }
 0x6f1   : > { %v2457_v12 = vsel %vm6900_vm2, %v2456_v35, %v2452_v24  ;;  %v2521_v57 = vsel %vm6961_vm5, %v4559_v14, %v2517_v50  ;;  %v2290_v7 = vmul.f32 %v4567_v21, %v2289_v10  ;;  %vm2376_vm2 = vweird.f32 %v6905_v47 }
 0x6f2   : > { %v2526_v44 = vsel %vm6916_vm12, %v2525_v41, %v2521_v57  ;;  %v2645_v39 = vmul.f32 %v6877_v25, %v2457_v12  ;;  %v2222_v14 = vadd.f32 %v4565_v32, %v2221_v51  ;;  %v2601_v59 = vadd.f32 %v6932_v6, %v2600_v52  ;;  %vm6996_vm12 = vmor %vm2292_vm15, %vm2293_vm13 }
 0x6f3   : > { %v2642_v35 = vmul.f32 %v2526_v44, %v6741_v49  ;;  %v2609_v41 = vor.u32 1.1754944e-38, %v2608_v53  ;;  %v2373_v25 = vsub.f32 1.0, %v2372_v31  ;;  %v2291_v13 = vadd.f32 %v4567_v21, %v2290_v7 }
 0x6f4   : > { %v2226_v9 = vsel %vm6984_vm10, %v4565_v32, %v2222_v14  ;;  %v1435_v53 = vsel %vm6936_vm0, %v6888_v27, %v1430_v43  ;;  %v2605_v60 = vsel %vm7003_vm1, %v6932_v6, %v2601_v59  ;;  %vm2377_vm15 = vweird.f32 %v6967_v42  ;;  %v4097_v43 = vld [vmem:[%s5043_s29 + $0xd8] sm:$0xff] }
 0x6f5   : > { %v7007_v58 = vadd.f32 %v2645_v39, %v2642_v35  ;;  %v2231_v2 = vsel %vm6942_vm7, %v2230_v63, %v2226_v9  ;;  %v2374_v54 = vmul.f32 %v6967_v42, %v2373_v25  ;;  %v2295_v32 = vsel %vm6996_vm12, %v4567_v21, %v2291_v13  ;;  %vm7048_vm0 = vmor %vm2376_vm2, %vm2377_vm15 }
 0x6f6   : > { %v2405_v0 = vmul.f32 %v6894_v11, %v2231_v2  ;;  %v7027_v50 = vmul.f32 %v6926_v20, %v1435_v53  ;;  %v2300_v63 = vsel %vm6954_vm3, %v2299_v62, %v2295_v32  ;;  %v1527_v27 = vmul.f32 %v6869_v34, %v5149_v19 }
 0x6f7   : > { %4570 = vtanh.f32 %v7007_v58  ;;  %v2402_v15 = vmul.f32 %v2300_v63, %v6769_v30  ;;  %v2375_v21 = vadd.f32 %v6967_v42, %v2374_v54  ;;  %v2610_v6 = vsel %vm7012_vm11, %v2609_v41, %v2605_v60  ;;  %v4086_v41 = vld [vmem:[%s5043_s29 + $0xc8] sm:$0xff] }
 0x6f8   : > { %v1461_v11 = vmul.f32 %v7027_v50, %v5147_v18  ;;  %v1530_v20 = vmul.f32 %v7027_v50, %v5156_v23  ;;  %vm7052_vm7 = vcmp.eq.f32.partialorder %v2380_v48, 8.507059e+37  ;;  %v2661_v24 = vmul.f32 %v4097_v43, %v5145_v17 }
 0x6f9   : > { %v7056_v30 = vadd.f32 %v2405_v0, %v2402_v15  ;;  %v2730_v52 = vmul.f32 %v4097_v43, %v5149_v19  ;;  %v2383_v61 = vor.u32 1.1754944e-38, %v2382_v5  ;;  %v1611_v51 = vmul.f32 %v6869_v34, %v5176_v36 }
 0x6fa   : > { %v1464_v40 = vadd.f32 %v1461_v11, %v6892_v1  ;;  %v1533_v12 = vadd.f32 %v1530_v20, %v1527_v27  ;;  %v1614_v10 = vmul.f32 %v7027_v50, %v5178_v37  ;;  %v2814_v1 = vmul.f32 %v4097_v43, %v5176_v36 }
 0x6fb   : > { %4572 = vtanh.f32 %v7056_v30  ;;  %v2379_v39 = vsel %vm7048_vm0, %v6967_v42, %v2375_v21  ;;  %v2421_v13 = vmul.f32 %v4086_v41, %v5145_v17  ;;  %v2490_v5 = vmul.f32 %v4086_v41, %v5149_v19 }
 0x6fc   : > { %v1467_v57 = vadd.f32 %v1464_v40, %v5162_v26  ;;  %v1536_v3 = vadd.f32 %v1533_v12, %v5165_v28  ;;  %v1617_v35 = vadd.f32 %v1614_v10, %v1611_v51  ;;  %v2384_v33 = vsel %vm7052_vm7, %v2383_v61, %v2379_v39 }
 0x6fd   : > { %v4571_v47 = vpop.eup %4570  ;;  %v2574_v29 = vmul.f32 %v4086_v41, %v5176_v36  ;;  %v2799_v60 = vmul.f32 %v4097_v43, %v5194_v55  ;;  %v2559_v27 = vmul.f32 %v4086_v41, %v5194_v55 }
 0x6fe   : > { %v2654_v44 = vmul.f32 %v4571_v47, %v2610_v6  ;;  %v4042_v31 = vmul.f32 -1.442695, %v1467_v57  ;;  %v4045_v25 = vmul.f32 -1.442695, %v1536_v3  ;;  %v1620_v2 = vadd.f32 %v1617_v35, %v5189_v46 }
 0x700   : > { %v2664_v14 = vmul.f32 %v2654_v44, %v5147_v18  ;;  %v2733_v7 = vmul.f32 %v2654_v44, %v5156_v23  ;;  %v2817_v59 = vmul.f32 %v2654_v44, %v5178_v37  ;;  %4574 = vpow2.f32 %v4042_v31 }
 0x701   : > { %v4573_v42 = vpop.eup %4572  ;;  %v2802_v63 = vmul.f32 %v2654_v44, %v5196_v56  ;;  %4576 = vpow2.f32 %v4045_v25 }
 0x702   : > { %v2667_v48 = vadd.f32 %v2664_v14, %v2661_v24  ;;  %v2736_v49 = vadd.f32 %v2733_v7, %v2730_v52  ;;  %v2820_v9 = vadd.f32 %v2817_v59, %v2814_v1  ;;  %v2414_v0 = vmul.f32 %v4573_v42, %v2384_v33 }
 0x703   : > { %v2805_v38 = vadd.f32 %v2802_v63, %v2799_v60  ;;  %v4048_v24 = vmul.f32 -1.442695, %v1620_v2 }
 0x704   : > { %v2670_v54 = vadd.f32 %v2667_v48, %v5162_v26  ;;  %v2739_v53 = vadd.f32 %v2736_v49, %v5165_v28  ;;  %v2823_v32 = vadd.f32 %v2820_v9, %v5189_v46  ;;  %v2424_v21 = vmul.f32 %v2414_v0, %v5147_v18 }
 0x705   : > { %v2493_v62 = vmul.f32 %v2414_v0, %v5156_v23  ;;  %v2577_v40 = vmul.f32 %v2414_v0, %v5178_v37  ;;  %v2562_v43 = vmul.f32 %v2414_v0, %v5196_v56  ;;  %v2808_v12 = vadd.f32 %v2805_v38, %v5206_v4 }
 0x706   : > { %v4100_v15 = vmul.f32 -1.442695, %v2670_v54  ;;  %v4103_v11 = vmul.f32 -1.442695, %v2739_v53  ;;  %v4106_v20 = vmul.f32 -1.442695, %v2823_v32  ;;  %v4575_v6 = vpop.eup %4574  ;;  %v2427_v52 = vadd.f32 %v2424_v21, %v2421_v13 }
 0x707   : > { %v7092_v61 = vadd.f32 1.0, %v4575_v6  ;;  %v2496_v47 = vadd.f32 %v2493_v62, %v2490_v5  ;;  %v2580_v51 = vadd.f32 %v2577_v40, %v2574_v29  ;;  %v4577_v10 = vpop.eup %4576  ;;  %v2565_v39 = vadd.f32 %v2562_v43, %v2559_v27 }
 0x708   : > { %4578 = vpow2.f32 %v4100_v15  ;;  %v2430_v57 = vadd.f32 %v2427_v52, %v5162_v26  ;;  %v1596_v9 = vmul.f32 %v6869_v34, %v5194_v55  ;;  %v7114_v5 = vadd.f32 1.0, %v4577_v10 }
 0x709   : > { %4580 = vpow2.f32 %v4103_v11  ;;  %v2499_v44 = vadd.f32 %v2496_v47, %v5165_v28  ;;  %v2583_v3 = vadd.f32 %v2580_v51, %v5189_v46  ;;  %v2568_v25 = vadd.f32 %v2565_v39, %v5206_v4  ;;  %v7155_v51 = vld [vmem:[%s5043_s29 + $0xf0] sm:$0xff] }
 0x70a   : > { %4582 = vpow2.f32 %v4106_v20  ;;  %v4089_v1 = vmul.f32 -1.442695, %v2430_v57  ;;  %v1521_v48 = vand.u32 2147483648, %v7092_v61  ;;  %v1519_v13 = vand.u32 2147483647, %v7092_v61 }
 0x70b   : > { %4584 = vpow2.f32 %v4048_v24  ;;  %v4092_v31 = vmul.f32 -1.442695, %v2499_v44  ;;  %v4095_v14 = vmul.f32 -1.442695, %v2583_v3  ;;  %v1599_v29 = vmul.f32 %v7027_v50, %v5196_v56 }
 0x70c   : > { %4586 = vrcp.f32 %v7092_v61  ;;  %v7126_v63 = vor.u32 1.1754944e-38, %v1521_v48  ;;  %vm1515_vm15 = vweird.f32 %v7092_v61 }
 0x70d   : > { %4588 = vtanh.f32 %v2808_v12  ;;  %v7141_v38 = vadd.f32 %v1599_v29, %v1596_v9 }
 0x70e   : > { %v4579_v35 = vpop.eup %4578  ;;  %4590 = vpow2.f32 %v4089_v1 }
 0x70f   : > { %v4581_v7 = vpop.eup %4580  ;;  %v7099_v59 = vadd.f32 1.0, %v4579_v35  ;;  %4592 = vpow2.f32 %v4092_v31 }
 0x710   : > { %v4583_v41 = vpop.eup %4582  ;;  %v7101_v33 = vadd.f32 1.0, %v4581_v7  ;;  %4594 = vpow2.f32 %v4095_v14  ;;  %v7170_v7 = vmul.f32 %v7155_v51, %v5145_v17 }
 0x711   : > { %v7105_v49 = vpop.eup %4584  ;;  %4596 = vrcp.f32 %v7099_v59  ;;  %v2694_v54 = vand.u32 2147483647, %v7099_v59  ;;  %v2696_v53 = vand.u32 2147483648, %v7099_v59  ;;  %v7123_v34 = vadd.f32 1.0, %v4583_v41 }
 0x712   : > { %v7110_v42 = vpop.eup %4586  ;;  %4598 = vrcp.f32 %v7101_v33  ;;  %v2763_v32 = vand.u32 2147483647, %v7101_v33  ;;  %v2765_v60 = vand.u32 2147483648, %v7101_v33  ;;  %vm2690_vm9 = vweird.f32 %v7099_v59 }
 0x713   : > { %v7118_v2 = vpop.eup %4588  ;;  %4600 = vtanh.f32 %v2568_v25  ;;  %v7134_v11 = vmul.f32 %v7110_v42, %v7092_v61  ;;  %vm2759_vm3 = vweird.f32 %v7101_v33  ;;  %vm7143_vm5 = vcmp.eq.f32.partialorder %v2694_v54, 8.507059e+37 }
 0x714   : > { %v4591_v0 = vpop.eup %4590  ;;  %4602 = vrcp.f32 %v7123_v34  ;;  %v2697_v24 = vor.u32 1.1754944e-38, %v2696_v53  ;;  %vm7147_vm4 = vcmp.eq.f32.partialorder %v2763_v32, 8.507059e+37  ;;  %v2766_v47 = vor.u32 1.1754944e-38, %v2765_v60 }
 0x715   : > { %v4593_v15 = vpop.eup %4592  ;;  %v7130_v50 = vadd.f32 1.0, %v4591_v0  ;;  %v2849_v57 = vand.u32 2147483648, %v7123_v34  ;;  %v2847_v44 = vand.u32 2147483647, %v7123_v34  ;;  %v1512_v39 = vsub.f32 1.0, %v7134_v11 }
 0x716   : > { %v4595_v21 = vpop.eup %4594  ;;  %v7139_v6 = vadd.f32 1.0, %v4593_v15  ;;  %vm2843_vm13 = vweird.f32 %v7123_v34  ;;  %vm1516_vm0 = vweird.f32 %v7110_v42 }
 0x717   : > { %v4597_v62 = vpop.eup %4596  ;;  %4604 = vrcp.f32 %v7130_v50  ;;  %v2468_v1 = vand.u32 2147483647, %v7130_v50  ;;  %v7172_v41 = vadd.f32 1.0, %v4595_v21  ;;  %v7176_v29 = vor.u32 1.1754944e-38, %v2849_v57 }
 0x718   : > { %v4599_v43 = vpop.eup %4598  ;;  %v2686_v12 = vmul.f32 %v4597_v62, %v7099_v59  ;;  %4606 = vrcp.f32 %v7114_v5  ;;  %vm2691_vm14 = vweird.f32 %v4597_v62  ;;  %vm2464_vm10 = vweird.f32 %v7130_v50 }
 0x719   : > { %v2755_v10 = vmul.f32 %v4599_v43, %v7101_v33  ;;  %v7162_v3 = vpop.eup %4600  ;;  %4608 = vrcp.f32 %v7139_v6  ;;  %vm2760_vm8 = vweird.f32 %v4599_v43  ;;  %vm7182_vm2 = vmor %vm2690_vm9, %vm2691_vm14  ;;  %vm7186_vm12 = vcmp.eq.f32.partialorder %v2847_v44, 8.507059e+37 }
 0x71a   : > { %v2687_v31 = vsub.f32 1.0, %v2686_v12  ;;  %v7166_v35 = vpop.eup %4602  ;;  %vm7190_vm1 = vcmp.eq.f32.partialorder %v2468_v1, 8.507059e+37  ;;  %v2470_v15 = vand.u32 2147483648, %v7130_v50  ;;  %vm7200_vm11 = vmor %vm2759_vm3, %vm2760_vm8  ;;  %v2537_v44 = vand.u32 2147483647, %v7139_v6 }
 0x71b   : > { %v2756_v14 = vsub.f32 1.0, %v2755_v10  ;;  %v2839_v9 = vmul.f32 %v7166_v35, %v7123_v34  ;;  %vm2844_vm7 = vweird.f32 %v7166_v35  ;;  %vm2533_vm3 = vweird.f32 %v7139_v6 }
 0x71c   : > { %v3835_v25 = vpop.xlane.xlu2 %3834  ;;  %v2688_v48 = vmul.f32 %v4597_v62, %v2687_v31  ;;  %v2539_v31 = vand.u32 2147483648, %v7139_v6  ;;  %vm7225_vm14 = vmor %vm2843_vm13, %vm2844_vm7  ;;  %v2471_v52 = vor.u32 1.1754944e-38, %v2470_v15  ;;  %vm1584_vm13 = vweird.f32 %v7114_v5 }
 0x71d   : > { %v4605_v54 = vpop.eup %4604  ;;  %4610 = vrcp.f32 %v3835_v25  ;;  %v2757_v32 = vmul.f32 %v4599_v43, %v2756_v14  ;;  %v2840_v57 = vsub.f32 1.0, %v2839_v9  ;;  %vm7239_vm8 = vcmp.eq.f32.partialorder %v2537_v44, 8.507059e+37 }
 0x71e   : > { %v7195_v21 = vpop.eup %4606  ;;  %v2689_v12 = vadd.f32 %v4597_v62, %v2688_v48  ;;  %v2460_v10 = vmul.f32 %v4605_v54, %v7130_v50  ;;  %4612 = vrcp.f32 %v7172_v41  ;;  %vm2465_vm9 = vweird.f32 %v4605_v54 }
 0x71f   : > { %v2758_v1 = vadd.f32 %v4599_v43, %v2757_v32  ;;  %v4609_v33 = vpop.eup %4608  ;;  %v2841_v25 = vmul.f32 %v7166_v35, %v2840_v57 }
 0x720   : > { %v2693_v14 = vsel %vm7182_vm2, %v4597_v62, %v2689_v12  ;;  %v2461_v48 = vsub.f32 1.0, %v2460_v10  ;;  %v2529_v20 = vmul.f32 %v4609_v33, %v7139_v6 }
 0x721   : > { %v2698_v9 = vsel %vm7143_vm5, %v2697_v24, %v2693_v14  ;;  %v2762_v32 = vsel %vm7200_vm11, %v4599_v43, %v2758_v1  ;;  %v2842_v53 = vadd.f32 %v7166_v35, %v2841_v25  ;;  %vm7233_vm5 = vmor %vm2464_vm10, %vm2465_vm9  ;;  %vm7245_vm10 = vcmp.eq.f32.partialorder %v1519_v13, 8.507059e+37 }
 0x722   : > { %v2767_v27 = vsel %vm7147_vm4, %v2766_v47, %v2762_v32  ;;  %v2886_v40 = vmul.f32 %v7118_v2, %v2698_v9  ;;  %v2462_v24 = vmul.f32 %v4605_v54, %v2461_v48  ;;  %v2530_v47 = vsub.f32 1.0, %v2529_v20 }
 0x723   : > { %v4611_v12 = vpop.eup %4610  ;;  %v2883_v43 = vmul.f32 %v2767_v27, %v7007_v58  ;;  %vm2534_vm4 = vweird.f32 %v4609_v33  ;;  %v2540_v58 = vor.u32 1.1754944e-38, %v2539_v31  ;;  %v2846_v20 = vsel %vm7225_vm14, %v7166_v35, %v2842_v53 }
 0x724   : > { %v3838_v34 = vpop.xlane.xlu1 %3837  ;;  %v3845_v57 = vmul.f32 %v4611_v12, %v6558_v22  ;;  %v2463_v10 = vadd.f32 %v4605_v54, %v2462_v24  ;;  %v7249_v50 = vpop.eup %4612  ;;  %v2531_v15 = vmul.f32 %v4609_v33, %v2530_v47  ;;  %vm7262_vm2 = vmor %vm2533_vm3, %vm2534_vm4  ;;  %vm2617_vm11 = vweird.f32 %v7172_v41 }
 0x725   : > { %4614 = vrcp.f32 %v3838_v34  ;;  %v7254_v22 = vadd.f32 %v2886_v40, %v2883_v43  ;;  %v2613_v1 = vmul.f32 %v7249_v50, %v7172_v41  ;;  %v2621_v35 = vand.u32 2147483647, %v7172_v41 }
 0x726   : > { %4159 = vmatmul.msk.f32.vlgmr.msrb.gmra.mxu1 %vm3565_vm6, %v3845_v57  ;;  %v2467_v44 = vsel %vm7233_vm5, %v4605_v54, %v2463_v10  ;;  %v2532_v54 = vadd.f32 %v4609_v33, %v2531_v15  ;;  %v2623_v14 = vand.u32 2147483648, %v7172_v41  ;;  %v2851_v6 = vsel %vm7186_vm12, %v7176_v29, %v2846_v20  ;;  %vm7296_vm12 = vmor %vm1515_vm15, %vm1516_vm0  ;;  %v4098_v20 = vld [vmem:[%s5043_s29 + $0xe0] sm:$0xff] }
 0x727   : > { %4616 = vtanh.f32 %v7254_v22  ;;  %v2472_v31 = vsel %vm7190_vm1, %v2471_v52, %v2467_v44  ;;  %v2614_v25 = vsub.f32 1.0, %v2613_v1  ;;  %v1513_v48 = vmul.f32 %v7110_v42, %v1512_v39 }
 0x728   : > { %v1580_v9 = vmul.f32 %v7195_v21, %v7114_v5  ;;  %v8285_v32 = vand.u32 2147483647, %v7114_v5  ;;  %v2536_v53 = vsel %vm7262_vm2, %v4609_v33, %v2532_v54  ;;  %vm2618_vm1 = vweird.f32 %v7249_v50 }
 0x729   : > { %v2646_v29 = vmul.f32 %v7162_v3, %v2472_v31  ;;  %v1605_v39 = vadd.f32 %v7141_v38, %v5206_v4  ;;  %v2541_v0 = vsel %vm7239_vm8, %v2540_v58, %v2536_v53  ;;  %v2615_v33 = vmul.f32 %v7249_v50, %v2614_v25  ;;  %vm7322_vm15 = vmor %vm2617_vm11, %vm2618_vm1 }
 0x72a   : > { %vm7284_vm7 = vcmp.eq.f32.partialorder %v8285_v32, 8.507059e+37  ;;  %v1514_v62 = vadd.f32 %v7110_v42, %v1513_v48  ;;  %vm1585_vm9 = vweird.f32 %v7195_v21  ;;  %v2643_v40 = vmul.f32 %v2541_v0, %v7056_v30 }
 0x72b   : > { %v4615_v3 = vpop.eup %4614  ;;  %v1581_v61 = vsub.f32 1.0, %v1580_v9  ;;  %4618 = vtanh.f32 %v1605_v39  ;;  %v7309_v24 = vadd.f32 1.0, %v7105_v49  ;;  %v2971_v43 = vmul.f32 %v7155_v51, %v5149_v19  ;;  %vm7338_vm3 = vmor %vm1584_vm13, %vm1585_vm9 }
 0x72c   : > { %v3841_v12 = vpop.xlane.xlu2 %3840  ;;  %v3846_v38 = vmul.f32 %v4615_v3, %v6580_v8  ;;  %v2616_v59 = vadd.f32 %v7249_v50, %v2615_v33  ;;  %v1518_v52 = vsel %vm7296_vm12, %v7110_v42, %v1514_v62  ;;  %vm7326_vm0 = vcmp.eq.f32.partialorder %v2621_v35, 8.507059e+37 }
 0x72d   : > { %v4617_v47 = vpop.eup %4616  ;;  %4620 = vrcp.f32 %v3841_v12  ;;  %v7330_v49 = vadd.f32 %v2646_v29, %v2643_v40  ;;  %v1582_v34 = vmul.f32 %v7195_v21, %v1581_v61  ;;  %v2624_v57 = vor.u32 1.1754944e-38, %v2623_v14 }
 0x72e   : > { %4160 = vmatmul.msk.f32.gmra.mxu1 %vm3565_vm6, %v3846_v38  ;;  %v2895_v42 = vmul.f32 %v4617_v47, %v2851_v6  ;;  %v8296_v10 = vand.u32 2147483648, %v7114_v5  ;;  %4622 = vrcp.f32 %v7309_v24  ;;  %v3055_v58 = vmul.f32 %v7155_v51, %v5176_v36 }
 0x72f   : > { %4624 = vtanh.f32 %v7330_v49  ;;  %v1523_v15 = vsel %vm7245_vm10, %v7126_v63, %v1518_v52  ;;  %v1583_v44 = vadd.f32 %v7195_v21, %v1582_v34  ;;  %v2620_v35 = vsel %vm7322_vm15, %v7249_v50, %v2616_v59 }
 0x730   : > { %v1591_v2 = vor.u32 1.1754944e-38, %v8296_v10  ;;  %v2905_v13 = vmul.f32 %v2895_v42, %v5147_v18  ;;  %v2974_v1 = vmul.f32 %v2895_v42, %v5156_v23  ;;  %v3058_v5 = vmul.f32 %v2895_v42, %v5178_v37 }
 0x731   : > { %v4619_v31 = vpop.eup %4618  ;;  %v1587_v54 = vsel %vm7338_vm3, %v7195_v21, %v1583_v44  ;;  %v2662_v14 = vmul.f32 %v4098_v20, %v5145_v17  ;;  %v2731_v6 = vmul.f32 %v4098_v20, %v5149_v19  ;;  %v2625_v9 = vsel %vm7326_vm0, %v2624_v57, %v2620_v35 }
 0x732   : > { %v2908_v27 = vadd.f32 %v2905_v13, %v7170_v7  ;;  %v2977_v63 = vadd.f32 %v2974_v1, %v2971_v43  ;;  %v3061_v48 = vadd.f32 %v3058_v5, %v3055_v58  ;;  %v1592_v50 = vsel %vm7284_vm7, %v1591_v2, %v1587_v54 }
 0x733   : > { %v4621_v25 = vpop.eup %4620  ;;  %v1683_v32 = vmul.f32 %v4619_v31, %v1523_v15  ;;  %v2815_v11 = vmul.f32 %v4098_v20, %v5176_v36  ;;  %vm1668_vm14 = vweird.f32 %v7309_v24  ;;  %v1680_v60 = vmul.f32 %v1592_v50, %v6856_v45 }
 0x734   : > { %v4623_v53 = vpop.eup %4622  ;;  %v3847_v29 = vmul.f32 %v4621_v25, %v6634_v16  ;;  %v2911_v21 = vadd.f32 %v2908_v27, %v5162_v26  ;;  %v2980_v7 = vadd.f32 %v2977_v63, %v5165_v28  ;;  %v3064_v0 = vadd.f32 %v3061_v48, %v5189_v46 }
 0x735   : > { %v4625_v39 = vpop.eup %4624  ;;  %v1664_v33 = vmul.f32 %v4623_v53, %v7309_v24  ;;  %v1672_v40 = vand.u32 2147483647, %v7309_v24  ;;  %v1674_v38 = vand.u32 2147483648, %v7309_v24  ;;  %v7380_v43 = vadd.f32 %v1683_v32, %v1680_v60 }
 0x736   : > { %4161 = vmatmul.msk.f32.gmra.mxu1 %vm3565_vm6, %v3847_v29  ;;  %v4112_v62 = vmul.f32 -1.442695, %v2911_v21  ;;  %v4115_v3 = vmul.f32 -1.442695, %v2980_v7  ;;  %v2655_v16 = vmul.f32 %v4625_v39, %v2625_v9  ;;  %v4118_v61 = vmul.f32 -1.442695, %v3064_v0 }
 0x737   : > { %v1665_v12 = vsub.f32 1.0, %v1664_v33  ;;  %vm1669_vm5 = vweird.f32 %v4623_v53  ;;  %v2800_v45 = vmul.f32 %v4098_v20, %v5194_v55  ;;  %v3040_v8 = vmul.f32 %v7155_v51, %v5194_v55 }
 0x738   : > { %4626 = vpow2.f32 %v4112_v62  ;;  %v2665_v59 = vmul.f32 %v2655_v16, %v5147_v18  ;;  %v2734_v52 = vmul.f32 %v2655_v16, %v5156_v23  ;;  %v2818_v47 = vmul.f32 %v2655_v16, %v5178_v37  ;;  %vm7392_vm6 = vmor %vm1668_vm14, %vm1669_vm5 }
 0x739   : > { %4628 = vpow2.f32 %v4115_v3  ;;  %v1666_v30 = vmul.f32 %v4623_v53, %v1665_v12  ;;  %v3043_v34 = vmul.f32 %v2895_v42, %v5196_v56  ;;  %v2803_v10 = vmul.f32 %v2655_v16, %v5196_v56 }
 0x73a   : > { %v2668_v57 = vadd.f32 %v2665_v59, %v2662_v14  ;;  %v2737_v41 = vadd.f32 %v2734_v52, %v2731_v6  ;;  %4630 = vpow2.f32 %v4118_v61  ;;  %v2821_v2 = vadd.f32 %v2818_v47, %v2815_v11 }
 0x73b   : > { %v1667_v58 = vadd.f32 %v4623_v53, %v1666_v30  ;;  %4632 = vtanh.f32 %v7380_v43  ;;  %v1675_v42 = vor.u32 1.1754944e-38, %v1674_v38  ;;  %v3046_v1 = vadd.f32 %v3043_v34, %v3040_v8 }
 0x73c   : > { %v2671_v20 = vadd.f32 %v2668_v57, %v5162_v26  ;;  %v2740_v44 = vadd.f32 %v2737_v41, %v5165_v28  ;;  %v2824_v51 = vadd.f32 %v2821_v2, %v5189_v46  ;;  %vm1673_vm4 = vcmp.eq.f32.partialorder %v1672_v40, 8.507059e+37 }
 0x73d   : > { %v1671_v35 = vsel %vm7392_vm6, %v4623_v53, %v1667_v58  ;;  %v2806_v27 = vadd.f32 %v2803_v10, %v2800_v45  ;;  %v3049_v9 = vadd.f32 %v3046_v1, %v5206_v4  ;;  %v7407_v53 = vld [vmem:[%s5043_s29 + $0x88] sm:$0xff] }
 0x73e   : > { %v4627_v13 = vpop.eup %4626  ;;  %v4101_v5 = vmul.f32 -1.442695, %v2671_v20  ;;  %v4104_v54 = vmul.f32 -1.442695, %v2740_v44  ;;  %v4107_v14 = vmul.f32 -1.442695, %v2824_v51  ;;  %v1676_v25 = vsel %vm1673_vm4, %v1675_v42, %v1671_v35 }
 0x73f   : > { %v4629_v24 = vpop.eup %4628  ;;  %v2923_v31 = vadd.f32 1.0, %v4627_v13  ;;  %v2809_v32 = vadd.f32 %v2806_v27, %v5206_v4  ;;  %v1699_v39 = vmul.f32 %v7407_v53, %v5145_v17  ;;  %v1768_v60 = vmul.f32 %v7407_v53, %v5149_v19 }
 0x740   : > { %v2992_v63 = vadd.f32 1.0, %v4629_v24  ;;  %4634 = vpow2.f32 %v4101_v5  ;;  %v4631_v6 = vpop.eup %4630 }
 0x741   : > { %4636 = vrcp.f32 %v2923_v31  ;;  %v4633_v48 = vpop.eup %4632  ;;  %v7403_v50 = vadd.f32 1.0, %v4631_v6  ;;  %v2935_v21 = vand.u32 2147483647, %v2923_v31  ;;  %v2937_v7 = vand.u32 2147483648, %v2923_v31 }
 0x742   : > { %4638 = vrcp.f32 %v2992_v63  ;;  %v7409_v29 = vmul.f32 %v4633_v48, %v1676_v25  ;;  %vm2931_vm13 = vweird.f32 %v2923_v31  ;;  %vm3000_vm8 = vweird.f32 %v2992_v63 }
 0x743   : > { %4640 = vpow2.f32 %v4104_v54  ;;  %v3004_v16 = vand.u32 2147483647, %v2992_v63  ;;  %v3006_v40 = vand.u32 2147483648, %v2992_v63  ;;  %vm7418_vm10 = vcmp.eq.f32.partialorder %v2935_v21, 8.507059e+37 }
 0x744   : > { %4642 = vpow2.f32 %v4107_v14  ;;  %v2938_v38 = vor.u32 1.1754944e-38, %v2937_v7  ;;  %v3090_v47 = vand.u32 2147483648, %v7403_v50  ;;  %v1702_v41 = vmul.f32 %v7409_v29, %v5147_v18 }
 0x745   : > { %4644 = vrcp.f32 %v7403_v50  ;;  %vm7432_vm7 = vcmp.eq.f32.partialorder %v3004_v16, 8.507059e+37  ;;  %v3088_v20 = vand.u32 2147483647, %v7403_v50  ;;  %v3007_v13 = vor.u32 1.1754944e-38, %v3006_v40 }
 0x746   : > { %v4635_v11 = vpop.eup %4634  ;;  %4646 = vtanh.f32 %v3049_v9  ;;  %vm3084_vm12 = vweird.f32 %v7403_v50  ;;  %v3091_v24 = vor.u32 1.1754944e-38, %v3090_v47  ;;  %v1705_v6 = vadd.f32 %v1702_v41, %v1699_v39 }
 0x747   : > { %v4637_v0 = vpop.eup %4636  ;;  %v7414_v33 = vadd.f32 1.0, %v4635_v11  ;;  %4648 = vtanh.f32 %v2809_v32  ;;  %vm7461_vm15 = vcmp.eq.f32.partialorder %v3088_v20, 8.507059e+37 }
 0x748   : > { %v4639_v62 = vpop.eup %4638  ;;  %v2927_v3 = vmul.f32 %v4637_v0, %v2923_v31  ;;  %vm2932_vm2 = vweird.f32 %v4637_v0  ;;  %v1771_v31 = vmul.f32 %v7409_v29, %v5156_v23 }
 0x749   : > { %v4641_v61 = vpop.eup %4640  ;;  %v2996_v59 = vmul.f32 %v4639_v62, %v2992_v63  ;;  %4650 = vrcp.f32 %v7414_v33  ;;  %vm3001_vm11 = vweird.f32 %v4639_v62  ;;  %vm7442_vm1 = vmor %vm2931_vm13, %vm2932_vm2  ;;  %v2709_v14 = vand.u32 2147483647, %v7414_v33 }
 0x74a   : > { %v4643_v52 = vpop.eup %4642  ;;  %v2928_v45 = vsub.f32 1.0, %v2927_v3  ;;  %v7424_v30 = vadd.f32 1.0, %v4641_v61  ;;  %vm7450_vm9 = vmor %vm3000_vm8, %vm3001_vm11  ;;  %v2711_v32 = vand.u32 2147483648, %v7414_v33  ;;  %vm2705_vm3 = vweird.f32 %v7414_v33 }
 0x74b   : > { %v7426_v8 = vpop.eup %4644  ;;  %v2997_v34 = vsub.f32 1.0, %v2996_v59  ;;  %v7428_v57 = vadd.f32 1.0, %v4643_v52  ;;  %v1708_v61 = vadd.f32 %v1705_v6, %v5162_v26  ;;  %v1774_v12 = vadd.f32 %v1771_v31, %v1768_v60 }
 0x74c   : > { %v4647_v10 = vpop.eup %4646  ;;  %v2929_v2 = vmul.f32 %v4637_v0, %v2928_v45  ;;  %v3080_v15 = vmul.f32 %v7426_v8, %v7403_v50  ;;  %4652 = vrcp.f32 %v7424_v30  ;;  %vm3085_vm0 = vweird.f32 %v7426_v8 }
 0x74d   : > { %v7439_v44 = vpop.eup %4648  ;;  %v2998_v42 = vmul.f32 %v4639_v62, %v2997_v34  ;;  %4654 = vrcp.f32 %v7428_v57  ;;  %vm7480_vm5 = vmor %vm3084_vm12, %vm3085_vm0  ;;  %vm7484_vm6 = vcmp.eq.f32.partialorder %v2709_v14, 8.507059e+37  ;;  %v2712_v52 = vor.u32 1.1754944e-38, %v2711_v32 }
 0x74e   : > { %v2930_v1 = vadd.f32 %v4637_v0, %v2929_v2  ;;  %v3081_v35 = vsub.f32 1.0, %v3080_v15  ;;  %vm2774_vm13 = vweird.f32 %v7424_v30  ;;  %v2778_v60 = vand.u32 2147483647, %v7424_v30 }
 0x74f   : > { %v4651_v54 = vpop.eup %4650  ;;  %v2999_v27 = vadd.f32 %v4639_v62, %v2998_v42  ;;  %v2780_v34 = vand.u32 2147483648, %v7424_v30  ;;  %v4054_v58 = vmul.f32 -1.442695, %v1708_v61  ;;  %v1777_v15 = vadd.f32 %v1774_v12, %v5165_v28 }
 0x750   : > { %v2934_v25 = vsel %vm7442_vm1, %v4637_v0, %v2930_v1  ;;  %v3082_v63 = vmul.f32 %v7426_v8, %v3081_v35  ;;  %v2701_v9 = vmul.f32 %v4651_v54, %v7414_v33  ;;  %vm2706_vm14 = vweird.f32 %v4651_v54  ;;  %v4121_v1 = vld [vmem:[%s5043_s29 + $0x108] sm:$0xff] }
 0x751   : > { %v2939_v21 = vsel %vm7418_vm10, %v2938_v38, %v2934_v25  ;;  %v3003_v7 = vsel %vm7450_vm9, %v4639_v62, %v2999_v27  ;;  %vm7495_vm4 = vmor %vm2705_vm3, %vm2706_vm14  ;;  %v2781_v35 = vor.u32 1.1754944e-38, %v2780_v34  ;;  %v1855_v31 = vmul.f32 %v7409_v29, %v5178_v37 }
 0x752   : > { %v3008_v11 = vsel %vm7432_vm7, %v3007_v13, %v3003_v7  ;;  %v3127_v39 = vmul.f32 %v4647_v10, %v2939_v21  ;;  %v2702_v0 = vsub.f32 1.0, %v2701_v9  ;;  %v4653_v3 = vpop.eup %4652  ;;  %v3083_v16 = vadd.f32 %v7426_v8, %v3082_v63 }
 0x753   : > { %v3124_v40 = vmul.f32 %v3008_v11, %v7254_v22  ;;  %v2770_v45 = vmul.f32 %v4653_v3, %v7424_v30  ;;  %v7489_v47 = vpop.eup %4654  ;;  %vm2775_vm8 = vweird.f32 %v4653_v3  ;;  %v1852_v13 = vmul.f32 %v7407_v53, %v5176_v36 }
 0x754   : > { %v2703_v38 = vmul.f32 %v4651_v54, %v2702_v0  ;;  %v2854_v2 = vmul.f32 %v7489_v47, %v7428_v57  ;;  %v3087_v33 = vsel %vm7480_vm5, %v7426_v8, %v3083_v16  ;;  %vm7518_vm10 = vmor %vm2774_vm13, %vm2775_vm8  ;;  %vm2779_vm2 = vcmp.eq.f32.partialorder %v2778_v60, 8.507059e+37 }
 0x755   : > { %v7491_v22 = vadd.f32 %v3127_v39, %v3124_v40  ;;  %v2771_v10 = vsub.f32 1.0, %v2770_v45  ;;  %v3092_v27 = vsel %vm7461_vm15, %v3091_v24, %v3087_v33  ;;  %v4057_v6 = vmul.f32 -1.442695, %v1777_v15 }
 0x756   : > { %v2704_v41 = vadd.f32 %v4651_v54, %v2703_v38  ;;  %v2855_v42 = vsub.f32 1.0, %v2854_v2  ;;  %v1858_v25 = vadd.f32 %v1855_v31, %v1852_v13  ;;  %v3143_v30 = vmul.f32 %v4121_v1, %v5145_v17  ;;  %v4110_v13 = vld [vmem:[%s5043_s29 + $0xf8] sm:$0xff] }
 0x757   : > { %4656 = vtanh.f32 %v7491_v22  ;;  %v2772_v51 = vmul.f32 %v4653_v3, %v2771_v10  ;;  %v3212_v21 = vmul.f32 %v4121_v1, %v5149_v19  ;;  %vm2858_vm11 = vweird.f32 %v7428_v57 }
 0x758   : > { %v2708_v20 = vsel %vm7495_vm4, %v4651_v54, %v2704_v41  ;;  %4658 = vpow2.f32 %v4054_v58  ;;  %v2856_v14 = vmul.f32 %v7489_v47, %v2855_v42  ;;  %v1861_v48 = vadd.f32 %v1858_v25, %v5189_v46 }
 0x759   : > { %v2713_v5 = vsel %vm7484_vm6, %v2712_v52, %v2708_v20  ;;  %v2773_v54 = vadd.f32 %v4653_v3, %v2772_v51  ;;  %vm2859_vm7 = vweird.f32 %v7489_v47  ;;  %v2864_v11 = vand.u32 2147483648, %v7428_v57 }
 0x75a   : > { %v2887_v9 = vmul.f32 %v7439_v44, %v2713_v5  ;;  %v2857_v44 = vadd.f32 %v7489_v47, %v2856_v14  ;;  %v2862_v16 = vand.u32 2147483647, %v7428_v57  ;;  %4660 = vpow2.f32 %v4057_v6  ;;  %vm7547_vm1 = vmor %vm2858_vm11, %vm2859_vm7 }
 0x75b   : > { %v2777_v63 = vsel %vm7518_vm10, %v4653_v3, %v2773_v54  ;;  %v3296_v3 = vmul.f32 %v4121_v1, %v5176_v36  ;;  %v4060_v38 = vmul.f32 -1.442695, %v1861_v48  ;;  %v2865_v45 = vor.u32 1.1754944e-38, %v2864_v11 }
 0x75c   : > { %v2782_v7 = vsel %vm2779_vm2, %v2781_v35, %v2777_v63  ;;  %v1837_v34 = vmul.f32 %v7407_v53, %v5194_v55  ;;  %v1840_v57 = vmul.f32 %v7409_v29, %v5196_v56  ;;  %v2861_v2 = vsel %vm7547_vm1, %v7489_v47, %v2857_v44 }
 0x75d   : > { %v4657_v32 = vpop.eup %4656  ;;  %v2884_v39 = vmul.f32 %v2782_v7, %v7330_v49  ;;  %vm2863_vm12 = vcmp.eq.f32.partialorder %v2862_v16, 8.507059e+37  ;;  %v3281_v58 = vmul.f32 %v4121_v1, %v5194_v55  ;;  %v2903_v31 = vmul.f32 %v4110_v13, %v5145_v17 }
 0x75e   : > { %v3136_v24 = vmul.f32 %v4657_v32, %v3092_v27  ;;  %v4659_v0 = vpop.eup %4658  ;;  %v2866_v42 = vsel %vm2863_vm12, %v2865_v45, %v2861_v2  ;;  %v1843_v5 = vadd.f32 %v1840_v57, %v1837_v34  ;;  %v2972_v54 = vmul.f32 %v4110_v13, %v5149_v19 }
 0x75f   : > { %v7543_v62 = vadd.f32 %v2887_v9, %v2884_v39  ;;  %v7551_v50 = vadd.f32 1.0, %v4659_v0  ;;  %v3056_v63 = vmul.f32 %v4110_v13, %v5176_v36  ;;  %v3041_v32 = vmul.f32 %v4110_v13, %v5194_v55 }
 0x760   : > { %v3146_v40 = vmul.f32 %v3136_v24, %v5147_v18  ;;  %v3215_v61 = vmul.f32 %v3136_v24, %v5156_v23  ;;  %v3299_v12 = vmul.f32 %v3136_v24, %v5178_v37  ;;  %v4661_v33 = vpop.eup %4660  ;;  %v3284_v15 = vmul.f32 %v3136_v24, %v5196_v56 }
 0x761   : > { %4662 = vtanh.f32 %v7543_v62  ;;  %v7568_v35 = vadd.f32 1.0, %v4661_v33  ;;  %v1846_v14 = vadd.f32 %v1843_v5, %v5206_v4  ;;  %vm1756_vm9 = vweird.f32 %v7551_v50 }
 0x762   : > { %v3149_v59 = vadd.f32 %v3146_v40, %v3143_v30  ;;  %v3218_v52 = vadd.f32 %v3215_v61, %v3212_v21  ;;  %v3302_v60 = vadd.f32 %v3299_v12, %v3296_v3  ;;  %4664 = vpow2.f32 %v4060_v38 }
 0x763   : > { %4666 = vrcp.f32 %v7551_v50  ;;  %v3287_v47 = vadd.f32 %v3284_v15, %v3281_v58  ;;  %v1762_v21 = vand.u32 2147483648, %v7551_v50  ;;  %v1831_v49 = vand.u32 2147483648, %v7568_v35 }
 0x764   : > { %v3152_v41 = vadd.f32 %v3149_v59, %v5162_v26  ;;  %v3221_v10 = vadd.f32 %v3218_v52, %v5165_v28  ;;  %v3305_v53 = vadd.f32 %v3302_v60, %v5189_v46  ;;  %v1760_v59 = vand.u32 2147483647, %v7551_v50 }
 0x765   : > { %v3290_v9 = vadd.f32 %v3287_v47, %v5206_v4  ;;  %v7599_v60 = vor.u32 1.1754944e-38, %v1762_v21  ;;  %v1829_v33 = vand.u32 2147483647, %v7568_v35  ;;  %v7607_v58 = vor.u32 1.1754944e-38, %v1831_v49 }
 0x766   : > { %v4124_v20 = vmul.f32 -1.442695, %v3152_v41  ;;  %v4127_v51 = vmul.f32 -1.442695, %v3221_v10  ;;  %v4130_v29 = vmul.f32 -1.442695, %v3305_v53  ;;  %vm1825_vm0 = vweird.f32 %v7568_v35 }
 0x767   : > { %v4663_v8 = vpop.eup %4662  ;;  %vm7633_vm6 = vcmp.eq.f32.partialorder %v1760_v59, 8.507059e+37  ;;  %vm7670_vm7 = vcmp.eq.f32.partialorder %v1829_v33, 8.507059e+37 }
 0x768   : > { %4668 = vpow2.f32 %v4124_v20  ;;  %v2896_v1 = vmul.f32 %v4663_v8, %v2866_v42  ;;  %v4665_v27 = vpop.eup %4664 }
 0x769   : > { %4670 = vpow2.f32 %v4127_v51  ;;  %v7573_v6 = vpop.eup %4666  ;;  %v7588_v16 = vadd.f32 1.0, %v4665_v27 }
 0x76a   : > { %4672 = vpow2.f32 %v4130_v29  ;;  %v2906_v25 = vmul.f32 %v2896_v1, %v5147_v18  ;;  %v2975_v30 = vmul.f32 %v2896_v1, %v5156_v23  ;;  %v3044_v11 = vmul.f32 %v2896_v1, %v5196_v56 }
 0x76b   : > { %4674 = vrcp.f32 %v7568_v35  ;;  %v3059_v39 = vmul.f32 %v2896_v1, %v5178_v37  ;;  %v1752_v44 = vmul.f32 %v7573_v6, %v7551_v50  ;;  %vm1757_vm15 = vweird.f32 %v7573_v6 }
 0x76c   : > { %v2909_v48 = vadd.f32 %v2906_v25, %v2903_v31  ;;  %v2978_v24 = vadd.f32 %v2975_v30, %v2972_v54  ;;  %4676 = vtanh.f32 %v1846_v14  ;;  %v3047_v52 = vadd.f32 %v3044_v11, %v3041_v32  ;;  %vm7653_vm2 = vmor %vm1756_vm9, %vm1757_vm15 }
 0x76d   : > { %v3062_v45 = vadd.f32 %v3059_v39, %v3056_v63  ;;  %v1753_v10 = vsub.f32 1.0, %v1752_v44 }
 0x76e   : > { %v4669_v7 = vpop.eup %4668  ;;  %v2912_v61 = vadd.f32 %v2909_v48, %v5162_v26  ;;  %v2981_v12 = vadd.f32 %v2978_v24, %v5165_v28  ;;  %v3050_v8 = vadd.f32 %v3047_v52, %v5206_v4 }
 0x76f   : > { %v4671_v0 = vpop.eup %4670  ;;  %v7584_v3 = vadd.f32 1.0, %v4669_v7  ;;  %v3065_v42 = vadd.f32 %v3062_v45, %v5189_v46  ;;  %v1754_v47 = vmul.f32 %v7573_v6, %v1753_v10 }
 0x770   : > { %v7590_v40 = vadd.f32 1.0, %v4671_v0  ;;  %v4673_v38 = vpop.eup %4672  ;;  %v4113_v41 = vmul.f32 -1.442695, %v2912_v61  ;;  %v4116_v2 = vmul.f32 -1.442695, %v2981_v12 }
 0x771   : > { %4678 = vrcp.f32 %v7584_v3  ;;  %v7601_v34 = vpop.eup %4674  ;;  %v7603_v57 = vadd.f32 1.0, %v4673_v38  ;;  %v3176_v53 = vand.u32 2147483647, %v7584_v3  ;;  %v3178_v20 = vand.u32 2147483648, %v7584_v3 }
 0x772   : > { %4680 = vrcp.f32 %v7590_v40  ;;  %v7609_v15 = vpop.eup %4676  ;;  %v3245_v51 = vand.u32 2147483647, %v7590_v40  ;;  %v3247_v29 = vand.u32 2147483648, %v7590_v40  ;;  %v1821_v13 = vmul.f32 %v7601_v34, %v7568_v35 }
 0x773   : > { %4682 = vrcp.f32 %v7588_v16  ;;  %vm3172_vm3 = vweird.f32 %v7584_v3  ;;  %vm3241_vm14 = vweird.f32 %v7590_v40  ;;  %v4119_v54 = vmul.f32 -1.442695, %v3065_v42 }
 0x774   : > { %4684 = vtanh.f32 %v3290_v9  ;;  %vm7628_vm5 = vcmp.eq.f32.partialorder %v3176_v53, 8.507059e+37  ;;  %v3179_v25 = vor.u32 1.1754944e-38, %v3178_v20  ;;  %v1822_v9 = vsub.f32 1.0, %v1821_v13 }
 0x775   : > { %4686 = vrcp.f32 %v7603_v57  ;;  %vm7639_vm13 = vcmp.eq.f32.partialorder %v3245_v51, 8.507059e+37  ;;  %v3248_v48 = vor.u32 1.1754944e-38, %v3247_v29  ;;  %v1755_v39 = vadd.f32 %v7573_v6, %v1754_v47 }
 0x776   : > { %4688 = vpow2.f32 %v4113_v41  ;;  %vm3325_vm10 = vweird.f32 %v7603_v57  ;;  %v3329_v45 = vand.u32 2147483647, %v7603_v57  ;;  %v1823_v41 = vmul.f32 %v7601_v34, %v1822_v9 }
 0x777   : > { %v4679_v5 = vpop.eup %4678  ;;  %4690 = vpow2.f32 %v4116_v2  ;;  %v3331_v20 = vand.u32 2147483648, %v7603_v57  ;;  %v1759_v33 = vsel %vm7653_vm2, %v7573_v6, %v1755_v39  ;;  %vm1826_vm12 = vweird.f32 %v7601_v34 }
 0x778   : > { %v4681_v1 = vpop.eup %4680  ;;  %v3168_v31 = vmul.f32 %v4679_v5, %v7584_v3  ;;  %vm3173_vm4 = vweird.f32 %v4679_v5  ;;  %4692 = vpow2.f32 %v4119_v54  ;;  %v1824_v54 = vadd.f32 %v7601_v34, %v1823_v41  ;;  %vm7712_vm15 = vmor %vm1825_vm0, %vm1826_vm12 }
 0x779   : > { %v7626_v27 = vpop.eup %4682  ;;  %v3237_v30 = vmul.f32 %v4681_v1, %v7590_v40  ;;  %vm3242_vm8 = vweird.f32 %v4681_v1  ;;  %vm7662_vm11 = vmor %vm3172_vm3, %vm3173_vm4  ;;  %v7706_v9 = vstv %s7637_s16  ;;  %vm7717_vm3 = vcmp.eq.f32.partialorder %v3329_v45, 8.507059e+37 }
 0x77a   : > { %v4685_v32 = vpop.eup %4684  ;;  %v3169_v21 = vsub.f32 1.0, %v3168_v31  ;;  %v1905_v49 = vmul.f32 %v7626_v27, %v7588_v16  ;;  %vm7677_vm1 = vmor %vm3241_vm14, %vm3242_vm8  ;;  %v1764_v7 = vsel %vm7633_vm6, %v7599_v60, %v1759_v33  ;;  %vm1909_vm0 = vweird.f32 %v7588_v16 }
 0x77b   : > { %v7643_v24 = vpop.eup %4686  ;;  %v3238_v11 = vsub.f32 1.0, %v3237_v30 }
 0x77c   : > { %v4689_v0 = vpop.eup %4688  ;;  %v3170_v44 = vmul.f32 %v4679_v5, %v3169_v21  ;;  %v3321_v61 = vmul.f32 %v7643_v24, %v7603_v57  ;;  %v1906_v13 = vsub.f32 1.0, %v1905_v49  ;;  %vm3326_vm9 = vweird.f32 %v7643_v24 }
 0x77d   : > { %v4691_v38 = vpop.eup %4690  ;;  %v3239_v52 = vmul.f32 %v4681_v1, %v3238_v11  ;;  %v7667_v50 = vadd.f32 1.0, %v4689_v0  ;;  %v3332_v21 = vor.u32 1.1754944e-38, %v3331_v20  ;;  %vm7725_vm14 = vmor %vm3325_vm10, %vm3326_vm9  ;;  %v1828_v11 = vsel %vm7712_vm15, %v7601_v34, %v1824_v54 }
 0x77e   : > { %v3171_v2 = vadd.f32 %v4679_v5, %v3170_v44  ;;  %v3322_v53 = vsub.f32 1.0, %v3321_v61  ;;  %v7682_v51 = vadd.f32 1.0, %v4691_v38  ;;  %v4693_v47 = vpop.eup %4692  ;;  %v1907_v39 = vmul.f32 %v7626_v27, %v1906_v13 }
 0x77f   : > { %v3240_v29 = vadd.f32 %v4681_v1, %v3239_v52  ;;  %4694 = vrcp.f32 %v7667_v50  ;;  %v7729_v35 = vadd.f32 1.0, %v4693_v47  ;;  %v2950_v57 = vand.u32 2147483647, %v7667_v50 }
 0x780   : > { %v3175_v40 = vsel %vm7662_vm11, %v4679_v5, %v3171_v2  ;;  %v3323_v42 = vmul.f32 %v7643_v24, %v3322_v53  ;;  %4696 = vrcp.f32 %v7682_v51  ;;  %v2952_v60 = vand.u32 2147483648, %v7667_v50 }
 0x781   : > { %v3180_v31 = vsel %vm7628_vm5, %v3179_v25, %v3175_v40  ;;  %v3244_v6 = vsel %vm7677_vm1, %v4681_v1, %v3240_v29  ;;  %4698 = vtanh.f32 %v3050_v8  ;;  %vm1910_vm5 = vweird.f32 %v7626_v27 }
 0x782   : > { %v3249_v5 = vsel %vm7639_vm13, %v3248_v48, %v3244_v6  ;;  %v3368_v30 = vmul.f32 %v4685_v32, %v3180_v31  ;;  %v3324_v1 = vadd.f32 %v7643_v24, %v3323_v42  ;;  %v3019_v44 = vand.u32 2147483647, %v7682_v51  ;;  %vm7793_vm12 = vmor %vm1909_vm0, %vm1910_vm5 }
 0x783   : > { %v3365_v32 = vmul.f32 %v3249_v5, %v7491_v22  ;;  %4700 = vrcp.f32 %v7729_v35  ;;  %v3021_v34 = vand.u32 2147483648, %v7682_v51  ;;  %vm2946_vm6 = vweird.f32 %v7667_v50 }
 0x784   : > { %v3328_v61 = vsel %vm7725_vm14, %v7643_v24, %v3324_v1  ;;  %v1833_v59 = vsel %vm7670_vm7, %v7607_v58, %v1828_v11  ;;  %vm7759_vm13 = vcmp.eq.f32.partialorder %v2950_v57, 8.507059e+37  ;;  %vm3015_vm8 = vweird.f32 %v7682_v51 }
 0x785   : > { %v4695_v22 = vpop.eup %4694  ;;  %v3371_v48 = vadd.f32 %v3368_v30, %v3365_v32  ;;  %v3333_v45 = vsel %vm7717_vm3, %v3332_v21, %v3328_v61  ;;  %v2953_v2 = vor.u32 1.1754944e-38, %v2952_v60  ;;  %vm7771_vm11 = vcmp.eq.f32.partialorder %v3019_v44, 8.507059e+37 }
 0x786   : > { %v4697_v0 = vpop.eup %4696  ;;  %v2942_v63 = vmul.f32 %v4695_v22, %v7667_v50  ;;  %vm2947_vm4 = vweird.f32 %v4695_v22  ;;  %v1915_v50 = vand.u32 2147483648, %v7588_v16  ;;  %v3022_v53 = vor.u32 1.1754944e-38, %v3021_v34 }
 0x787   : > { %4702 = vtanh.f32 %v3371_v48  ;;  %v3011_v12 = vmul.f32 %v4697_v0, %v7682_v51  ;;  %v4699_v49 = vpop.eup %4698  ;;  %vm3016_vm10 = vweird.f32 %v4697_v0  ;;  %vm7767_vm2 = vmor %vm2946_vm6, %vm2947_vm4  ;;  %v1921_v20 = vmul.f32 %v1833_v59, %v7380_v43 }
 0x788   : > { %v2943_v38 = vsub.f32 1.0, %v2942_v63  ;;  %vm7777_vm7 = vmor %vm3015_vm8, %vm3016_vm10  ;;  %vm3099_vm1 = vweird.f32 %v7729_v35  ;;  %v3105_v40 = vand.u32 2147483648, %v7729_v35  ;;  %v1924_v42 = vmul.f32 %v7609_v15, %v1764_v7  ;;  %v4063_v63 = vld [vmem:[%s5043_s29 + $0xa0] sm:$0xff] }
 0x789   : > { %v3012_v52 = vsub.f32 1.0, %v3011_v12  ;;  %v4701_v51 = vpop.eup %4700  ;;  %v1908_v6 = vadd.f32 %v7626_v27, %v1907_v39  ;;  %v1913_v43 = vand.u32 2147483647, %v7588_v16  ;;  %v1916_v15 = vor.u32 1.1754944e-38, %v1915_v50 }
 0x78a   : > { %v2944_v41 = vmul.f32 %v4695_v22, %v2943_v38  ;;  %v3095_v31 = vmul.f32 %v4701_v51, %v7729_v35  ;;  %v7797_v14 = vadd.f32 %v1924_v42, %v1921_v20  ;;  %vm3100_vm9 = vweird.f32 %v4701_v51 }
 0x78b   : > { %v3013_v58 = vmul.f32 %v4697_v0, %v3012_v52  ;;  %v1912_v48 = vsel %vm7793_vm12, %v7626_v27, %v1908_v6  ;;  %vm1914_vm15 = vcmp.eq.f32.partialorder %v1913_v43, 8.507059e+37  ;;  %vm8349_vm3 = vcmask 187392   ;;  %vm3101_vm14 = vmor %vm3099_vm1, %vm3100_vm9 }
 0x78c   : > { %v2945_v29 = vadd.f32 %v4695_v22, %v2944_v41  ;;  %v3096_v16 = vsub.f32 1.0, %v3095_v31  ;;  %4704 = vtanh.f32 %v7797_v14  ;;  %v3103_v57 = vand.u32 2147483647, %v7729_v35  ;;  %vm8350_vm5 = vmmov %vm8349_vm3 }
 0x78d   : > { %v4703_v13 = vpop.eup %4702  ;;  %v3014_v47 = vadd.f32 %v4697_v0, %v3013_v58  ;;  %v3106_v60 = vor.u32 1.1754944e-38, %v3105_v40  ;;  %v1940_v61 = vmul.f32 %v4063_v63, %v5145_v17  ;;  %v2009_v12 = vmul.f32 %v4063_v63, %v5149_v19 }
 0x78e   : > { %v3377_v54 = vmul.f32 %v4703_v13, %v3333_v45  ;;  %v2949_v5 = vsel %vm7767_vm2, %v4695_v22, %v2945_v29  ;;  %v3097_v7 = vmul.f32 %v4701_v51, %v3096_v16  ;;  %vm3104_vm0 = vcmp.eq.f32.partialorder %v3103_v57, 8.507059e+37 }
 0x78f   : > { %v2954_v1 = vsel %vm7759_vm13, %v2953_v2, %v2949_v5  ;;  %v3018_v25 = vsel %vm7777_vm7, %v4697_v0, %v3014_v47  ;;  %v1917_v0 = vsel %vm1914_vm15, %v1916_v15, %v1912_v48  ;;  %v2093_v34 = vmul.f32 %v4063_v63, %v5176_v36 }
 0x790   : > { %v3381_v21 = vmul.f32 %v7706_v9, %v3377_v54  ;;  %v3023_v32 = vsel %vm7771_vm11, %v3022_v53, %v3018_v25  ;;  %v3128_v8 = vmul.f32 %v4699_v49, %v2954_v1  ;;  %v3098_v11 = vadd.f32 %v4701_v51, %v3097_v7  ;;  %v4122_v49 = vld [vmem:[%s5043_s29 + $0x110] sm:$0xff] }
 0x791   : > { %v3125_v22 = vmul.f32 %v3023_v32, %v7543_v62  ;;  %v3144_v3 = vmul.f32 %v4122_v49, %v5145_v17  ;;  %v3213_v58 = vmul.f32 %v4122_v49, %v5149_v19  ;;  %v3297_v10 = vmul.f32 %v4122_v49, %v5176_v36 }
 0x792   : > { %3385 = vst.msk [vmem:[%s7802_s20] sm:$0xff] %vm8349_vm3, %v3381_v21  ;;  %v4705_v62 = vpop.eup %4704  ;;  %v3102_v44 = vsel %vm3101_vm14, %v4701_v51, %v3098_v11  ;;  %v2078_v47 = vmul.f32 %v4063_v63, %v5194_v55  ;;  %v7843_v5 = vstv %s3991_s21  ;;  %v3282_v48 = vmul.f32 %v4122_v49, %v5194_v55 }
 0x793   : > { %v7821_v39 = vadd.f32 %v3128_v8, %v3125_v22  ;;  %v1933_v27 = vmul.f32 %v4705_v62, %v1917_v0  ;;  %v3107_v35 = vsel %vm3104_vm0, %v3106_v60, %v3102_v44 }
 0x795   : > { %4706 = vtanh.f32 %v7821_v39  ;;  %v1943_v38 = vmul.f32 %v1933_v27, %v5147_v18  ;;  %v2012_v59 = vmul.f32 %v1933_v27, %v5156_v23  ;;  %v2096_v24 = vmul.f32 %v1933_v27, %v5178_v37 }
 0x796   : > { %v2081_v54 = vmul.f32 %v1933_v27, %v5196_v56 }
 0x797   : > { %v1946_v45 = vadd.f32 %v1943_v38, %v1940_v61  ;;  %v2015_v41 = vadd.f32 %v2012_v59, %v2009_v12  ;;  %v2099_v2 = vadd.f32 %v2096_v24, %v2093_v34 }
 0x798   : > { %v2084_v22 = vadd.f32 %v2081_v54, %v2078_v47 }
 0x799   : > { %v1949_v53 = vadd.f32 %v1946_v45, %v5162_v26  ;;  %v2018_v20 = vadd.f32 %v2015_v41, %v5165_v28  ;;  %v2102_v51 = vadd.f32 %v2099_v2, %v5189_v46  ;;  %v3883_v21 = vld [vmem:[%s7802_s20] sm:$0xff] }
 0x79a   : > { %v2087_v62 = vadd.f32 %v2084_v22, %v5206_v4 }
 0x79b   : > { %v4707_v52 = vpop.eup %4706  ;;  %v4066_v42 = vmul.f32 -1.442695, %v1949_v53  ;;  %v4069_v13 = vmul.f32 -1.442695, %v2018_v20  ;;  %v4072_v30 = vmul.f32 -1.442695, %v2102_v51 }
 0x79c   : > { %v3137_v50 = vmul.f32 %v4707_v52, %v3107_v35 }
 0x79d   : > { %4708 = vpow2.f32 %v4066_v42 }
 0x79e   : > { %v3147_v29 = vmul.f32 %v3137_v50, %v5147_v18  ;;  %v3216_v33 = vmul.f32 %v3137_v50, %v5156_v23  ;;  %v3300_v40 = vmul.f32 %v3137_v50, %v5178_v37  ;;  %4710 = vpow2.f32 %v4069_v13 }
 0x79f   : > { %v3285_v57 = vmul.f32 %v3137_v50, %v5196_v56  ;;  %4712 = vpow2.f32 %v4072_v30 }
 0x7a0   : > { %v3150_v31 = vadd.f32 %v3147_v29, %v3144_v3  ;;  %v3219_v6 = vadd.f32 %v3216_v33, %v3213_v58  ;;  %v3303_v43 = vadd.f32 %v3300_v40, %v3297_v10 }
 0x7a1   : > { %v3288_v27 = vadd.f32 %v3285_v57, %v3282_v48 }
 0x7a2   : > { %v3153_v15 = vadd.f32 %v3150_v31, %v5162_v26  ;;  %v3222_v1 = vadd.f32 %v3219_v6, %v5165_v28  ;;  %v3306_v25 = vadd.f32 %v3303_v43, %v5189_v46 }
 0x7a3   : > { %v3874_v16 = vpop.f32.mrf.mxu1  ;;  %v4709_v63 = vpop.eup %4708  ;;  %v3291_v59 = vadd.f32 %v3288_v27, %v5206_v4 }
 0x7a4   : > { %v3887_v32 = vmul.f32 %v7843_v5, %v3874_v16  ;;  %v4125_v8 = vmul.f32 -1.442695, %v3153_v15  ;;  %v4128_v7 = vmul.f32 -1.442695, %v3222_v1  ;;  %v4131_v11 = vmul.f32 -1.442695, %v3306_v25  ;;  %v4711_v44 = vpop.eup %4710 }
 0x7a5   : > { %v1961_v60 = vadd.f32 1.0, %v4709_v63  ;;  %v4713_v61 = vpop.eup %4712  ;;  %v7855_v12 = vadd.f32 1.0, %v4711_v44 }
 0x7a6   : > { %v3890_v0 = vadd.f32 %v3887_v32, %v3883_v21  ;;  %4714 = vpow2.f32 %v4125_v8  ;;  %v7857_v35 = vadd.f32 1.0, %v4713_v61  ;;  %v4075_v8 = vld [vmem:[%s5043_s29 + $0xb8] sm:$0xff] }
 0x7a7   : > { %4716 = vpow2.f32 %v4128_v7  ;;  %v2001_v45 = vand.u32 2147483647, %v1961_v60  ;;  %v2003_v41 = vand.u32 2147483648, %v1961_v60  ;;  %vm1997_vm6 = vweird.f32 %v1961_v60 }
 0x7a8   : > { %3893 = vst.msk [vmem:[%s7802_s20] sm:$0xff] %vm8350_vm5, %v3890_v0  ;;  %4718 = vpow2.f32 %v4131_v11  ;;  %vm2066_vm13 = vweird.f32 %v7855_v12  ;;  %v2070_v40 = vand.u32 2147483647, %v7855_v12  ;;  %v2072_v31 = vand.u32 2147483648, %v7855_v12 }
 0x7a9   : > { %4720 = vrcp.f32 %v1961_v60  ;;  %vm7867_vm4 = vcmp.eq.f32.partialorder %v2001_v45, 8.507059e+37  ;;  %v2004_v51 = vor.u32 1.1754944e-38, %v2003_v41  ;;  %vm2150_vm7 = vweird.f32 %v7857_v35 }
 0x7aa   : > { %4722 = vtanh.f32 %v2087_v62  ;;  %vm2071_vm5 = vcmp.eq.f32.partialorder %v2070_v40, 8.507059e+37  ;;  %v2154_v40 = vand.u32 2147483647, %v7857_v35 }
 0x7ab   : > { %4724 = vrcp.f32 %v7855_v12 }
 0x7ac   : > { %v4715_v34 = vpop.eup %4714  ;;  %4726 = vrcp.f32 %v7857_v35 }
 0x7ad   : > { %v4717_v49 = vpop.eup %4716  ;;  %v3165_v38 = vadd.f32 1.0, %v4715_v34 }
 0x7ae   : > { %v4719_v24 = vpop.eup %4718  ;;  %v7861_v52 = vadd.f32 1.0, %v4717_v49  ;;  %v2073_v49 = vor.u32 1.1754944e-38, %v2072_v31  ;;  %v2156_v31 = vand.u32 2147483648, %v7857_v35 }
 0x7af   : > { %4728 = vrcp.f32 %v3165_v38  ;;  %v4721_v2 = vpop.eup %4720  ;;  %v7865_v50 = vadd.f32 1.0, %v4719_v24  ;;  %v3191_v10 = vand.u32 2147483647, %v3165_v38  ;;  %v3193_v53 = vand.u32 2147483648, %v3165_v38 }
 0x7b0   : > { %4730 = vrcp.f32 %v7861_v52  ;;  %v1993_v3 = vmul.f32 %v4721_v2, %v1961_v60  ;;  %v4723_v58 = vpop.eup %4722  ;;  %v3260_v33 = vand.u32 2147483647, %v7861_v52  ;;  %vm1998_vm8 = vweird.f32 %v4721_v2 }
 0x7b1   : > { %4732 = vtanh.f32 %v3291_v59  ;;  %v4725_v29 = vpop.eup %4724  ;;  %vm3187_vm10 = vweird.f32 %v3165_v38  ;;  %vm3256_vm2 = vweird.f32 %v7861_v52  ;;  %v3262_v43 = vand.u32 2147483648, %v7861_v52  ;;  %vm7895_vm12 = vmor %vm1997_vm6, %vm1998_vm8 }
 0x7b2   : > { %4734 = vrcp.f32 %v7865_v50  ;;  %v7875_v42 = vpop.eup %4726  ;;  %v1994_v13 = vsub.f32 1.0, %v1993_v3  ;;  %v2062_v47 = vmul.f32 %v4725_v29, %v7855_v12  ;;  %vm7883_vm11 = vcmp.eq.f32.partialorder %v3191_v10, 8.507059e+37 }
 0x7b3   : > { %v2146_v54 = vmul.f32 %v7875_v42, %v7857_v35  ;;  %v3194_v25 = vor.u32 1.1754944e-38, %v3193_v53  ;;  %vm7889_vm1 = vcmp.eq.f32.partialorder %v3260_v33, 8.507059e+37  ;;  %vm2067_vm9 = vweird.f32 %v4725_v29 }
 0x7b4   : > { %v1995_v16 = vmul.f32 %v4721_v2, %v1994_v13  ;;  %v2063_v22 = vsub.f32 1.0, %v2062_v47  ;;  %v3263_v62 = vor.u32 1.1754944e-38, %v3262_v43  ;;  %vm7904_vm14 = vmor %vm2066_vm13, %vm2067_vm9  ;;  %vm3340_vm13 = vweird.f32 %v7865_v50 }
 0x7b5   : > { %v4729_v6 = vpop.eup %4728  ;;  %v2147_v11 = vsub.f32 1.0, %v2146_v54  ;;  %v3346_v54 = vand.u32 2147483648, %v7865_v50  ;;  %v3344_v1 = vand.u32 2147483647, %v7865_v50 }
 0x7b6   : > { %v4731_v30 = vpop.eup %4730  ;;  %v3183_v15 = vmul.f32 %v4729_v6, %v3165_v38  ;;  %vm3188_vm15 = vweird.f32 %v4729_v6  ;;  %v1996_v57 = vadd.f32 %v4721_v2, %v1995_v16  ;;  %v2064_v44 = vmul.f32 %v4725_v29, %v2063_v22 }
 0x7b7   : > { %v4733_v21 = vpop.eup %4732  ;;  %v3252_v32 = vmul.f32 %v4731_v30, %v7861_v52  ;;  %vm3257_vm3 = vweird.f32 %v4731_v30  ;;  %vm7909_vm0 = vmor %vm3187_vm10, %vm3188_vm15  ;;  %v2148_v38 = vmul.f32 %v7875_v42, %v2147_v11  ;;  %v2157_v16 = vor.u32 1.1754944e-38, %v2156_v31 }
 0x7b8   : > { %v3184_v48 = vsub.f32 1.0, %v3183_v15  ;;  %v4735_v0 = vpop.eup %4734  ;;  %v2000_v60 = vsel %vm7895_vm12, %v4721_v2, %v1996_v57  ;;  %v2065_v41 = vadd.f32 %v4725_v29, %v2064_v44  ;;  %vm7917_vm6 = vmor %vm3256_vm2, %vm3257_vm3  ;;  %v2250_v57 = vmul.f32 %v4075_v8, %v5149_v19 }
 0x7b9   : > { %v3253_v63 = vsub.f32 1.0, %v3252_v32  ;;  %v3336_v61 = vmul.f32 %v4735_v0, %v7865_v50  ;;  %v2005_v45 = vsel %vm7867_vm4, %v2004_v51, %v2000_v60  ;;  %vm2151_vm4 = vweird.f32 %v7875_v42 }
 0x7ba   : > { %v3185_v27 = vmul.f32 %v4729_v6, %v3184_v48  ;;  %v2069_v53 = vsel %vm7904_vm14, %v4725_v29, %v2065_v41  ;;  %v2165_v20 = vmul.f32 %v4723_v58, %v2005_v45  ;;  %vm3341_vm8 = vweird.f32 %v4735_v0  ;;  %vm2152_vm10 = vmor %vm2150_vm7, %vm2151_vm4 }
 0x7bb   : > { %v3254_v24 = vmul.f32 %v4731_v30, %v3253_v63  ;;  %v3337_v2 = vsub.f32 1.0, %v3336_v61  ;;  %v2074_v33 = vsel %vm2071_vm5, %v2073_v49, %v2069_v53  ;;  %vm3342_vm2 = vmor %vm3340_vm13, %vm3341_vm8  ;;  %v2181_v50 = vmul.f32 %v4075_v8, %v5145_v17 }
 0x7bc   : > { %v3186_v3 = vadd.f32 %v4729_v6, %v3185_v27  ;;  %v2162_v29 = vmul.f32 %v2074_v33, %v7797_v14  ;;  %v2334_v63 = vmul.f32 %v4075_v8, %v5176_v36  ;;  %vm8365_vm7 = vcmask 187392  }
 0x7bd   : > { %v3255_v10 = vadd.f32 %v4731_v30, %v3254_v24  ;;  %v3338_v52 = vmul.f32 %v4735_v0, %v3337_v2  ;;  %v3877_v24 = vpop.f32.mrf.mxu1  ;;  %v2319_v53 = vmul.f32 %v4075_v8, %v5194_v55  ;;  %vm8366_vm12 = vmmov %vm8365_vm7 }
 0x7be   : > { %v3190_v51 = vsel %vm7909_vm0, %v4729_v6, %v3186_v3  ;;  %v2149_v6 = vadd.f32 %v7875_v42, %v2148_v38  ;;  %v3888_v2 = vmul.f32 %v7843_v5, %v3877_v24 }
 0x7bf   : > { %v3195_v13 = vsel %vm7883_vm11, %v3194_v25, %v3190_v51  ;;  %v3259_v47 = vsel %vm7917_vm6, %v4731_v30, %v3255_v10  ;;  %v7944_v30 = vadd.f32 %v2165_v20, %v2162_v29  ;;  %v3339_v14 = vadd.f32 %v4735_v0, %v3338_v52 }
 0x7c0   : > { %v3264_v58 = vsel %vm7889_vm1, %v3263_v62, %v3259_v47  ;;  %v3369_v43 = vmul.f32 %v4733_v21, %v3195_v13  ;;  %vm2155_vm11 = vcmp.eq.f32.partialorder %v2154_v40, 8.507059e+37  ;;  %v3347_v21 = vor.u32 1.1754944e-38, %v3346_v54 }
 0x7c1   : > { %v3366_v15 = vmul.f32 %v3264_v58, %v7821_v39  ;;  %4736 = vtanh.f32 %v7944_v30  ;;  %v2153_v39 = vsel %vm2152_vm10, %v7875_v42, %v2149_v6  ;;  %v3343_v35 = vsel %vm3342_vm2, %v4735_v0, %v3339_v14 }
 0x7c2   : > { %vm3345_vm1 = vcmp.eq.f32.partialorder %v3344_v1, 8.507059e+37  ;;  %v2158_v32 = vsel %vm2155_vm11, %v2157_v16, %v2153_v39 }
 0x7c3   : > { %v3372_v25 = vadd.f32 %v3369_v43, %v3366_v15  ;;  %v3348_v22 = vsel %vm3345_vm1, %v3347_v21, %v3343_v35 }
 0x7c5   : > { %4738 = vtanh.f32 %v3372_v25 }
 0x7c7   : > { %v4737_v7 = vpop.eup %4736 }
 0x7c8   : > { %v2174_v48 = vmul.f32 %v4737_v7, %v2158_v32 }
 0x7ca   : > { %v2184_v42 = vmul.f32 %v2174_v48, %v5147_v18  ;;  %v2253_v44 = vmul.f32 %v2174_v48, %v5156_v23  ;;  %v2337_v0 = vmul.f32 %v2174_v48, %v5178_v37  ;;  %v2322_v20 = vmul.f32 %v2174_v48, %v5196_v56 }
 0x7cb   : > { %v4739_v11 = vpop.eup %4738 }
 0x7cc   : > { %v3378_v62 = vmul.f32 %v4739_v11, %v3348_v22  ;;  %v2187_v61 = vadd.f32 %v2184_v42, %v2181_v50  ;;  %v2256_v60 = vadd.f32 %v2253_v44, %v2250_v57  ;;  %v2340_v34 = vadd.f32 %v2337_v0, %v2334_v63 }
 0x7cd   : > { %v2325_v47 = vadd.f32 %v2322_v20, %v2319_v53 }
 0x7ce   : > { %v3382_v27 = vmul.f32 %v7706_v9, %v3378_v62  ;;  %v2190_v49 = vadd.f32 %v2187_v61, %v5162_v26  ;;  %v2259_v59 = vadd.f32 %v2256_v60, %v5165_v28  ;;  %v2343_v45 = vadd.f32 %v2340_v34, %v5189_v46 }
 0x7cf   : > { %v2328_v29 = vadd.f32 %v2325_v47, %v5206_v4 }
 0x7d0   : > { %3386 = vst.msk [vmem:[%s7802_s20 + $0x8] sm:$0xff] %vm8365_vm7, %v3382_v27  ;;  %v4078_v41 = vmul.f32 -1.442695, %v2190_v49  ;;  %v4081_v3 = vmul.f32 -1.442695, %v2259_v59 }
 0x7d1   : > { %v4084_v12 = vmul.f32 -1.442695, %v2343_v45 }
 0x7d2   : > { %4740 = vpow2.f32 %v4078_v41 }
 0x7d3   : > { %4742 = vpow2.f32 %v4081_v3  ;;  %v4087_v3 = vld [vmem:[%s5043_s29 + $0xd0] sm:$0xff] }
 0x7d4   : > { %4744 = vpow2.f32 %v4084_v12 }
 0x7d7   : > { %v3884_v38 = vld [vmem:[%s7802_s20 + $0x8] sm:$0xff] }
 0x7d8   : > { %v3891_v10 = vadd.f32 %v3888_v2, %v3884_v38  ;;  %v4741_v51 = vpop.eup %4740  ;;  %v2422_v38 = vmul.f32 %v4087_v3, %v5145_v17 }
 0x7d9   : > { %v4743_v52 = vpop.eup %4742  ;;  %v2202_v33 = vadd.f32 1.0, %v4741_v51 }
 0x7da   : > { %3894 = vst.msk [vmem:[%s7802_s20 + $0x8] sm:$0xff] %vm8366_vm12, %v3891_v10  ;;  %v4745_v40 = vpop.eup %4744  ;;  %v2271_v13 = vadd.f32 1.0, %v4743_v52  ;;  %v2491_v10 = vmul.f32 %v4087_v3, %v5149_v19 }
 0x7db   : > { %4746 = vrcp.f32 %v2202_v33  ;;  %v2355_v31 = vadd.f32 1.0, %v4745_v40  ;;  %vm2238_vm9 = vweird.f32 %v2202_v33  ;;  %v2244_v54 = vand.u32 2147483648, %v2202_v33 }
 0x7dc   : > { %4748 = vrcp.f32 %v2271_v13  ;;  %v2242_v1 = vand.u32 2147483647, %v2202_v33  ;;  %v2313_v25 = vand.u32 2147483648, %v2271_v13  ;;  %vm2307_vm3 = vweird.f32 %v2271_v13 }
 0x7dd   : > { %4750 = vrcp.f32 %v2355_v31  ;;  %v2311_v21 = vand.u32 2147483647, %v2271_v13  ;;  %v2245_v8 = vor.u32 1.1754944e-38, %v2244_v54  ;;  %vm2391_vm4 = vweird.f32 %v2355_v31 }
 0x7de   : > { %4752 = vtanh.f32 %v2328_v29  ;;  %vm2243_vm5 = vcmp.eq.f32.partialorder %v2242_v1, 8.507059e+37  ;;  %v2314_v48 = vor.u32 1.1754944e-38, %v2313_v25  ;;  %v2397_v61 = vand.u32 2147483648, %v2355_v31 }
 0x7df   : > { %vm2312_vm13 = vcmp.eq.f32.partialorder %v2311_v21, 8.507059e+37  ;;  %v2395_v49 = vand.u32 2147483647, %v2355_v31 }
 0x7e0   : > { %v2398_v24 = vor.u32 1.1754944e-38, %v2397_v61 }
 0x7e1   : > { %v4747_v58 = vpop.eup %4746  ;;  %vm2396_vm2 = vcmp.eq.f32.partialorder %v2395_v49, 8.507059e+37 }
 0x7e2   : > { %v4749_v43 = vpop.eup %4748  ;;  %v2234_v6 = vmul.f32 %v4747_v58, %v2202_v33  ;;  %vm2239_vm15 = vweird.f32 %v4747_v58 }
 0x7e3   : > { %v2303_v15 = vmul.f32 %v4749_v43, %v2271_v13  ;;  %v4751_v16 = vpop.eup %4750  ;;  %vm2308_vm14 = vweird.f32 %v4749_v43  ;;  %vm2240_vm0 = vmor %vm2238_vm9, %vm2239_vm15 }
 0x7e4   : > { %v2235_v14 = vsub.f32 1.0, %v2234_v6  ;;  %v2387_v32 = vmul.f32 %v4751_v16, %v2355_v31  ;;  %vm2309_vm6 = vmor %vm2307_vm3, %vm2308_vm14  ;;  %v4753_v57 = vpop.eup %4752  ;;  %vm2392_vm8 = vweird.f32 %v4751_v16  ;;  %v2560_v6 = vmul.f32 %v4087_v3, %v5194_v55 }
 0x7e5   : > { %v2304_v39 = vsub.f32 1.0, %v2303_v15  ;;  %vm2393_vm10 = vmor %vm2391_vm4, %vm2392_vm8 }
 0x7e6   : > { %v2236_v35 = vmul.f32 %v4747_v58, %v2235_v14  ;;  %v2388_v50 = vsub.f32 1.0, %v2387_v32 }
 0x7e7   : > { %v2305_v7 = vmul.f32 %v4749_v43, %v2304_v39 }
 0x7e8   : > { %v2237_v22 = vadd.f32 %v4747_v58, %v2236_v35  ;;  %v2389_v62 = vmul.f32 %v4751_v16, %v2388_v50 }
 0x7e9   : > { %v2306_v11 = vadd.f32 %v4749_v43, %v2305_v7 }
 0x7ea   : > { %v2241_v63 = vsel %vm2240_vm0, %v4747_v58, %v2237_v22  ;;  %v2390_v34 = vadd.f32 %v4751_v16, %v2389_v62 }
 0x7eb   : > { %v2246_v42 = vsel %vm2243_vm5, %v2245_v8, %v2241_v63  ;;  %v2310_v44 = vsel %vm2309_vm6, %v4749_v43, %v2306_v11 }
 0x7ec   : > { %v2315_v0 = vsel %vm2312_vm13, %v2314_v48, %v2310_v44  ;;  %v2406_v27 = vmul.f32 %v4753_v57, %v2246_v42  ;;  %v2394_v45 = vsel %vm2393_vm10, %v4751_v16, %v2390_v34 }
 0x7ed   : > { %v2403_v60 = vmul.f32 %v2315_v0, %v7944_v30  ;;  %v2399_v41 = vsel %vm2396_vm2, %v2398_v24, %v2394_v45  ;;  %v2575_v30 = vmul.f32 %v4087_v3, %v5176_v36 }
 0x7ef   : > { %v7973_v59 = vadd.f32 %v2406_v27, %v2403_v60 }
 0x7f1   : > { %4754 = vtanh.f32 %v7973_v59 }
 0x7f7   : > { %v4755_v12 = vpop.eup %4754 }
 0x7f8   : > { %v2415_v2 = vmul.f32 %v4755_v12, %v2399_v41 }
 0x7fa   : > { %v2425_v53 = vmul.f32 %v2415_v2, %v5147_v18  ;;  %v2494_v20 = vmul.f32 %v2415_v2, %v5156_v23  ;;  %v2578_v51 = vmul.f32 %v2415_v2, %v5178_v37  ;;  %v2563_v54 = vmul.f32 %v2415_v2, %v5196_v56 }
 0x7fc   : > { %v2428_v52 = vadd.f32 %v2425_v53, %v2422_v38  ;;  %v2497_v33 = vadd.f32 %v2494_v20, %v2491_v10  ;;  %v2581_v40 = vadd.f32 %v2578_v51, %v2575_v30  ;;  %v2566_v39 = vadd.f32 %v2563_v54, %v2560_v6 }
 0x7fe   : > { %v2431_v13 = vadd.f32 %v2428_v52, %v5162_v26  ;;  %v2500_v47 = vadd.f32 %v2497_v33, %v5165_v28  ;;  %v2584_v31 = vadd.f32 %v2581_v40, %v5189_v46  ;;  %v2569_v35 = vadd.f32 %v2566_v39, %v5206_v4 }
 0x800   : > { %v4090_v29 = vmul.f32 -1.442695, %v2431_v13  ;;  %v4093_v58 = vmul.f32 -1.442695, %v2500_v47  ;;  %v4096_v43 = vmul.f32 -1.442695, %v2584_v31 }
 0x801   : > { %v4099_v47 = vld [vmem:[%s5043_s29 + $0xe8] sm:$0xff] }
 0x802   : > { %4756 = vpow2.f32 %v4090_v29 }
 0x803   : > { %4758 = vpow2.f32 %v4093_v58  ;;  %v2663_v58 = vmul.f32 %v4099_v47, %v5145_v17 }
 0x804   : > { %4760 = vpow2.f32 %v4096_v43  ;;  %v2732_v43 = vmul.f32 %v4099_v47, %v5149_v19 }
 0x808   : > { %v4757_v15 = vpop.eup %4756 }
 0x809   : > { %v4759_v14 = vpop.eup %4758  ;;  %v2443_v1 = vadd.f32 1.0, %v4757_v15 }
 0x80a   : > { %v4761_v25 = vpop.eup %4760  ;;  %v2512_v16 = vadd.f32 1.0, %v4759_v14 }
 0x80b   : > { %4762 = vrcp.f32 %v2443_v1  ;;  %v2596_v21 = vadd.f32 1.0, %v4761_v25  ;;  %vm2479_vm11 = vweird.f32 %v2443_v1  ;;  %v2485_v22 = vand.u32 2147483648, %v2443_v1 }
 0x80c   : > { %4764 = vrcp.f32 %v2512_v16  ;;  %v2483_v57 = vand.u32 2147483647, %v2443_v1  ;;  %v2554_v11 = vand.u32 2147483648, %v2512_v16  ;;  %vm2548_vm7 = vweird.f32 %v2512_v16 }
 0x80d   : > { %4766 = vrcp.f32 %v2596_v21  ;;  %v2552_v42 = vand.u32 2147483647, %v2512_v16  ;;  %v2486_v27 = vor.u32 1.1754944e-38, %v2485_v22  ;;  %vm2632_vm0 = vweird.f32 %v2596_v21 }
 0x80e   : > { %4768 = vtanh.f32 %v2569_v35  ;;  %vm2484_vm15 = vcmp.eq.f32.partialorder %v2483_v57, 8.507059e+37  ;;  %v2555_v34 = vor.u32 1.1754944e-38, %v2554_v11  ;;  %v2638_v30 = vand.u32 2147483648, %v2596_v21 }
 0x80f   : > { %vm2553_vm14 = vcmp.eq.f32.partialorder %v2552_v42, 8.507059e+37  ;;  %v2636_v51 = vand.u32 2147483647, %v2596_v21 }
 0x810   : > { %v2639_v33 = vor.u32 1.1754944e-38, %v2638_v30 }
 0x811   : > { %v4763_v32 = vpop.eup %4762  ;;  %vm2637_vm13 = vcmp.eq.f32.partialorder %v2636_v51, 8.507059e+37 }
 0x812   : > { %v4765_v8 = vpop.eup %4764  ;;  %v2475_v7 = vmul.f32 %v4763_v32, %v2443_v1  ;;  %vm2480_vm1 = vweird.f32 %v4763_v32 }
 0x813   : > { %v2544_v48 = vmul.f32 %v4765_v8, %v2512_v16  ;;  %v4767_v63 = vpop.eup %4766  ;;  %vm2549_vm12 = vweird.f32 %v4765_v8  ;;  %vm2481_vm9 = vmor %vm2479_vm11, %vm2480_vm1 }
 0x814   : > { %v2476_v50 = vsub.f32 1.0, %v2475_v7  ;;  %v2628_v0 = vmul.f32 %v4767_v63, %v2596_v21  ;;  %vm2550_vm3 = vmor %vm2548_vm7, %vm2549_vm12  ;;  %v4769_v24 = vpop.eup %4768  ;;  %vm2633_vm5 = vweird.f32 %v4767_v63  ;;  %v2801_v7 = vmul.f32 %v4099_v47, %v5194_v55 }
 0x815   : > { %v2545_v62 = vsub.f32 1.0, %v2544_v48  ;;  %vm2634_vm6 = vmor %vm2632_vm0, %vm2633_vm5 }
 0x816   : > { %v2477_v44 = vmul.f32 %v4763_v32, %v2476_v50  ;;  %v2629_v49 = vsub.f32 1.0, %v2628_v0 }
 0x817   : > { %v2546_v61 = vmul.f32 %v4765_v8, %v2545_v62 }
 0x818   : > { %v2478_v60 = vadd.f32 %v4763_v32, %v2477_v44  ;;  %v2630_v3 = vmul.f32 %v4767_v63, %v2629_v49 }
 0x819   : > { %v2547_v45 = vadd.f32 %v4765_v8, %v2546_v61 }
 0x81a   : > { %v2482_v41 = vsel %vm2481_vm9, %v4763_v32, %v2478_v60  ;;  %v2631_v20 = vadd.f32 %v4767_v63, %v2630_v3 }
 0x81b   : > { %v2487_v12 = vsel %vm2484_vm15, %v2486_v27, %v2482_v41  ;;  %v2551_v2 = vsel %vm2550_vm3, %v4765_v8, %v2547_v45 }
 0x81c   : > { %v2556_v38 = vsel %vm2553_vm14, %v2555_v34, %v2551_v2  ;;  %v2647_v10 = vmul.f32 %v4769_v24, %v2487_v12  ;;  %v2635_v40 = vsel %vm2634_vm6, %v4767_v63, %v2631_v20 }
 0x81d   : > { %v2644_v53 = vmul.f32 %v2556_v38, %v7973_v59  ;;  %v2640_v13 = vsel %vm2637_vm13, %v2639_v33, %v2635_v40  ;;  %v2816_v59 = vmul.f32 %v4099_v47, %v5176_v36 }
 0x81f   : > { %v7991_v52 = vadd.f32 %v2647_v10, %v2644_v53 }
 0x821   : > { %4770 = vtanh.f32 %v7991_v52 }
 0x827   : > { %v4771_v31 = vpop.eup %4770 }
 0x828   : > { %v2656_v29 = vmul.f32 %v4771_v31, %v2640_v13 }
 0x82a   : > { %v2666_v6 = vmul.f32 %v2656_v29, %v5147_v18  ;;  %v2735_v54 = vmul.f32 %v2656_v29, %v5156_v23  ;;  %v2819_v15 = vmul.f32 %v2656_v29, %v5178_v37  ;;  %v2804_v22 = vmul.f32 %v2656_v29, %v5196_v56 }
 0x82c   : > { %v2669_v14 = vadd.f32 %v2666_v6, %v2663_v58  ;;  %v2738_v1 = vadd.f32 %v2735_v54, %v2732_v43  ;;  %v2822_v25 = vadd.f32 %v2819_v15, %v2816_v59  ;;  %v2807_v62 = vadd.f32 %v2804_v22, %v2801_v7 }
 0x82e   : > { %v2672_v16 = vadd.f32 %v2669_v14, %v5162_v26  ;;  %v2741_v39 = vadd.f32 %v2738_v1, %v5165_v28  ;;  %v2825_v21 = vadd.f32 %v2822_v25, %v5189_v46  ;;  %v2810_v44 = vadd.f32 %v2807_v62, %v5206_v4 }
 0x830   : > { %v4102_v35 = vmul.f32 -1.442695, %v2672_v16  ;;  %v4105_v32 = vmul.f32 -1.442695, %v2741_v39  ;;  %v4108_v8 = vmul.f32 -1.442695, %v2825_v21 }
 0x831   : > { %v4111_v39 = vld [vmem:[%s5043_s29 + $0x100] sm:$0xff] }
 0x832   : > { %4772 = vpow2.f32 %v4102_v35 }
 0x833   : > { %4774 = vpow2.f32 %v4105_v32  ;;  %v2904_v32 = vmul.f32 %v4111_v39, %v5145_v17 }
 0x834   : > { %4776 = vpow2.f32 %v4108_v8  ;;  %v2973_v8 = vmul.f32 %v4111_v39, %v5149_v19 }
 0x838   : > { %v4773_v48 = vpop.eup %4772 }
 0x839   : > { %v4775_v50 = vpop.eup %4774  ;;  %v2684_v57 = vadd.f32 1.0, %v4773_v48 }
 0x83a   : > { %v4777_v11 = vpop.eup %4776  ;;  %v2753_v63 = vadd.f32 1.0, %v4775_v50 }
 0x83b   : > { %4778 = vrcp.f32 %v2684_v57  ;;  %v2837_v42 = vadd.f32 1.0, %v4777_v11  ;;  %vm2720_vm4 = vweird.f32 %v2684_v57  ;;  %v2726_v60 = vand.u32 2147483648, %v2684_v57 }
 0x83c   : > { %4780 = vrcp.f32 %v2753_v63  ;;  %v2724_v24 = vand.u32 2147483647, %v2684_v57  ;;  %v2795_v45 = vand.u32 2147483648, %v2753_v63  ;;  %vm2789_vm10 = vweird.f32 %v2753_v63 }
 0x83d   : > { %4782 = vrcp.f32 %v2837_v42  ;;  %v2793_v12 = vand.u32 2147483647, %v2753_v63  ;;  %v2727_v10 = vor.u32 1.1754944e-38, %v2726_v60  ;;  %vm2873_vm9 = vweird.f32 %v2837_v42 }
 0x83e   : > { %4784 = vtanh.f32 %v2810_v44  ;;  %vm2725_vm1 = vcmp.eq.f32.partialorder %v2724_v24, 8.507059e+37  ;;  %v2796_v20 = vor.u32 1.1754944e-38, %v2795_v45  ;;  %v2879_v59 = vand.u32 2147483648, %v2837_v42 }
 0x83f   : > { %vm2794_vm12 = vcmp.eq.f32.partialorder %v2793_v12, 8.507059e+37  ;;  %v2877_v15 = vand.u32 2147483647, %v2837_v42 }
 0x840   : > { %v2880_v1 = vor.u32 1.1754944e-38, %v2879_v59 }
 0x841   : > { %v4779_v0 = vpop.eup %4778  ;;  %vm2878_vm14 = vcmp.eq.f32.partialorder %v2877_v15, 8.507059e+37 }
 0x842   : > { %v4781_v27 = vpop.eup %4780  ;;  %v2716_v61 = vmul.f32 %v4779_v0, %v2684_v57  ;;  %vm2721_vm8 = vweird.f32 %v4779_v0 }
 0x843   : > { %v2785_v34 = vmul.f32 %v4781_v27, %v2753_v63  ;;  %v4783_v41 = vpop.eup %4782  ;;  %vm2790_vm2 = vweird.f32 %v4781_v27  ;;  %vm2722_vm11 = vmor %vm2720_vm4, %vm2721_vm8 }
 0x844   : > { %v2717_v49 = vsub.f32 1.0, %v2716_v61  ;;  %v2869_v38 = vmul.f32 %v4783_v41, %v2837_v42  ;;  %vm2791_vm7 = vmor %vm2789_vm10, %vm2790_vm2  ;;  %v4785_v33 = vpop.eup %4784  ;;  %vm2874_vm15 = vweird.f32 %v4783_v41  ;;  %v3042_v61 = vmul.f32 %v4111_v39, %v5194_v55 }
 0x845   : > { %v2786_v3 = vsub.f32 1.0, %v2785_v34  ;;  %vm2875_vm3 = vmor %vm2873_vm9, %vm2874_vm15 }
 0x846   : > { %v2718_v2 = vmul.f32 %v4779_v0, %v2717_v49  ;;  %v2870_v51 = vsub.f32 1.0, %v2869_v38 }
 0x847   : > { %v2787_v30 = vmul.f32 %v4781_v27, %v2786_v3 }
 0x848   : > { %v2719_v53 = vadd.f32 %v4779_v0, %v2718_v2  ;;  %v2871_v47 = vmul.f32 %v4783_v41, %v2870_v51 }
 0x849   : > { %v2788_v40 = vadd.f32 %v4781_v27, %v2787_v30 }
 0x84a   : > { %v2723_v13 = vsel %vm2722_vm11, %v4779_v0, %v2719_v53  ;;  %v2872_v54 = vadd.f32 %v4783_v41, %v2871_v47 }
 0x84b   : > { %v2728_v31 = vsel %vm2725_vm1, %v2727_v10, %v2723_v13  ;;  %v2792_v29 = vsel %vm2791_vm7, %v4781_v27, %v2788_v40 }
 0x84c   : > { %v2797_v58 = vsel %vm2794_vm12, %v2796_v20, %v2792_v29  ;;  %v2888_v43 = vmul.f32 %v4785_v33, %v2728_v31  ;;  %v2876_v25 = vsel %vm2875_vm3, %v4783_v41, %v2872_v54 }
 0x84d   : > { %v2885_v6 = vmul.f32 %v2797_v58, %v7991_v52  ;;  %v2881_v16 = vsel %vm2878_vm14, %v2880_v1, %v2876_v25  ;;  %v3057_v52 = vmul.f32 %v4111_v39, %v5176_v36 }
 0x84f   : > { %v8009_v14 = vadd.f32 %v2888_v43, %v2885_v6 }
 0x851   : > { %4786 = vtanh.f32 %v8009_v14 }
 0x857   : > { %v4787_v21 = vpop.eup %4786 }
 0x858   : > { %v2897_v35 = vmul.f32 %v4787_v21, %v2881_v16 }
 0x85a   : > { %v2907_v7 = vmul.f32 %v2897_v35, %v5147_v18  ;;  %v2976_v22 = vmul.f32 %v2897_v35, %v5156_v23  ;;  %v3060_v48 = vmul.f32 %v2897_v35, %v5178_v37  ;;  %v3045_v60 = vmul.f32 %v2897_v35, %v5196_v56 }
 0x85c   : > { %v2910_v50 = vadd.f32 %v2907_v7, %v2904_v32  ;;  %v2979_v57 = vadd.f32 %v2976_v22, %v2973_v8  ;;  %v3063_v11 = vadd.f32 %v3060_v48, %v3057_v52  ;;  %v3048_v3 = vadd.f32 %v3045_v60, %v3042_v61 }
 0x85e   : > { %v2913_v63 = vadd.f32 %v2910_v50, %v5162_v26  ;;  %v2982_v62 = vadd.f32 %v2979_v57, %v5165_v28  ;;  %v3066_v42 = vadd.f32 %v3063_v11, %v5189_v46  ;;  %v3051_v2 = vadd.f32 %v3048_v3, %v5206_v4 }
 0x860   : > { %v4114_v44 = vmul.f32 -1.442695, %v2913_v63  ;;  %v4117_v0 = vmul.f32 -1.442695, %v2982_v62  ;;  %v4120_v27 = vmul.f32 -1.442695, %v3066_v42 }
 0x861   : > { %v4123_v62 = vld [vmem:[%s5043_s29 + $0x118] sm:$0xff] }
 0x862   : > { %4788 = vpow2.f32 %v4114_v44 }
 0x863   : > { %4790 = vpow2.f32 %v4117_v0  ;;  %v3145_v0 = vmul.f32 %v4123_v62, %v5145_v17 }
 0x864   : > { %4792 = vpow2.f32 %v4120_v27  ;;  %v3214_v27 = vmul.f32 %v4123_v62, %v5149_v19 }
 0x868   : > { %v4789_v34 = vpop.eup %4788 }
 0x869   : > { %v4791_v49 = vpop.eup %4790  ;;  %v2925_v24 = vadd.f32 1.0, %v4789_v34 }
 0x86a   : > { %v4793_v45 = vpop.eup %4792  ;;  %v2994_v41 = vadd.f32 1.0, %v4791_v49 }
 0x86b   : > { %4794 = vrcp.f32 %v2925_v24  ;;  %v3078_v12 = vadd.f32 1.0, %v4793_v45  ;;  %vm2961_vm0 = vweird.f32 %v2925_v24  ;;  %v2967_v53 = vand.u32 2147483648, %v2925_v24 }
 0x86c   : > { %4796 = vrcp.f32 %v2994_v41  ;;  %v2965_v33 = vand.u32 2147483647, %v2925_v24  ;;  %v3036_v40 = vand.u32 2147483648, %v2994_v41  ;;  %vm3030_vm6 = vweird.f32 %v2994_v41 }
 0x86d   : > { %4798 = vrcp.f32 %v3078_v12  ;;  %v3034_v31 = vand.u32 2147483647, %v2994_v41  ;;  %v2968_v43 = vor.u32 1.1754944e-38, %v2967_v53  ;;  %vm3114_vm11 = vweird.f32 %v3078_v12 }
 0x86e   : > { %4800 = vtanh.f32 %v3051_v2  ;;  %vm2966_vm8 = vcmp.eq.f32.partialorder %v2965_v33, 8.507059e+37  ;;  %v3037_v54 = vor.u32 1.1754944e-38, %v3036_v40  ;;  %v3120_v52 = vand.u32 2147483648, %v3078_v12 }
 0x86f   : > { %vm3035_vm2 = vcmp.eq.f32.partialorder %v3034_v31, 8.507059e+37  ;;  %v3118_v48 = vand.u32 2147483647, %v3078_v12 }
 0x870   : > { %v3121_v57 = vor.u32 1.1754944e-38, %v3120_v52 }
 0x871   : > { %v4795_v38 = vpop.eup %4794  ;;  %vm3119_vm12 = vcmp.eq.f32.partialorder %v3118_v48, 8.507059e+37 }
 0x872   : > { %v4797_v10 = vpop.eup %4796  ;;  %v2957_v30 = vmul.f32 %v4795_v38, %v2925_v24  ;;  %vm2962_vm5 = vweird.f32 %v4795_v38 }
 0x873   : > { %v3026_v20 = vmul.f32 %v4797_v10, %v2994_v41  ;;  %v4799_v13 = vpop.eup %4798  ;;  %vm3031_vm13 = vweird.f32 %v4797_v10  ;;  %vm2963_vm4 = vmor %vm2961_vm0, %vm2962_vm5 }
 0x874   : > { %v2958_v51 = vsub.f32 1.0, %v2957_v30  ;;  %v3110_v58 = vmul.f32 %v4799_v13, %v3078_v12  ;;  %vm3032_vm10 = vmor %vm3030_vm6, %vm3031_vm13  ;;  %v4801_v1 = vpop.eup %4800  ;;  %vm3115_vm1 = vweird.f32 %v4799_v13 }
 0x875   : > { %v3027_v47 = vsub.f32 1.0, %v3026_v20  ;;  %vm3116_vm7 = vmor %vm3114_vm11, %vm3115_vm1  ;;  %vm8367_vm11 = vcmask 187392  }
 0x876   : > { %v2959_v29 = vmul.f32 %v4795_v38, %v2958_v51  ;;  %v3111_v15 = vsub.f32 1.0, %v3110_v58  ;;  %vm8368_vm1 = vmmov %vm8367_vm11 }
 0x877   : > { %v3028_v59 = vmul.f32 %v4797_v10, %v3027_v47 }
 0x878   : > { %v2960_v6 = vadd.f32 %v4795_v38, %v2959_v29  ;;  %v3112_v39 = vmul.f32 %v4799_v13, %v3111_v15 }
 0x879   : > { %v3029_v25 = vadd.f32 %v4797_v10, %v3028_v59 }
 0x87a   : > { %v2964_v16 = vsel %vm2963_vm4, %v4795_v38, %v2960_v6  ;;  %v3113_v22 = vadd.f32 %v4799_v13, %v3112_v39 }
 0x87b   : > { %v2969_v21 = vsel %vm2966_vm8, %v2968_v43, %v2964_v16  ;;  %v3033_v35 = vsel %vm3032_vm10, %v4797_v10, %v3029_v25 }
 0x87c   : > { %v3038_v32 = vsel %vm3035_vm2, %v3037_v54, %v3033_v35  ;;  %v3129_v8 = vmul.f32 %v4801_v1, %v2969_v21  ;;  %v3117_v11 = vsel %vm3116_vm7, %v4799_v13, %v3113_v22 }
 0x87d   : > { %v3126_v7 = vmul.f32 %v3038_v32, %v8009_v14  ;;  %v3122_v63 = vsel %vm3119_vm12, %v3121_v57, %v3117_v11  ;;  %v3298_v14 = vmul.f32 %v4123_v62, %v5176_v36 }
 0x87f   : > { %v8027_v50 = vadd.f32 %v3129_v8, %v3126_v7 }
 0x881   : > { %4802 = vtanh.f32 %v8027_v50 }
 0x887   : > { %v4803_v42 = vpop.eup %4802 }
 0x888   : > { %v3138_v44 = vmul.f32 %v4803_v42, %v3122_v63 }
 0x88a   : > { %v3148_v61 = vmul.f32 %v3138_v44, %v5147_v18  ;;  %v3217_v60 = vmul.f32 %v3138_v44, %v5156_v23  ;;  %v3301_v34 = vmul.f32 %v3138_v44, %v5178_v37  ;;  %v3283_v18 = vmul.f32 %v4123_v62, %v5194_v55 }
 0x88b   : > { %v3286_v23 = vmul.f32 %v3138_v44, %v5196_v56 }
 0x88c   : > { %v3151_v49 = vadd.f32 %v3148_v61, %v3145_v0  ;;  %v3220_v24 = vadd.f32 %v3217_v60, %v3214_v27  ;;  %v3304_v45 = vadd.f32 %v3301_v34, %v3298_v14  ;;  %v3880_v27 = vpop.f32.mrf.mxu1 }
 0x88e   : > { %v3154_v41 = vadd.f32 %v3151_v49, %v5162_v26  ;;  %v3223_v3 = vadd.f32 %v3220_v24, %v5165_v28  ;;  %v3307_v12 = vadd.f32 %v3304_v45, %v5189_v46  ;;  %v3289_v26 = vadd.f32 %v3286_v23, %v3283_v18 }
 0x890   : > { %v4126_v17 = vmul.f32 -1.442695, %v3154_v41  ;;  %v4129_v2 = vmul.f32 -1.442695, %v3223_v3  ;;  %v4132_v19 = vmul.f32 -1.442695, %v3307_v12  ;;  %v3292_v46 = vadd.f32 %v3289_v26, %v5206_v4 }
 0x892   : > { %4804 = vpow2.f32 %v4126_v17 }
 0x893   : > { %4806 = vpow2.f32 %v4129_v2 }
 0x894   : > { %4808 = vpow2.f32 %v4132_v19 }
 0x898   : > { %v4805_v36 = vpop.eup %4804 }
 0x899   : > { %v4807_v37 = vpop.eup %4806  ;;  %v3166_v38 = vadd.f32 1.0, %v4805_v36 }
 0x89a   : > { %v4809_v10 = vpop.eup %4808  ;;  %v3235_v30 = vadd.f32 1.0, %v4807_v37 }
 0x89b   : > { %4810 = vrcp.f32 %v3166_v38  ;;  %v3319_v28 = vadd.f32 1.0, %v4809_v10  ;;  %vm3202_vm9 = vweird.f32 %v3166_v38  ;;  %v3208_v33 = vand.u32 2147483648, %v3166_v38 }
 0x89c   : > { %4812 = vrcp.f32 %v3235_v30  ;;  %v3206_v40 = vand.u32 2147483647, %v3166_v38  ;;  %v3277_v13 = vand.u32 2147483648, %v3235_v30  ;;  %vm3271_vm3 = vweird.f32 %v3235_v30 }
 0x89d   : > { %4814 = vrcp.f32 %v3319_v28  ;;  %v3275_v29 = vand.u32 2147483647, %v3235_v30  ;;  %v3209_v4 = vor.u32 1.1754944e-38, %v3208_v33  ;;  %vm3355_vm4 = vweird.f32 %v3319_v28 }
 0x89e   : > { %4816 = vtanh.f32 %v3292_v46  ;;  %vm3207_vm5 = vcmp.eq.f32.partialorder %v3206_v40, 8.507059e+37  ;;  %v3278_v54 = vor.u32 1.1754944e-38, %v3277_v13  ;;  %v3361_v52 = vand.u32 2147483648, %v3319_v28 }
 0x89f   : > { %vm3276_vm13 = vcmp.eq.f32.partialorder %v3275_v29, 8.507059e+37  ;;  %v3359_v48 = vand.u32 2147483647, %v3319_v28 }
 0x8a0   : > { %v3362_v11 = vor.u32 1.1754944e-38, %v3361_v52 }
 0x8a1   : > { %v4811_v53 = vpop.eup %4810  ;;  %vm3360_vm2 = vcmp.eq.f32.partialorder %v3359_v48, 8.507059e+37 }
 0x8a2   : > { %v4813_v20 = vpop.eup %4812  ;;  %v3198_v51 = vmul.f32 %v4811_v53, %v3166_v38  ;;  %vm3203_vm15 = vweird.f32 %v4811_v53 }
 0x8a3   : > { %v3267_v55 = vmul.f32 %v4813_v20, %v3235_v30  ;;  %v4815_v47 = vpop.eup %4814  ;;  %vm3272_vm14 = vweird.f32 %v4813_v20  ;;  %vm3204_vm0 = vmor %vm3202_vm9, %vm3203_vm15 }
 0x8a4   : > { %v3199_v56 = vsub.f32 1.0, %v3198_v51  ;;  %v3351_v43 = vmul.f32 %v4815_v47, %v3319_v28  ;;  %vm3273_vm6 = vmor %vm3271_vm3, %vm3272_vm14  ;;  %v4817_v1 = vpop.eup %4816  ;;  %vm3356_vm8 = vweird.f32 %v4815_v47 }
 0x8a5   : > { %v3268_v31 = vsub.f32 1.0, %v3267_v55  ;;  %vm3357_vm10 = vmor %vm3355_vm4, %vm3356_vm8 }
 0x8a6   : > { %v3200_v58 = vmul.f32 %v4811_v53, %v3199_v56  ;;  %v3352_v15 = vsub.f32 1.0, %v3351_v43 }
 0x8a7   : > { %v3269_v59 = vmul.f32 %v4813_v20, %v3268_v31 }
 0x8a8   : > { %v3201_v6 = vadd.f32 %v4811_v53, %v3200_v58  ;;  %v3353_v39 = vmul.f32 %v4815_v47, %v3352_v15 }
 0x8a9   : > { %v3270_v25 = vadd.f32 %v4813_v20, %v3269_v59 }
 0x8aa   : > { %v3205_v16 = vsel %vm3204_vm0, %v4811_v53, %v3201_v6  ;;  %v3354_v22 = vadd.f32 %v4815_v47, %v3353_v39 }
 0x8ab   : > { %v3210_v21 = vsel %vm3207_vm5, %v3209_v4, %v3205_v16  ;;  %v3274_v35 = vsel %vm3273_vm6, %v4813_v20, %v3270_v25 }
 0x8ac   : > { %v3279_v32 = vsel %vm3276_vm13, %v3278_v54, %v3274_v35  ;;  %v3370_v8 = vmul.f32 %v4817_v1, %v3210_v21  ;;  %v3358_v63 = vsel %vm3357_vm10, %v4815_v47, %v3354_v22 }
 0x8ad   : > { %v3367_v7 = vmul.f32 %v3279_v32, %v8027_v50  ;;  %v3363_v62 = vsel %vm3360_vm2, %v3362_v11, %v3358_v63  ;;  %v3889_v50 = vmul.f32 %v7843_v5, %v3880_v27 }
 0x8af   : > { %v3373_v57 = vadd.f32 %v3370_v8, %v3367_v7 }
 0x8b1   : > { %4818 = vtanh.f32 %v3373_v57 }
 0x8b7   : > { %v4819_v42 = vpop.eup %4818 }
 0x8b8   : > { %v3379_v44 = vmul.f32 %v4819_v42, %v3363_v62 }
 0x8ba   : > { %v3383_v0 = vmul.f32 %v7706_v9, %v3379_v44 }
 0x8bc   : > { %3387 = vst.msk [vmem:[%s7802_s20 + $0x10] sm:$0xff] %vm8367_vm11, %v3383_v0 }
 0x8c3   : > { %v3885_v14 = vld [vmem:[%s7802_s20 + $0x10] sm:$0xff] }
 0x8c4   : > { %v3892_v61 = vadd.f32 %v3889_v50, %v3885_v14 }
 0x8c6   : > { %3895 = vst.msk [vmem:[%s7802_s20 + $0x10] sm:$0xff] %vm8368_vm1, %v3892_v61 }
 0x8c7 PF: > { %p15_p12 = scmp.ge.s32.totalorder %s4924_s28, 4   ;;  %s8369_s24 = smov %s4857_s25 }
 0x8c8   : > { %s8370_s25 = smov %s4934_s8  ;;  %s8371_s26 = smov %s4924_s28 }
 0x8c9   :  { %17 = sbr.rel (!%p15_p12) target bundleno = 2 (0x2), region = 137 }
 0x8ce   :  { %3918 = vsyncpa [#allocation4], 1 }
 0x8cf   :  { %3920 = vsyncpa [#allocation4 + $0x1], 1 }

</bundles_post_ra>
